<compile_context>
chip_gen: v5e
topology: v5e:2x2
jax: 0.10.0
libtpu: 0.0.40
codegen_flags: <defaults>
</compile_context>

<pallas_src>
import functools

import jax
import jax.numpy as jnp
from jax.experimental import pallas as pl
from jax.experimental.pallas import tpu as pltpu


_LANES = 128


def _round_up(x, m):
    return ((x + m - 1) // m) * m


# ----------------------------------------------------------------------------
# fused GNN kernel: one grid step == one block of P packed (graph_a, graph_b)
# pairs.  Node layout inside a block of NB = 2*P*M rows:
#   rows [q*M, (q+1)*M)          -> graph (block*P + q) of data_a   (segment q)
#   rows [P*M + q*M, P*M+(q+1)*M)-> graph (block*P + q) of data_b   (segment P+q)
# ----------------------------------------------------------------------------
def _gnn_kernel(adj_ref, x_ref, valid_ref,
                w1_ref, b1_ref, w2_ref, b2_ref, pwr_ref, w3_ref, b3_ref,
                n2s_ref, segmat_ref, out_ref, *, min_score):
    f32, bf16 = jnp.float32, jnp.bfloat16
    adj = adj_ref[0]            # [NB, NB] bf16 0/1 adjacency (row=dst, col=src)
    x = x_ref[0]                # [NB, Fpad] bf16 node features
    valid = valid_ref[0]        # [NB, 1]  f32, 1.0 for real nodes
    n2s = n2s_ref[...]          # [NB, SP] f32 one-hot node -> segment (graph,side)
    segmat = segmat_ref[...]    # [SP, NB] f32 (= n2s transposed, built in wrapper)
    hq = w3_ref.shape[1]
    nlane = out_ref.shape[-1]

    adj_f = adj.astype(f32)     # exact (0/1); used for the narrow f32 matvecs

    # gcn_norm folded into per-row scaling:  Ahat @ Y = dinv*(A@(dinv*Y) + dinv*Y)
    deg = jnp.sum(adj_f, axis=1, keepdims=True) + 1.0       # in-degree + self loop
    dinv = jax.lax.rsqrt(deg)                               # [NB, 1]

    def elu(y):                 # overflow-safe ELU(alpha=1)
        return jnp.where(y > 0.0, y, jnp.exp(jnp.minimum(y, 0.0)) - 1.0)

    def gcn(h_bf16, w_ref, b, scale, mask=None):
        # GCNConv with D^-1/2 (A+I) D^-1/2 folded into `scale`; optional `mask`
        # (keep) folds the row/col masking of the pooled adjacency into the
        # feature rows, so the masked adjacency is never materialized.
        hw = jnp.dot(h_bf16, w_ref[...], preferred_element_type=f32)   # [NB, O]
        u = scale * hw
        v = u if mask is None else mask * u
        t = jnp.dot(adj, v.astype(bf16), preferred_element_type=f32)
        if mask is not None:
            t = mask * t
        return scale * (t + u) + b

    h1 = elu(gcn(x, w1_ref, b1_ref[...], dinv))
    # F.dropout(p=0.5): eval mode -> identity
    h2 = elu(gcn(h1.astype(bf16), w2_ref, b2_ref[...], dinv))
    # F.dropout(p=0.5): eval mode -> identity

    # ---- SAGPooling(min_score): score GNN (GCNConv(H,1)) + per-graph softmax ----
    # h2 @ pool_w on the VPU (no N=1 MXU pass); pool bias omitted: it is a
    # constant shift inside a per-graph softmax -> forward output unchanged.
    s0 = jnp.sum(h2 * pwr_ref[...], axis=1, keepdims=True)             # [NB, 1]
    us = dinv * s0
    raw = dinv * (jnp.dot(adj_f, us, preferred_element_type=f32) + us)  # [NB, 1]

    NEG = -1e30
    vmask = valid > 0.0
    seg_sel = n2s > 0.0
    rawm = jnp.where(vmask, raw, NEG)
    seg_max = jnp.max(jnp.where(seg_sel, rawm, NEG), axis=0, keepdims=True)  # [1,SP]
    node_max = jnp.sum(n2s * seg_max, axis=1, keepdims=True)                 # [NB,1]
    e = jnp.where(vmask, jnp.exp(jnp.minimum(raw - node_max, 0.0)), 0.0)
    seg_den = jnp.sum(n2s * e, axis=0, keepdims=True)                        # [1,SP]
    node_den = jnp.sum(n2s * seg_den, axis=1, keepdims=True)
    score = e / (node_den + 1e-16)                                           # softmax(score, batch)
    seg_smax = jnp.max(n2s * score, axis=0, keepdims=True)
    # PyG topk(min_score): keep if score > min(graph_max - 1e-7, min_score)
    node_thr = jnp.sum(n2s * jnp.minimum(seg_smax - 1e-7, min_score),
                       axis=1, keepdims=True)
    keep = jnp.where(jnp.logical_and(score > node_thr, vmask), 1.0, 0.0)     # [NB,1]

    # ---- pooled graph (kept nodes only): conv3 + global_add_pool per graph ----
    nbr_keep = jnp.dot(adj_f, keep, preferred_element_type=f32)              # [NB,1]
    dinv2 = jax.lax.rsqrt(1.0 + keep * nbr_keep)                             # pooled-graph norm
    xp = h2 * (score * keep)                                                 # x[perm]*score[perm]
    h3 = elu(gcn(xp.astype(bf16), w3_ref, b3_ref[...], dinv2, mask=keep)) * keep
    pooled = jnp.dot(segmat, h3, preferred_element_type=f32)                 # [SP, HQ]

    out_ref[0] = jnp.concatenate(
        [pooled, jnp.zeros((pooled.shape[0], nlane - hq), f32)], axis=-1)    # lane-dense store


# ----------------------------------------------------------------------------
# classifier kernel: one batched MLP over ALL graphs (review opt 2)
# ----------------------------------------------------------------------------
def _clf_kernel(feat_ref, w1_ref, b1_ref, w2_ref, b2_ref, w3_ref, b3_ref, out_ref):
    f32 = jnp.float32
    h = jnp.dot(feat_ref[...], w1_ref[...], preferred_element_type=f32) + b1_ref[...]
    h = jnp.maximum(h, 0.0)
    # nn.Dropout(0.5): eval mode -> identity
    h = jnp.maximum(jnp.dot(h, w2_ref[...], preferred_element_type=f32) + b2_ref[...], 0.0)
    # nn.Dropout(0.5): eval mode -> identity
    out_ref[...] = jnp.dot(h, w3_ref[...], preferred_element_type=f32) + b3_ref[...]


# ----------------------------------------------------------------------------
# plain-JAX glue: pack (x, edge_index, batch) pairs into per-block node slabs
# ----------------------------------------------------------------------------
def _within_graph_index(batch, num_graphs):
    # assumes `batch` is sorted ascending (PyG batching convention)
    n = batch.shape[0]
    counts = jnp.sum(batch[None, :] ==
                     jnp.arange(num_graphs, dtype=batch.dtype)[:, None],
                     axis=1).astype(jnp.int32)
    starts = jnp.cumsum(counts) - counts
    return jnp.arange(n, dtype=jnp.int32) - starts[batch]


def _pack_pairs(data_a, data_b, num_graphs, p, m, f_pad, num_blocks):
    # TODO(synk): for large graphs replace this dense O(G*NB^2) XLA scatter with
    # an edge-list + PrefetchScalarGridSpec build inside the kernel (review opt 11).
    nb = 2 * p * m
    x_blk = jnp.zeros((num_blocks, nb, f_pad), jnp.bfloat16)
    adj_blk = jnp.zeros((num_blocks, nb, nb), jnp.bfloat16)
    valid_blk = jnp.zeros((num_blocks, nb, 1), jnp.float32)

    for side, (x, edge_index, batch) in enumerate((data_a, data_b)):
        batch = batch.astype(jnp.int32)
        r = _within_graph_index(batch, num_graphs)
        blk = batch // p
        q = batch % p
        slot = side * (p * m) + q * m + r
        x_pad = jnp.pad(x.astype(jnp.bfloat16), ((0, 0), (0, f_pad - x.shape[1])))
        x_blk = x_blk.at[blk, slot, :].set(x_pad)
        valid_blk = valid_blk.at[blk, slot, 0].set(1.0)
        src = edge_index[0].astype(jnp.int32)
        dst = edge_index[1].astype(jnp.int32)
        adj_blk = adj_blk.at[blk[src], slot[dst], slot[src]].set(1.0)  # row=dst, col=src
    return adj_blk, x_blk, valid_blk


def _blk3_spec(shape):
    return pl.BlockSpec((1,) + tuple(shape[1:]), lambda b: (b, 0, 0))


def _bcast_spec(arr):
    nd = arr.ndim
    return pl.BlockSpec(tuple(arr.shape), lambda i, nd=nd: (0,) * nd)


def _classifier_logits(feat, clf):
    g, din = feat.shape
    nc = clf["w3"].shape[1]
    tm = min(_round_up(g, 8), 512)
    gp = _round_up(g, tm)
    featp = jnp.pad(feat.astype(jnp.float32), ((0, gp - g), (0, 0)))
    w3p = jnp.pad(clf["w3"], ((0, 0), (0, _LANES - nc)))
    b3p = jnp.pad(clf["b3"], ((0, 0), (0, _LANES - nc)))
    weights = (clf["w1"], clf["b1"], clf["w2"], clf["b2"], w3p, b3p)
    out = pl.pallas_call(
        _clf_kernel,
        out_shape=jax.ShapeDtypeStruct((gp, _LANES), jnp.float32),
        grid=(gp // tm,),
        in_specs=[pl.BlockSpec((tm, din), lambda i: (i, 0))]
                 + [_bcast_spec(a) for a in weights],
        out_specs=pl.BlockSpec((tm, _LANES), lambda i: (i, 0)),
        compiler_params=pltpu.CompilerParams(dimension_semantics=("parallel",)),
    )(featp, *weights)
    return out[:g, :nc]


# ----------------------------------------------------------------------------
# wrapper (Net.forward)
# ----------------------------------------------------------------------------
def net_forward(params, data_a, data_b, min_score, num_graphs, max_nodes,
                mode="medsts", target_rows=128):
    # target_rows: pack enough pairs per grid step that matmuls see >=128 rows
    # (use 256 on v6e/v7x for full MXU height).  For v7x keep the resulting
    # grid length >= 2 so both TensorCores are busy.
    gcn = params["gcn"]
    hq = gcn["conv3_w"].shape[1]                       # n_hidden // 4
    n_hidden = gcn["conv2_w"].shape[0]
    f_in = data_a[0].shape[1]
    f_pad = _round_up(f_in, _LANES)                    # 500 -> 512
    m = _round_up(max(max_nodes, 1), 4)                # 2*m multiple of 8
    p = max(1, -(-target_rows // (2 * m)))             # pairs per block
    nb = 2 * p * m
    num_blocks = max(1, -(-num_graphs // p))
    sp = 2 * p
    sp_pad = _round_up(sp, 8)

    adj_blk, x_blk, valid_blk = _pack_pairs(data_a, data_b, num_graphs, p, m,
                                            f_pad, num_blocks)

    # static one-hot node -> (graph, side) segment matrices
    seg_of_node = jnp.arange(nb, dtype=jnp.int32) // m
    node2seg = (seg_of_node[:, None] ==
                jnp.arange(sp_pad, dtype=jnp.int32)[None, :]).astype(jnp.float32)
    seg_mat = node2seg.T

    w1 = jnp.pad(gcn["conv1_w"], ((0, f_pad - f_in), (0, 0))).astype(jnp.bfloat16)
    w2 = gcn["conv2_w"].astype(jnp.bfloat16)
    w3 = gcn["conv3_w"].astype(jnp.bfloat16)
    b1, b2, b3 = gcn["conv1_b"], gcn["conv2_b"], gcn["conv3_b"]
    pwr = gcn["pool_w"].reshape(1, n_hidden)           # pool bias dropped (softmax-invariant)

    operands = (adj_blk, x_blk, valid_blk,
                w1, b1, w2, b2, pwr, w3, b3, node2seg, seg_mat)
    in_specs = ([_blk3_spec(adj_blk.shape), _blk3_spec(x_blk.shape),
                 _blk3_spec(valid_blk.shape)]
                + [_bcast_spec(a) for a in operands[3:]])

    out = pl.pallas_call(
        functools.partial(_gnn_kernel, min_score=float(min_score)),
        out_shape=jax.ShapeDtypeStruct((num_blocks, sp_pad, _LANES), jnp.float32),
        grid=(num_blocks,),
        in_specs=in_specs,
        out_specs=pl.BlockSpec((1, sp_pad, _LANES), lambda b: (b, 0, 0)),
        compiler_params=pltpu.CompilerParams(dimension_semantics=("parallel",)),
    )(*operands)

    pooled = out[:, :, :hq]                                   # [blocks, sp_pad, HQ]
    x1 = pooled[:, :p, :].reshape(num_blocks * p, hq)[:num_graphs]
    x2 = pooled[:, p:2 * p, :].reshape(num_blocks * p, hq)[:num_graphs]
    feat = jnp.concatenate([x1, x2, x1 - x2, x1 * x2], axis=-1)  # [G, n_hidden]

    if mode not in ("medsts", "medsts_c", "medsts_type"):
        return feat
    logits = _classifier_logits(feat, params[mode])
    if mode == "medsts":
        return jnp.squeeze(logits)
    return logits


# ----------------------------------------------------------------------------
# deterministic parameter init (synthetic; no checkpoint loading)
# ----------------------------------------------------------------------------
def _glorot(key, shape):
    fan_in, fan_out = shape
    lim = jnp.sqrt(6.0 / (fan_in + fan_out))
    return jax.random.uniform(key, shape, jnp.float32, -lim, lim)


def init_params(key, num_features=500, n_hidden=32):
    ks = jax.random.split(key, 8)

    def lin(k, i, o):
        return _glorot(k, (i, o)), jnp.zeros((1, o), jnp.float32)

    gcn = {}
    gcn["conv1_w"], gcn["conv1_b"] = lin(ks[0], num_features, n_hidden)
    gcn["conv2_w"], gcn["conv2_b"] = lin(ks[1], n_hidden, n_hidden)
    gcn["conv3_w"], gcn["conv3_b"] = lin(ks[2], n_hidden, n_hidden // 4)
    gcn["pool_w"], gcn["pool_b"] = lin(ks[3], n_hidden, 1)

    def clf(k, din, dh, nc):
        k1, k2, k3 = jax.random.split(k, 3)
        w1, b1 = lin(k1, din, dh)
        w2, b2 = lin(k2, dh, dh)
        w3, b3 = lin(k3, dh, nc)
        return {"w1": w1, "b1": b1, "w2": w2, "b2": b2, "w3": w3, "b3": b3}

    return {"gcn": gcn,
            "medsts": clf(ks[4], n_hidden, 64, 1),
            "medsts_c": clf(ks[5], n_hidden, 64, 5),
            "medsts_type": clf(ks[6], n_hidden, 64, 4)}


# ----------------------------------------------------------------------------
# demo
# ----------------------------------------------------------------------------
if __name__ == "__main__":
    key = jax.random.PRNGKey(0)
    kp, ka, kb = jax.random.split(key, 3)

    num_features = 500      # fixed by Net.__init__ (GCNNet(500, ...))
    n_hidden = 32
    min_score = 0.11
    nodes_per_graph = 8
    num_graphs = 2
    n = nodes_per_graph * num_graphs

    params = init_params(kp, num_features, n_hidden)

    def make_data(k):
        x = jax.random.normal(k, (n, num_features), jnp.float32)
        # undirected ring inside each graph (edges in both directions)
        src, dst = [], []
        for gg in range(num_graphs):
            base = gg * nodes_per_graph
            for i in range(nodes_per_graph):
                a = base + i
                b = base + (i + 1) % nodes_per_graph
                src += [a, b]
                dst += [b, a]
        edge_index = jnp.array([src, dst], dtype=jnp.int32)
        batch = jnp.repeat(jnp.arange(num_graphs, dtype=jnp.int32), nodes_per_graph)
        return (x, edge_index, batch)

    data_a = make_data(ka)
    data_b = make_data(kb)

    out = net_forward(params, data_a, data_b, min_score, num_graphs,
                      max_nodes=nodes_per_graph, mode="medsts")
    out = jax.block_until_ready(out)
    assert out.shape == (num_graphs,), out.shape
    assert bool(jnp.all(jnp.isfinite(out)))

    out_c = net_forward(params, data_a, data_b, min_score, num_graphs,
                        max_nodes=nodes_per_graph, mode="medsts_c")
    out_c = jax.block_until_ready(out_c)
    assert out_c.shape == (num_graphs, 5), out_c.shape
    assert bool(jnp.all(jnp.isfinite(out_c)))

    feat = net_forward(params, data_a, data_b, min_score, num_graphs,
                       max_nodes=nodes_per_graph, mode="features")
    feat = jax.block_until_ready(feat)
    assert feat.shape == (num_graphs, n_hidden), feat.shape
    assert bool(jnp.all(jnp.isfinite(feat)))

    print("KERNEL_OK")
</pallas_src>

<mosaic_0001>
module attributes {stable_mosaic.version = 11 : i64} {
  func.func @_gnn_kernel(%arg0: i32, %arg1: memref<1x128x128xbf16, #tpu.memory_space<vmem>>, %arg2: memref<1x128x512xbf16, #tpu.memory_space<vmem>>, %arg3: memref<1x128x1xf32, #tpu.memory_space<vmem>>, %arg4: memref<512x32xbf16, #tpu.memory_space<vmem>>, %arg5: memref<1x32xf32, #tpu.memory_space<vmem>>, %arg6: memref<32x32xbf16, #tpu.memory_space<vmem>>, %arg7: memref<1x32xf32, #tpu.memory_space<vmem>>, %arg8: memref<1x32xf32, #tpu.memory_space<vmem>>, %arg9: memref<32x8xbf16, #tpu.memory_space<vmem>>, %arg10: memref<1x8xf32, #tpu.memory_space<vmem>>, %arg11: memref<128x16xf32, #tpu.memory_space<vmem>>, %arg12: memref<16x128xf32, #tpu.memory_space<vmem>>, %arg13: memref<1x16x128xf32, #tpu.memory_space<vmem>>) attributes {dimension_semantics = [#tpu.dimension_semantics<parallel>], iteration_bounds = array<i64: 1>, scalar_prefetch = 0 : i64, scratch_operands = 0 : i64, tpu.core_type = #tpu.core_type<tc>, window_params = [{transform_indices = @transform_0, window_bounds = array<i64: 1, 128, 128>}, {transform_indices = @transform_1, window_bounds = array<i64: 1, 128, 512>}, {transform_indices = @transform_2, window_bounds = array<i64: 1, 128, 1>}, {pipeline_mode = #tpu.pipeline_mode<synchronous>, transform_indices = @transform_3, window_bounds = array<i64: 512, 32>}, {pipeline_mode = #tpu.pipeline_mode<synchronous>, transform_indices = @transform_4, window_bounds = array<i64: 1, 32>}, {pipeline_mode = #tpu.pipeline_mode<synchronous>, transform_indices = @transform_5, window_bounds = array<i64: 32, 32>}, {pipeline_mode = #tpu.pipeline_mode<synchronous>, transform_indices = @transform_6, window_bounds = array<i64: 1, 32>}, {pipeline_mode = #tpu.pipeline_mode<synchronous>, transform_indices = @transform_7, window_bounds = array<i64: 1, 32>}, {pipeline_mode = #tpu.pipeline_mode<synchronous>, transform_indices = @transform_8, window_bounds = array<i64: 32, 8>}, {pipeline_mode = #tpu.pipeline_mode<synchronous>, transform_indices = @transform_9, window_bounds = array<i64: 1, 8>}, {pipeline_mode = #tpu.pipeline_mode<synchronous>, transform_indices = @transform_10, window_bounds = array<i64: 128, 16>}, {pipeline_mode = #tpu.pipeline_mode<synchronous>, transform_indices = @transform_11, window_bounds = array<i64: 16, 128>}, {transform_indices = @transform_12, window_bounds = array<i64: 1, 16, 128>}]} {
    %c0 = arith.constant 0 : index
    %c0_0 = arith.constant 0 : index
    %c0_1 = arith.constant 0 : index
    %0 = vector.load %arg1[%c0, %c0_0, %c0_1] : memref<1x128x128xbf16, #tpu.memory_space<vmem>>, vector<1x128x128xbf16>
    %1 = vector.shape_cast %0 : vector<1x128x128xbf16> to vector<128x128xbf16>
    %c0_2 = arith.constant 0 : index
    %c0_3 = arith.constant 0 : index
    %c0_4 = arith.constant 0 : index
    %2 = vector.load %arg2[%c0_2, %c0_3, %c0_4] : memref<1x128x512xbf16, #tpu.memory_space<vmem>>, vector<1x128x512xbf16>
    %3 = vector.shape_cast %2 : vector<1x128x512xbf16> to vector<128x512xbf16>
    %c0_5 = arith.constant 0 : index
    %c0_6 = arith.constant 0 : index
    %c0_7 = arith.constant 0 : index
    %4 = vector.load %arg3[%c0_5, %c0_6, %c0_7] : memref<1x128x1xf32, #tpu.memory_space<vmem>>, vector<1x128x1xf32>
    %5 = vector.shape_cast %4 : vector<1x128x1xf32> to vector<128x1xf32>
    %c0_8 = arith.constant 0 : index
    %c0_9 = arith.constant 0 : index
    %6 = vector.load %arg11[%c0_8, %c0_9] : memref<128x16xf32, #tpu.memory_space<vmem>>, vector<128x16xf32>
    %c0_10 = arith.constant 0 : index
    %c0_11 = arith.constant 0 : index
    %7 = vector.load %arg12[%c0_10, %c0_11] : memref<16x128xf32, #tpu.memory_space<vmem>>, vector<16x128xf32>
    %8 = arith.extf %1 : vector<128x128xbf16> to vector<128x128xf32>
    %cst = arith.constant dense<0.000000e+00> : vector<128xf32>
    %9 = vector.multi_reduction <add>, %8, %cst [1] : vector<128x128xf32> to vector<128xf32>
    %10 = vector.shape_cast %9 : vector<128xf32> to vector<128x1xf32>
    %cst_12 = arith.constant 1.000000e+00 : f32
    %11 = vector.broadcast %cst_12 : f32 to vector<128x1xf32>
    %12 = arith.addf %10, %11 : vector<128x1xf32>
    %13 = math.rsqrt %12 : vector<128x1xf32>
    %c0_13 = arith.constant 0 : index
    %c0_14 = arith.constant 0 : index
    %14 = vector.load %arg5[%c0_13, %c0_14] : memref<1x32xf32, #tpu.memory_space<vmem>>, vector<1x32xf32>
    %c0_15 = arith.constant 0 : index
    %c0_16 = arith.constant 0 : index
    %15 = vector.load %arg4[%c0_15, %c0_16] : memref<512x32xbf16, #tpu.memory_space<vmem>>, vector<512x32xbf16>
    %cst_17 = arith.constant dense<0.000000e+00> : vector<128x32xf32>
    %16 = tpu.matmul %3, %15, %cst_17 {dimension_numbers = #tpu.dot_dimension_numbers<[1], [0], [0], [1], [0, 0, 1, 1], [], []>} : vector<128x512xbf16>, vector<512x32xbf16>, vector<128x32xf32> -> vector<128x32xf32>
    %17 = vector.broadcast %13 : vector<128x1xf32> to vector<128x32xf32>
    %18 = arith.mulf %17, %16 : vector<128x32xf32>
    %19 = arith.truncf %18 : vector<128x32xf32> to vector<128x32xbf16>
    %cst_18 = arith.constant dense<0.000000e+00> : vector<128x32xf32>
    %20 = tpu.matmul %1, %19, %cst_18 {dimension_numbers = #tpu.dot_dimension_numbers<[1], [0], [0], [1], [0, 0, 1, 1], [], []>} : vector<128x128xbf16>, vector<128x32xbf16>, vector<128x32xf32> -> vector<128x32xf32>
    %21 = arith.addf %20, %18 : vector<128x32xf32>
    %22 = vector.broadcast %13 : vector<128x1xf32> to vector<128x32xf32>
    %23 = arith.mulf %22, %21 : vector<128x32xf32>
    %24 = vector.broadcast %14 : vector<1x32xf32> to vector<128x32xf32>
    %25 = arith.addf %23, %24 : vector<128x32xf32>
    %cst_19 = arith.constant 0.000000e+00 : f32
    %26 = vector.broadcast %cst_19 : f32 to vector<128x32xf32>
    %27 = arith.cmpf ogt, %25, %26 : vector<128x32xf32>
    %cst_20 = arith.constant 0.000000e+00 : f32
    %28 = vector.broadcast %cst_20 : f32 to vector<128x32xf32>
    %29 = arith.minimumf %25, %28 : vector<128x32xf32>
    %30 = math.exp %29 : vector<128x32xf32>
    %cst_21 = arith.constant 1.000000e+00 : f32
    %31 = vector.broadcast %cst_21 : f32 to vector<128x32xf32>
    %32 = arith.subf %30, %31 : vector<128x32xf32>
    %33 = arith.select %27, %25, %32 : vector<128x32xi1>, vector<128x32xf32>
    %34 = arith.truncf %33 : vector<128x32xf32> to vector<128x32xbf16>
    %c0_22 = arith.constant 0 : index
    %c0_23 = arith.constant 0 : index
    %35 = vector.load %arg7[%c0_22, %c0_23] : memref<1x32xf32, #tpu.memory_space<vmem>>, vector<1x32xf32>
    %c0_24 = arith.constant 0 : index
    %c0_25 = arith.constant 0 : index
    %36 = vector.load %arg6[%c0_24, %c0_25] : memref<32x32xbf16, #tpu.memory_space<vmem>>, vector<32x32xbf16>
    %cst_26 = arith.constant dense<0.000000e+00> : vector<128x32xf32>
    %37 = tpu.matmul %34, %36, %cst_26 {dimension_numbers = #tpu.dot_dimension_numbers<[1], [0], [0], [1], [0, 0, 1, 1], [], []>} : vector<128x32xbf16>, vector<32x32xbf16>, vector<128x32xf32> -> vector<128x32xf32>
    %38 = vector.broadcast %13 : vector<128x1xf32> to vector<128x32xf32>
    %39 = arith.mulf %38, %37 : vector<128x32xf32>
    %40 = arith.truncf %39 : vector<128x32xf32> to vector<128x32xbf16>
    %cst_27 = arith.constant dense<0.000000e+00> : vector<128x32xf32>
    %41 = tpu.matmul %1, %40, %cst_27 {dimension_numbers = #tpu.dot_dimension_numbers<[1], [0], [0], [1], [0, 0, 1, 1], [], []>} : vector<128x128xbf16>, vector<128x32xbf16>, vector<128x32xf32> -> vector<128x32xf32>
    %42 = arith.addf %41, %39 : vector<128x32xf32>
    %43 = vector.broadcast %13 : vector<128x1xf32> to vector<128x32xf32>
    %44 = arith.mulf %43, %42 : vector<128x32xf32>
    %45 = vector.broadcast %35 : vector<1x32xf32> to vector<128x32xf32>
    %46 = arith.addf %44, %45 : vector<128x32xf32>
    %cst_28 = arith.constant 0.000000e+00 : f32
    %47 = vector.broadcast %cst_28 : f32 to vector<128x32xf32>
    %48 = arith.cmpf ogt, %46, %47 : vector<128x32xf32>
    %cst_29 = arith.constant 0.000000e+00 : f32
    %49 = vector.broadcast %cst_29 : f32 to vector<128x32xf32>
    %50 = arith.minimumf %46, %49 : vector<128x32xf32>
    %51 = math.exp %50 : vector<128x32xf32>
    %cst_30 = arith.constant 1.000000e+00 : f32
    %52 = vector.broadcast %cst_30 : f32 to vector<128x32xf32>
    %53 = arith.subf %51, %52 : vector<128x32xf32>
    %54 = arith.select %48, %46, %53 : vector<128x32xi1>, vector<128x32xf32>
    %c0_31 = arith.constant 0 : index
    %c0_32 = arith.constant 0 : index
    %55 = vector.load %arg8[%c0_31, %c0_32] : memref<1x32xf32, #tpu.memory_space<vmem>>, vector<1x32xf32>
    %56 = vector.broadcast %55 : vector<1x32xf32> to vector<128x32xf32>
    %57 = arith.mulf %54, %56 : vector<128x32xf32>
    %cst_33 = arith.constant dense<0.000000e+00> : vector<128xf32>
    %58 = vector.multi_reduction <add>, %57, %cst_33 [1] : vector<128x32xf32> to vector<128xf32>
    %59 = vector.shape_cast %58 : vector<128xf32> to vector<128x1xf32>
    %60 = arith.mulf %13, %59 : vector<128x1xf32>
    %cst_34 = arith.constant dense<0.000000e+00> : vector<128x1xf32>
    %61 = tpu.matmul %8, %60, %cst_34 {dimension_numbers = #tpu.dot_dimension_numbers<[1], [0], [0], [1], [0, 0, 1, 1], [], []>} : vector<128x128xf32>, vector<128x1xf32>, vector<128x1xf32> -> vector<128x1xf32>
    %62 = arith.addf %61, %60 : vector<128x1xf32>
    %63 = arith.mulf %13, %62 : vector<128x1xf32>
    %cst_35 = arith.constant 0.000000e+00 : f32
    %64 = vector.broadcast %cst_35 : f32 to vector<128x1xf32>
    %65 = arith.cmpf ogt, %5, %64 : vector<128x1xf32>
    %cst_36 = arith.constant 0.000000e+00 : f32
    %66 = vector.broadcast %cst_36 : f32 to vector<128x16xf32>
    %67 = arith.cmpf ogt, %6, %66 : vector<128x16xf32>
    %cst_37 = arith.constant -1.000000e+30 : f32
    %68 = vector.broadcast %cst_37 : f32 to vector<128x1xf32>
    %69 = arith.select %65, %63, %68 : vector<128x1xi1>, vector<128x1xf32>
    %cst_38 = arith.constant -1.000000e+30 : f32
    %70 = vector.shape_cast %69 : vector<128x1xf32> to vector<128x1xf32>
    %71 = vector.broadcast %70 : vector<128x1xf32> to vector<128x16xf32>
    %72 = vector.broadcast %cst_38 : f32 to vector<128x16xf32>
    %73 = arith.select %67, %71, %72 : vector<128x16xi1>, vector<128x16xf32>
    %cst_39 = arith.constant dense<0xFF800000> : vector<16xf32>
    %74 = vector.multi_reduction <maximumf>, %73, %cst_39 [0] : vector<128x16xf32> to vector<16xf32>
    %75 = vector.shape_cast %74 : vector<16xf32> to vector<1x16xf32>
    %76 = vector.broadcast %75 : vector<1x16xf32> to vector<128x16xf32>
    %77 = arith.mulf %6, %76 : vector<128x16xf32>
    %cst_40 = arith.constant dense<0.000000e+00> : vector<128xf32>
    %78 = vector.multi_reduction <add>, %77, %cst_40 [1] : vector<128x16xf32> to vector<128xf32>
    %79 = vector.shape_cast %78 : vector<128xf32> to vector<128x1xf32>
    %80 = arith.subf %63, %79 : vector<128x1xf32>
    %cst_41 = arith.constant 0.000000e+00 : f32
    %81 = vector.broadcast %cst_41 : f32 to vector<128x1xf32>
    %82 = arith.minimumf %80, %81 : vector<128x1xf32>
    %83 = math.exp %82 : vector<128x1xf32>
    %cst_42 = arith.constant 0.000000e+00 : f32
    %84 = vector.broadcast %cst_42 : f32 to vector<128x1xf32>
    %85 = arith.select %65, %83, %84 : vector<128x1xi1>, vector<128x1xf32>
    %86 = vector.broadcast %85 : vector<128x1xf32> to vector<128x16xf32>
    %87 = arith.mulf %6, %86 : vector<128x16xf32>
    %cst_43 = arith.constant dense<0.000000e+00> : vector<16xf32>
    %88 = vector.multi_reduction <add>, %87, %cst_43 [0] : vector<128x16xf32> to vector<16xf32>
    %89 = vector.shape_cast %88 : vector<16xf32> to vector<1x16xf32>
    %90 = vector.broadcast %89 : vector<1x16xf32> to vector<128x16xf32>
    %91 = arith.mulf %6, %90 : vector<128x16xf32>
    %cst_44 = arith.constant dense<0.000000e+00> : vector<128xf32>
    %92 = vector.multi_reduction <add>, %91, %cst_44 [1] : vector<128x16xf32> to vector<128xf32>
    %93 = vector.shape_cast %92 : vector<128xf32> to vector<128x1xf32>
    %cst_45 = arith.constant 1.000000e-16 : f32
    %94 = vector.broadcast %cst_45 : f32 to vector<128x1xf32>
    %95 = arith.addf %93, %94 : vector<128x1xf32>
    %96 = arith.divf %85, %95 : vector<128x1xf32>
    %97 = vector.broadcast %96 : vector<128x1xf32> to vector<128x16xf32>
    %98 = arith.mulf %6, %97 : vector<128x16xf32>
    %cst_46 = arith.constant dense<0xFF800000> : vector<16xf32>
    %99 = vector.multi_reduction <maximumf>, %98, %cst_46 [0] : vector<128x16xf32> to vector<16xf32>
    %100 = vector.shape_cast %99 : vector<16xf32> to vector<1x16xf32>
    %cst_47 = arith.constant 1.000000e-07 : f32
    %101 = vector.broadcast %cst_47 : f32 to vector<1x16xf32>
    %102 = arith.subf %100, %101 : vector<1x16xf32>
    %cst_48 = arith.constant 1.100000e-01 : f32
    %103 = vector.broadcast %cst_48 : f32 to vector<1x16xf32>
    %104 = arith.minimumf %102, %103 : vector<1x16xf32>
    %105 = vector.broadcast %104 : vector<1x16xf32> to vector<128x16xf32>
    %106 = arith.mulf %6, %105 : vector<128x16xf32>
    %cst_49 = arith.constant dense<0.000000e+00> : vector<128xf32>
    %107 = vector.multi_reduction <add>, %106, %cst_49 [1] : vector<128x16xf32> to vector<128xf32>
    %108 = vector.shape_cast %107 : vector<128xf32> to vector<128x1xf32>
    %109 = arith.cmpf ogt, %96, %108 : vector<128x1xf32>
    %110 = arith.andi %109, %65 : vector<128x1xi1>
    %cst_50 = arith.constant 1.000000e+00 : f32
    %cst_51 = arith.constant 0.000000e+00 : f32
    %111 = vector.broadcast %cst_50 : f32 to vector<128x1xf32>
    %112 = vector.broadcast %cst_51 : f32 to vector<128x1xf32>
    %113 = arith.select %110, %111, %112 : vector<128x1xi1>, vector<128x1xf32>
    %cst_52 = arith.constant dense<0.000000e+00> : vector<128x1xf32>
    %114 = tpu.matmul %8, %113, %cst_52 {dimension_numbers = #tpu.dot_dimension_numbers<[1], [0], [0], [1], [0, 0, 1, 1], [], []>} : vector<128x128xf32>, vector<128x1xf32>, vector<128x1xf32> -> vector<128x1xf32>
    %115 = arith.mulf %113, %114 : vector<128x1xf32>
    %cst_53 = arith.constant 1.000000e+00 : f32
    %116 = vector.broadcast %cst_53 : f32 to vector<128x1xf32>
    %117 = arith.addf %116, %115 : vector<128x1xf32>
    %118 = math.rsqrt %117 : vector<128x1xf32>
    %119 = arith.mulf %96, %113 : vector<128x1xf32>
    %120 = vector.broadcast %119 : vector<128x1xf32> to vector<128x32xf32>
    %121 = arith.mulf %54, %120 : vector<128x32xf32>
    %122 = arith.truncf %121 : vector<128x32xf32> to vector<128x32xbf16>
    %c0_54 = arith.constant 0 : index
    %c0_55 = arith.constant 0 : index
    %123 = vector.load %arg10[%c0_54, %c0_55] : memref<1x8xf32, #tpu.memory_space<vmem>>, vector<1x8xf32>
    %c0_56 = arith.constant 0 : index
    %c0_57 = arith.constant 0 : index
    %124 = vector.load %arg9[%c0_56, %c0_57] : memref<32x8xbf16, #tpu.memory_space<vmem>>, vector<32x8xbf16>
    %cst_58 = arith.constant dense<0.000000e+00> : vector<128x8xf32>
    %125 = tpu.matmul %122, %124, %cst_58 {dimension_numbers = #tpu.dot_dimension_numbers<[1], [0], [0], [1], [0, 0, 1, 1], [], []>} : vector<128x32xbf16>, vector<32x8xbf16>, vector<128x8xf32> -> vector<128x8xf32>
    %126 = vector.broadcast %118 : vector<128x1xf32> to vector<128x8xf32>
    %127 = arith.mulf %126, %125 : vector<128x8xf32>
    %128 = vector.broadcast %113 : vector<128x1xf32> to vector<128x8xf32>
    %129 = arith.mulf %128, %127 : vector<128x8xf32>
    %130 = arith.truncf %129 : vector<128x8xf32> to vector<128x8xbf16>
    %cst_59 = arith.constant dense<0.000000e+00> : vector<128x8xf32>
    %131 = tpu.matmul %1, %130, %cst_59 {dimension_numbers = #tpu.dot_dimension_numbers<[1], [0], [0], [1], [0, 0, 1, 1], [], []>} : vector<128x128xbf16>, vector<128x8xbf16>, vector<128x8xf32> -> vector<128x8xf32>
    %132 = vector.broadcast %113 : vector<128x1xf32> to vector<128x8xf32>
    %133 = arith.mulf %132, %131 : vector<128x8xf32>
    %134 = arith.addf %133, %127 : vector<128x8xf32>
    %135 = vector.broadcast %118 : vector<128x1xf32> to vector<128x8xf32>
    %136 = arith.mulf %135, %134 : vector<128x8xf32>
    %137 = vector.broadcast %123 : vector<1x8xf32> to vector<128x8xf32>
    %138 = arith.addf %136, %137 : vector<128x8xf32>
    %cst_60 = arith.constant 0.000000e+00 : f32
    %139 = vector.broadcast %cst_60 : f32 to vector<128x8xf32>
    %140 = arith.cmpf ogt, %138, %139 : vector<128x8xf32>
    %cst_61 = arith.constant 0.000000e+00 : f32
    %141 = vector.broadcast %cst_61 : f32 to vector<128x8xf32>
    %142 = arith.minimumf %138, %141 : vector<128x8xf32>
    %143 = math.exp %142 : vector<128x8xf32>
    %cst_62 = arith.constant 1.000000e+00 : f32
    %144 = vector.broadcast %cst_62 : f32 to vector<128x8xf32>
    %145 = arith.subf %143, %144 : vector<128x8xf32>
    %146 = arith.select %140, %138, %145 : vector<128x8xi1>, vector<128x8xf32>
    %147 = vector.broadcast %113 : vector<128x1xf32> to vector<128x8xf32>
    %148 = arith.mulf %146, %147 : vector<128x8xf32>
    %cst_63 = arith.constant dense<0.000000e+00> : vector<16x8xf32>
    %149 = tpu.matmul %7, %148, %cst_63 {dimension_numbers = #tpu.dot_dimension_numbers<[1], [0], [0], [1], [0, 0, 1, 1], [], []>} : vector<16x128xf32>, vector<128x8xf32>, vector<16x8xf32> -> vector<16x8xf32>
    %cst_64 = arith.constant 0.000000e+00 : f32
    %150 = vector.broadcast %cst_64 : f32 to vector<16x120xf32>
    %151 = tpu.concatenate %149, %150 in 1 : vector<16x8xf32>, vector<16x120xf32> -> vector<16x128xf32>
    %c0_65 = arith.constant 0 : index
    %c0_66 = arith.constant 0 : index
    %c0_67 = arith.constant 0 : index
    %152 = vector.load %arg13[%c0_65, %c0_66, %c0_67] : memref<1x16x128xf32, #tpu.memory_space<vmem>>, vector<1x16x128xf32>
    %153 = vector.shape_cast %152 : vector<1x16x128xf32> to vector<16x128xf32>
    %154 = vector.shape_cast %151 : vector<16x128xf32> to vector<1x16x128xf32>
    tpu.vector_store %arg13[%c0_65, %c0_66, %c0_67], %154 {strides = array<i32>} : memref<1x16x128xf32, #tpu.memory_space<vmem>>, vector<1x16x128xf32>,
    return
  }
  func.func @transform_0(%arg0: i32) -> (i32, i32, i32) {
    %c0_i32 = arith.constant 0 : i32
    %c0_i32_0 = arith.constant 0 : i32
    %c0_i32_1 = arith.constant 0 : i32
    return %arg0, %c0_i32, %c0_i32_0 : i32, i32, i32
  }
  func.func @transform_1(%arg0: i32) -> (i32, i32, i32) {
    %c0_i32 = arith.constant 0 : i32
    %c0_i32_0 = arith.constant 0 : i32
    %c0_i32_1 = arith.constant 0 : i32
    return %arg0, %c0_i32, %c0_i32_0 : i32, i32, i32
  }
  func.func @transform_2(%arg0: i32) -> (i32, i32, i32) {
    %c0_i32 = arith.constant 0 : i32
    %c0_i32_0 = arith.constant 0 : i32
    %c0_i32_1 = arith.constant 0 : i32
    return %arg0, %c0_i32, %c0_i32_0 : i32, i32, i32
  }
  func.func @transform_3(%arg0: i32) -> (i32, i32) {
    %c0_i32 = arith.constant 0 : i32
    %c0_i32_0 = arith.constant 0 : i32
    %c0_i32_1 = arith.constant 0 : i32
    return %c0_i32, %c0_i32_0 : i32, i32
  }
  func.func @transform_4(%arg0: i32) -> (i32, i32) {
    %c0_i32 = arith.constant 0 : i32
    %c0_i32_0 = arith.constant 0 : i32
    %c0_i32_1 = arith.constant 0 : i32
    return %c0_i32, %c0_i32_0 : i32, i32
  }
  func.func @transform_5(%arg0: i32) -> (i32, i32) {
    %c0_i32 = arith.constant 0 : i32
    %c0_i32_0 = arith.constant 0 : i32
    %c0_i32_1 = arith.constant 0 : i32
    return %c0_i32, %c0_i32_0 : i32, i32
  }
  func.func @transform_6(%arg0: i32) -> (i32, i32) {
    %c0_i32 = arith.constant 0 : i32
    %c0_i32_0 = arith.constant 0 : i32
    %c0_i32_1 = arith.constant 0 : i32
    return %c0_i32, %c0_i32_0 : i32, i32
  }
  func.func @transform_7(%arg0: i32) -> (i32, i32) {
    %c0_i32 = arith.constant 0 : i32
    %c0_i32_0 = arith.constant 0 : i32
    %c0_i32_1 = arith.constant 0 : i32
    return %c0_i32, %c0_i32_0 : i32, i32
  }
  func.func @transform_8(%arg0: i32) -> (i32, i32) {
    %c0_i32 = arith.constant 0 : i32
    %c0_i32_0 = arith.constant 0 : i32
    %c0_i32_1 = arith.constant 0 : i32
    return %c0_i32, %c0_i32_0 : i32, i32
  }
  func.func @transform_9(%arg0: i32) -> (i32, i32) {
    %c0_i32 = arith.constant 0 : i32
    %c0_i32_0 = arith.constant 0 : i32
    %c0_i32_1 = arith.constant 0 : i32
    return %c0_i32, %c0_i32_0 : i32, i32
  }
  func.func @transform_10(%arg0: i32) -> (i32, i32) {
    %c0_i32 = arith.constant 0 : i32
    %c0_i32_0 = arith.constant 0 : i32
    %c0_i32_1 = arith.constant 0 : i32
    return %c0_i32, %c0_i32_0 : i32, i32
  }
  func.func @transform_11(%arg0: i32) -> (i32, i32) {
    %c0_i32 = arith.constant 0 : i32
    %c0_i32_0 = arith.constant 0 : i32
    %c0_i32_1 = arith.constant 0 : i32
    return %c0_i32, %c0_i32_0 : i32, i32
  }
  func.func @transform_12(%arg0: i32) -> (i32, i32, i32) {
    %c0_i32 = arith.constant 0 : i32
    %c0_i32_0 = arith.constant 0 : i32
    %c0_i32_1 = arith.constant 0 : i32
    return %arg0, %c0_i32, %c0_i32_0 : i32, i32, i32
  }
}

</mosaic_0001>

<bundles_post_ra>
// kernel: tpu_custom_call.1
= control target key start
LH: loop header
LB: loop body
LE: loop exit
PB: predicated region body
PF: predicated region fallthrough
CT: control target
= control target key end

     0   :  { %s7638_s0 = inlined_call_operand.vmem [shape: bf16[1,128,128], index: 0, kind: input, shape index: {}]   ;;  %s7639_s1 = inlined_call_operand.vmem [shape: bf16[1,128,512], index: 1, kind: input, shape index: {}]   ;;  %s7640_s2 = inlined_call_operand.vmem [shape: f32[1,128,1], index: 2, kind: input, shape index: {}]   ;;  %s7641_s3 = inlined_call_operand.vmem [shape: bf16[512,32], index: 3, kind: input, shape index: {}]   ;;  %s7642_s4 = inlined_call_operand.vmem [shape: f32[1,32], index: 4, kind: input, shape index: {}]   ;;  %s7643_s5 = inlined_call_operand.vmem [shape: bf16[32,32], index: 5, kind: input, shape index: {}]   ;;  %s7644_s6 = inlined_call_operand.vmem [shape: f32[1,32], index: 6, kind: input, shape index: {}]   ;;  %s7645_s7 = inlined_call_operand.vmem [shape: f32[1,32], index: 7, kind: input, shape index: {}]   ;;  %s7646_s8 = inlined_call_operand.vmem [shape: bf16[32,8], index: 8, kind: input, shape index: {}]   ;;  %s7647_s9 = inlined_call_operand.vmem [shape: f32[1,8], index: 9, kind: input, shape index: {}]   ;;  %s7648_s10 = inlined_call_operand.vmem [shape: f32[128,16], index: 10, kind: input, shape index: {}]   ;;  %s7649_s11 = inlined_call_operand.vmem [shape: f32[16,128], index: 11, kind: input, shape index: {}]   ;;  %s7650_s12 = inlined_call_operand.hbm [shape: f32[1,16,128], index: 12, kind: output, shape index: {}]  }
   0x1   :  { %v4081_v0 = vld [vmem:[%s7641_s3 + $0x38] sm:$0xff]  ;;  %v4080_v3 = vld [vmem:[%s7641_s3 + $0x30] sm:$0xff]  ;;  %v4079_v6 = vld [vmem:[%s7641_s3 + $0x28] sm:$0xff] }
   0x2   :  { %v4089_v1 = vld [vmem:[%s7641_s3 + $0x78] sm:$0xff]  ;;  %4110 = vmatpush.bf16.msra.mxu3 %v4081_v0  ;;  %v4088_v4 = vld [vmem:[%s7641_s3 + $0x70] sm:$0xff]  ;;  %766 = vmatpush.bf16.msra.mxu0 %v4081_v0  ;;  %v4087_v7 = vld [vmem:[%s7641_s3 + $0x68] sm:$0xff] }
   0x3   :  { %v4097_v2 = vld [vmem:[%s7641_s3 + $0xb8] sm:$0xff]  ;;  %815 = vmatpush.bf16.msra.mxu1 %v4089_v1  ;;  %v4096_v5 = vld [vmem:[%s7641_s3 + $0xb0] sm:$0xff]  ;;  %v4095_v8 = vld [vmem:[%s7641_s3 + $0xa8] sm:$0xff] }
   0x4   :  { %864 = vmatpush.bf16.msra.mxu2 %v4097_v2  ;;  %v4078_v9 = vld [vmem:[%s7641_s3 + $0x20] sm:$0xff] }
   0x5   :  { %v4086_v10 = vld [vmem:[%s7641_s3 + $0x60] sm:$0xff] }
   0x6   :  { %4111 = vmatpush.bf16.msra.mxu3 %v4080_v3  ;;  %767 = vmatpush.bf16.msra.mxu0 %v4080_v3  ;;  %v4094_v11 = vld [vmem:[%s7641_s3 + $0xa0] sm:$0xff] }
   0x7   :  { %816 = vmatpush.bf16.msra.mxu1 %v4088_v4 }
   0x8   :  { %865 = vmatpush.bf16.msra.mxu2 %v4096_v5 }
   0xa   :  { %4112 = vmatpush.bf16.msra.mxu3 %v4079_v6  ;;  %768 = vmatpush.bf16.msra.mxu0 %v4079_v6 }
   0xb   :  { %817 = vmatpush.bf16.msra.mxu1 %v4087_v7 }
   0xc   :  { %866 = vmatpush.bf16.msra.mxu2 %v4095_v8 }
   0xd   :  { %17 = vsyncpa [#allocation3], 0  ;;  %v4077_v12 = vld [vmem:[%s7641_s3 + $0x18] sm:$0xff]  ;;  %v4076_v15 = vld [vmem:[%s7641_s3 + $0x10] sm:$0xff]  ;;  %s4460_s28 = smov 8  }
   0xe   :  { %4113 = vmatpush.bf16.msra.mxu3 %v4078_v9  ;;  %v4085_v13 = vld [vmem:[%s7641_s3 + $0x58] sm:$0xff]  ;;  %769 = vmatpush.bf16.msra.mxu0 %v4078_v9  ;;  %v4084_v16 = vld [vmem:[%s7641_s3 + $0x50] sm:$0xff]  ;;  %v4075_v18 = vld [vmem:[%s7641_s3 + $0x8] sm:$0xff] }
   0xf   :  { %818 = vmatpush.bf16.msra.mxu1 %v4086_v10  ;;  %v4093_v14 = vld [vmem:[%s7641_s3 + $0x98] sm:$0xff]  ;;  %v4092_v17 = vld [vmem:[%s7641_s3 + $0x90] sm:$0xff]  ;;  %v4083_v19 = vld [vmem:[%s7641_s3 + $0x48] sm:$0xff] }
  0x10   :  { %867 = vmatpush.bf16.msra.mxu2 %v4094_v11  ;;  %v4091_v20 = vld [vmem:[%s7641_s3 + $0x88] sm:$0xff]  ;;  %v4074_v21 = vld [vmem:[%s7641_s3] sm:$0xff]  ;;  %v4052_v24 = vld [vmem:[%s7639_s1 + $0x4c] sm:$0xf0] }
  0x11   :  { %v4082_v22 = vld [vmem:[%s7641_s3 + $0x40] sm:$0xff]  ;;  %v3653_v26 = vld [vmem:[%s7639_s1 + $0x10] sm:$0xf0]  ;;  %v3659_v28 = vld [vmem:[%s7639_s1 + $0x8] sm:$0xf] }
  0x12   :  { %4114 = vmatpush.bf16.msra.mxu3 %v4077_v12  ;;  %770 = vmatpush.bf16.msra.mxu0 %v4077_v12  ;;  %v3683_v23 = vld [vmem:[%s7639_s1 + $0x40] sm:$0xf]  ;;  %v4042_v25 = vld [vmem:[%s7639_s1 + $0x4] sm:$0xf]  ;;  %v4045_v29 = vld [vmem:[%s7639_s1 + $0x14] sm:$0xf0] }
  0x13   :  { %819 = vmatpush.bf16.msra.mxu1 %v4085_v13  ;;  %v4090_v27 = vld [vmem:[%s7641_s3 + $0x80] sm:$0xff]  ;;  %v3684_v30 = vor.u32 %v4052_v24, %v3683_v23  ;;  %v3656_v31 = vor.u32 %v4042_v25, %v3653_v26  ;;  %v3660_v32 = vor.u32 %v4045_v29, %v3659_v28  ;;  %v4056_v34 = vld [vmem:[%s7639_s1 + $0x6c] sm:$0xf0]  ;;  %v3669_v36 = vld [vmem:[%s7639_s1 + $0x30] sm:$0xf0] }
  0x14   :  { %868 = vmatpush.bf16.msra.mxu2 %v4093_v14  ;;  %v3699_v33 = vld [vmem:[%s7639_s1 + $0x60] sm:$0xf]  ;;  %v4046_v35 = vld [vmem:[%s7639_s1 + $0x24] sm:$0xf]  ;;  %v3675_v37 = vld [vmem:[%s7639_s1 + $0x28] sm:$0xf] }
  0x15   :  { %v4049_v38 = vld [vmem:[%s7639_s1 + $0x34] sm:$0xf0]  ;;  %v3700_v39 = vor.u32 %v4056_v34, %v3699_v33  ;;  %v3672_v40 = vor.u32 %v4046_v35, %v3669_v36  ;;  %v53_v43 = vld [vmem:[%s7638_s0 + $0x28] sm:$0xff]   ;;  %v3715_v46 = vld [vmem:[%s7639_s1 + $0x80] sm:$0xf] }
  0x16   :  { %4115 = vmatpush.bf16.msra.mxu3 %v4076_v15  ;;  %771 = vmatpush.bf16.msra.mxu0 %v4076_v15  ;;  %v3676_v41 = vor.u32 %v4049_v38, %v3675_v37  ;;  %v57_v42 = vld [vmem:[%s7638_s0 + $0x38] sm:$0xff]   ;;  %v4642_v45 = vunpack.c.l.bf16 %v53_v43  ;;  %v4060_v47 = vld [vmem:[%s7639_s1 + $0x8c] sm:$0xf0]  ;;  %v4050_v48 = vld [vmem:[%s7639_s1 + $0x44] sm:$0xf]  ;;  %v4669_v57 = vunpack.c.h.bf16 %v53_v43 }
  0x17   :  { %820 = vmatpush.bf16.msra.mxu1 %v4084_v16  ;;  %v4640_v44 = vunpack.c.l.bf16 %v57_v42  ;;  %v3685_v49 = vld [vmem:[%s7639_s1 + $0x50] sm:$0xf0]  ;;  %v3691_v50 = vld [vmem:[%s7639_s1 + $0x48] sm:$0xf]  ;;  %v4053_v51 = vld [vmem:[%s7639_s1 + $0x54] sm:$0xf0]  ;;  %v3716_v52 = vor.u32 %v4060_v47, %v3715_v46  ;;  %v4667_v56 = vunpack.c.h.bf16 %v57_v42 }
  0x18   :  { %869 = vmatpush.bf16.msra.mxu2 %v4092_v17  ;;  %7765 = vst [vmem:[#allocation6_spill] sm:$0xff] %v4642_v45  ;;  %161 = vadd.xlane.f32.xlu2 %v4642_v45  ;;  %v3688_v53 = vor.u32 %v4050_v48, %v3685_v49  ;;  %v3692_v54 = vor.u32 %v4053_v51, %v3691_v50  ;;  %v4105_v55 = vld [vmem:[%s7641_s3 + $0xf8] sm:$0xff]  ;;  %v4104_v58 = vld [vmem:[%s7641_s3 + $0xf0] sm:$0xff]  ;;  %v51_v59 = vld [vmem:[%s7638_s0 + $0x20] sm:$0xff]  }
  0x19   :  { %7764 = vst [vmem:[#allocation5_spill] sm:$0xff] %v4640_v44  ;;  %169 = vadd.xlane.f32.xlu0 %v4640_v44  ;;  %v49_v60 = vld [vmem:[%s7638_s0 + $0x18] sm:$0xff]   ;;  %v4103_v61 = vld [vmem:[%s7641_s3 + $0xe8] sm:$0xff]  ;;  %v4685_v62 = vunpack.c.l.bf16 %v51_v59  ;;  %v3731_v0 = vld [vmem:[%s7639_s1 + $0xa0] sm:$0xf]  ;;  %v4778_v36 = vunpack.c.h.bf16 %v51_v59 }
  0x1a   :  { %4116 = vmatpush.bf16.msra.mxu3 %v4075_v18  ;;  %772 = vmatpush.bf16.msra.mxu0 %v4075_v18  ;;  %7766 = vst [vmem:[#allocation7_spill] sm:$0xff] %v4667_v56  ;;  %v4687_v63 = vunpack.c.l.bf16 %v49_v60  ;;  %v4064_v1 = vld [vmem:[%s7639_s1 + $0xac] sm:$0xf0]  ;;  %v4054_v2 = vld [vmem:[%s7639_s1 + $0x64] sm:$0xf]  ;;  %v4101_v10 = vld [vmem:[%s7641_s3 + $0xd8] sm:$0xff]  ;;  %v4718_v12 = vunpack.c.h.bf16 %v49_v60 }
  0x1b   :  { %821 = vmatpush.bf16.msra.mxu1 %v4083_v19  ;;  %7767 = vst [vmem:[#allocation8_spill] sm:$0xff] %v4669_v57  ;;  %v3701_v3 = vld [vmem:[%s7639_s1 + $0x70] sm:$0xf0]  ;;  %v3707_v4 = vld [vmem:[%s7639_s1 + $0x68] sm:$0xf]  ;;  %v4102_v6 = vld [vmem:[%s7641_s3 + $0xe0] sm:$0xff]  ;;  %v3732_v7 = vor.u32 %v4064_v1, %v3731_v0 }
  0x1c   :  { %870 = vmatpush.bf16.msra.mxu2 %v4091_v20  ;;  %7768 = vst [vmem:[#allocation9_spill] sm:$0xff] %v4685_v62  ;;  %v4057_v5 = vld [vmem:[%s7639_s1 + $0x74] sm:$0xf0]  ;;  %v3704_v8 = vor.u32 %v4054_v2, %v3701_v3  ;;  %v55_v11 = vld [vmem:[%s7638_s0 + $0x30] sm:$0xff]   ;;  %v3651_v17 = vld [vmem:[%s7639_s1] sm:$0xf] }
  0x1d   :  { %7769 = vst [vmem:[#allocation10_spill] sm:$0xff] %v4687_v63  ;;  %v3708_v9 = vor.u32 %v4057_v5, %v3707_v4  ;;  %v48_v13 = vld [vmem:[%s7638_s0 + $0x10] sm:$0xff]   ;;  %v4726_v15 = vunpack.c.l.bf16 %v55_v11  ;;  %v45_v20 = vld [vmem:[%s7638_s0 + $0x8] sm:$0xff]   ;;  %v3747_v24 = vld [vmem:[%s7639_s1 + $0xc0] sm:$0xf]  ;;  %v4753_v25 = vunpack.c.h.bf16 %v55_v11 }
  0x1e   :  { %4117 = vmatpush.bf16.msra.mxu3 %v4074_v21  ;;  %773 = vmatpush.bf16.msra.mxu0 %v4074_v21  ;;  %7770 = vst [vmem:[#allocation11_spill] sm:$0xff] %v4718_v12  ;;  %v4100_v14 = vld [vmem:[%s7641_s3 + $0xd0] sm:$0xff]  ;;  %v4728_v16 = vunpack.c.h.bf16 %v48_v13  ;;  %v43_v21 = vld [vmem:[%s7638_s0] sm:$0xff]   ;;  %v4748_v23 = vunpack.c.l.bf16 %v45_v20  ;;  %v4793_v42 = vunpack.c.l.bf16 %v48_v13  ;;  %v3739_v48 = vld [vmem:[%s7639_s1 + $0xa8] sm:$0xf] }
  0x1f   :  { %822 = vmatpush.bf16.msra.mxu1 %v4082_v22  ;;  %7771 = vst [vmem:[#allocation12_spill] sm:$0xff] %v4726_v15  ;;  %v4044_v18 = vld [vmem:[%s7639_s1 + $0xc] sm:$0xf0]  ;;  %165 = vadd.xlane.f32.xlu1 %v4726_v15  ;;  %v4099_v22 = vld [vmem:[%s7641_s3 + $0xc8] sm:$0xff]  ;;  %v4755_v26 = vunpack.c.l.bf16 %v43_v21  ;;  %v4058_v28 = vld [vmem:[%s7639_s1 + $0x84] sm:$0xf]  ;;  %v4780_v37 = vunpack.c.h.bf16 %v43_v21 }
  0x20   :  { %871 = vmatpush.bf16.msra.mxu2 %v4090_v27  ;;  %163 = vadd.xlane.f32.xlu2 %v4669_v57  ;;  %7772 = vst [vmem:[#allocation13_spill] sm:$0xff] %v4728_v16  ;;  %v3652_v19 = vor.u32 %v4044_v18, %v3651_v17  ;;  %v4068_v27 = vld [vmem:[%s7639_s1 + $0xcc] sm:$0xf0]  ;;  %v3717_v29 = vld [vmem:[%s7639_s1 + $0x90] sm:$0xf0] }
  0x21   :  { %784 = vmatmul.bf16.vlgmr.msra.gmra.mxu3 %v3684_v30  ;;  %171 = vadd.xlane.f32.xlu0 %v4667_v56  ;;  %7773 = vst [vmem:[#allocation14_spill] sm:$0xff] %v4748_v23  ;;  %v3723_v30 = vld [vmem:[%s7639_s1 + $0x88] sm:$0xf]  ;;  %v3748_v33 = vor.u32 %v4068_v27, %v3747_v24  ;;  %v3720_v34 = vor.u32 %v4058_v28, %v3717_v29  ;;  %v3667_v38 = vld [vmem:[%s7639_s1 + $0x20] sm:$0xf] }
  0x22   :  { %823 = vmatmul.bf16.vlgmr.msra.gmra.mxu1 %v3656_v31  ;;  %913 = vmatpush.bf16.msrb.mxu3 %v4105_v55  ;;  %7774 = vst [vmem:[#allocation15_spill] sm:$0xff] %v4753_v25  ;;  %v4061_v31 = vld [vmem:[%s7639_s1 + $0x94] sm:$0xf0]  ;;  %v4072_v43 = vld [vmem:[%s7639_s1 + $0xec] sm:$0xf0] }
  0x23   :  { %872 = vmatmul.bf16.vlgmr.msra.gmra.mxu2 %v3660_v32  ;;  %774 = vmatmul.bf16.vlgmr.msra.gmra.mxu0 %v3652_v19  ;;  %7775 = vst [vmem:[#allocation16_spill] sm:$0xff] %v4755_v26  ;;  %v4098_v32 = vld [vmem:[%s7641_s3 + $0xc0] sm:$0xff]  ;;  %v3724_v35 = vor.u32 %v4061_v31, %v3723_v30  ;;  %v3733_v47 = vld [vmem:[%s7639_s1 + $0xb0] sm:$0xf0]  ;;  %v4065_v49 = vld [vmem:[%s7639_s1 + $0xb4] sm:$0xf0] }
  0x24   :  { %7776 = vst [vmem:[#allocation17_spill] sm:$0xff] %v4778_v36  ;;  %v4062_v46 = vld [vmem:[%s7639_s1 + $0xa4] sm:$0xf]  ;;  %v3749_v55 = vld [vmem:[%s7639_s1 + $0xd0] sm:$0xf0] }
  0x25   :  { %7777 = vst [vmem:[#allocation18_spill] sm:$0xff] %v4780_v37  ;;  %v3736_v51 = vor.u32 %v4062_v46, %v3733_v47  ;;  %v3661_v59 = vld [vmem:[%s7639_s1 + $0x18] sm:$0xf0]  ;;  %v3755_v60 = vld [vmem:[%s7639_s1 + $0xc8] sm:$0xf] }
  0x26   :  { %914 = vmatpush.bf16.msrb.mxu3 %v4104_v58  ;;  %7778 = vst [vmem:[#allocation19_spill] sm:$0xff] %v4793_v42  ;;  %v4043_v58 = vld [vmem:[%s7639_s1 + $0xc] sm:$0xf]  ;;  %v4070_v3 = vld [vmem:[%s7639_s1 + $0xe4] sm:$0xf] }
  0x27   :  { %167 = vadd.xlane.f32.xlu1 %v4753_v25  ;;  %v3664_v1 = vor.u32 %v4043_v58, %v3661_v59  ;;  %v3765_v4 = vld [vmem:[%s7639_s1 + $0xf0] sm:$0xf0]  ;;  %v4047_v5 = vld [vmem:[%s7639_s1 + $0x2c] sm:$0xf]  ;;  %v3709_v24 = vld [vmem:[%s7639_s1 + $0x78] sm:$0xf0] }
  0x28   :  { %153 = vadd.xlane.f32.xlu2 %v4687_v63  ;;  %v4051_v13 = vld [vmem:[%s7639_s1 + $0x4c] sm:$0xf] }
  0x29   :  { %157 = vadd.xlane.f32.xlu0 %v4685_v62 }
  0x2a   :  { %915 = vmatpush.bf16.msrb.mxu3 %v4103_v61  ;;  %v4069_v61 = vld [vmem:[%s7639_s1 + $0xd4] sm:$0xf0] }
  0x2b   :  { %v3756_v2 = vor.u32 %v4069_v61, %v3755_v60 }
  0x2e   :  { %916 = vmatpush.bf16.msrb.mxu3 %v4102_v6  ;;  %v3677_v6 = vld [vmem:[%s7639_s1 + $0x38] sm:$0xf0] }
  0x2f   :  { %159 = vadd.xlane.f32.xlu1 %v4778_v36 }
  0x30   :  { %151 = vadd.xlane.f32.xlu2 %v4728_v16 }
  0x31   :  { %789 = vmatmul.bf16.gmra.mxu3 %v3700_v39  ;;  %155 = vadd.xlane.f32.xlu0 %v4718_v12  ;;  %v4048_v39 = vld [vmem:[%s7639_s1 + $0x2c] sm:$0xf0] }
  0x32   :  { %828 = vmatmul.bf16.gmra.mxu1 %v3672_v40  ;;  %917 = vmatpush.bf16.msrb.mxu3 %v4101_v10  ;;  %v3668_v40 = vor.u32 %v4048_v39, %v3667_v38  ;;  %v3680_v10 = vor.u32 %v4047_v5, %v3677_v6 }
  0x33   :  { %877 = vmatmul.bf16.gmra.mxu2 %v3676_v41  ;;  %v3763_v41 = vld [vmem:[%s7639_s1 + $0xe0] sm:$0xf] }
  0x34   :  { %779 = vmatmul.bf16.gmra.mxu0 %v3668_v40  ;;  %v3764_v50 = vor.u32 %v4072_v43, %v3763_v41 }
  0x36   :  { %918 = vmatpush.bf16.msrb.mxu3 %v4100_v14  ;;  %v3693_v14 = vld [vmem:[%s7639_s1 + $0x58] sm:$0xf0] }
  0x37   :  { %149 = vadd.xlane.f32.xlu1 %v4793_v42  ;;  %v3696_v17 = vor.u32 %v4051_v13, %v3693_v14 }
  0x38   :  { %141 = vadd.xlane.f32.xlu2 %v4755_v26 }
  0x39   :  { %145 = vadd.xlane.f32.xlu0 %v4748_v23 }
  0x3a   :  { %919 = vmatpush.bf16.msrb.mxu3 %v4099_v22  ;;  %v4055_v22 = vld [vmem:[%s7639_s1 + $0x6c] sm:$0xf] }
  0x3b   :  { %v3712_v29 = vor.u32 %v4055_v22, %v3709_v24  ;;  %v4071_v22 = vld [vmem:[%s7639_s1 + $0xec] sm:$0xf]  ;;  %v3773_v24 = vld [vmem:[%s7639_s1 + $0xf8] sm:$0xf0] }
  0x3e   :  { %920 = vmatpush.bf16.msrb.mxu3 %v4098_v32 }
  0x41   :  { %794 = vmatmul.bf16.gmra.mxu3 %v3716_v52  ;;  %143 = vadd.xlane.f32.xlu0 %v4780_v37  ;;  %v3740_v52 = vor.u32 %v4065_v49, %v3739_v48 }
  0x42   :  { %833 = vmatmul.bf16.gmra.mxu1 %v3688_v53  ;;  %v4811_v53 = vunpack.c.h.bf16 %v45_v20 }
  0x43   :  { %882 = vmatmul.bf16.gmra.mxu2 %v3692_v54  ;;  %v4066_v54 = vld [vmem:[%s7639_s1 + $0xc4] sm:$0xf] }
  0x44   :  { %7779 = vst [vmem:[#allocation20_spill] sm:$0xff] %v4811_v53  ;;  %147 = vadd.xlane.f32.xlu1 %v4811_v53  ;;  %v3752_v0 = vor.u32 %v4066_v54, %v3749_v55 }
  0x51   :  { %799 = vmatmul.bf16.gmra.mxu3 %v3732_v7  ;;  %v3771_v7 = vld [vmem:[%s7639_s1 + $0xe8] sm:$0xf] }
  0x52   :  { %838 = vmatmul.bf16.gmra.mxu1 %v3704_v8  ;;  %v4073_v8 = vld [vmem:[%s7639_s1 + $0xf4] sm:$0xf0] }
  0x53   :  { %887 = vmatmul.bf16.gmra.mxu2 %v3708_v9  ;;  %v3768_v9 = vor.u32 %v4070_v3, %v3765_v4  ;;  %v3772_v11 = vor.u32 %v4073_v8, %v3771_v7  ;;  %v3757_v3 = vld [vmem:[%s7639_s1 + $0xd8] sm:$0xf0] }
  0x61   :  { %804 = vmatmul.bf16.gmra.mxu3 %v3748_v33 }
  0x62   :  { %843 = vmatmul.bf16.gmra.mxu1 %v3720_v34  ;;  %v4059_v34 = vld [vmem:[%s7639_s1 + $0x8c] sm:$0xf] }
  0x63   :  { %892 = vmatmul.bf16.gmra.mxu2 %v3724_v35  ;;  %v3725_v35 = vld [vmem:[%s7639_s1 + $0x98] sm:$0xf0] }
  0x64   :  { %v3728_v40 = vor.u32 %v4059_v34, %v3725_v35 }
  0x71   :  { %809 = vmatmul.bf16.gmra.mxu3 %v3764_v50  ;;  %v4063_v50 = vld [vmem:[%s7639_s1 + $0xac] sm:$0xf] }
  0x72   :  { %848 = vmatmul.bf16.gmra.mxu1 %v3736_v51  ;;  %v3741_v51 = vld [vmem:[%s7639_s1 + $0xb8] sm:$0xf0] }
  0x73   :  { %897 = vmatmul.bf16.gmra.mxu2 %v3740_v52  ;;  %v3744_v55 = vor.u32 %v4063_v50, %v3741_v51 }
  0x81   :  { %921 = vmatmul.bf16.vlgmr.msrb.gmra.mxu3 %v3664_v1 }
  0x82   :  { %853 = vmatmul.bf16.gmra.mxu1 %v3752_v0 }
  0x83   :  { %902 = vmatmul.bf16.gmra.mxu2 %v3756_v2  ;;  %v4067_v2 = vld [vmem:[%s7639_s1 + $0xcc] sm:$0xf]  ;;  %s4458_s1 = smov [#allocation2]  }
  0x84   :  { %v3760_v7 = vor.u32 %v4067_v2, %v3757_v3  ;;  %s3635_s27 = sshll.u32 %s4458_s1, 4  ;;  %s3636_s27 = int_to_ptr.vmem [resolvable:$true] %s3635_s27 }
  0x8b   :  { %v162_v3 = vpop.xlane.xlu2 %161 }
  0x91   :  { %926 = vmatmul.bf16.gmra.mxu3 %v3680_v10 }
  0x92   :  { %858 = vmatmul.bf16.gmra.mxu1 %v3768_v9 }
  0x93   :  { %907 = vmatmul.bf16.gmra.mxu2 %v3772_v11 }
  0x9f   :  { %v824_v18 = vpop.f32.mrf.mxu1 }
  0xa0   :  { %v775_v4 = vpop.f32.mrf.mxu0 }
  0xa1   :  { %931 = vmatmul.bf16.gmra.mxu3 %v3696_v17  ;;  %v825_v9 = vadd.f32 %v824_v18, %v775_v4  ;;  %v3776_v18 = vor.u32 %v4071_v22, %v3773_v24  ;;  %v166_v4 = vpop.xlane.xlu1 %165  ;;  %v4964_v22 = vadd.f32 1.0, %v162_v3  ;;  %v164_v24 = vpop.xlane.xlu2 %163 }
  0xa2   :  { %v4972_v56 = vadd.f32 1.0, %v164_v24  ;;  %v4993_v62 = vadd.f32 1.0, %v166_v4 }
  0xa3   :  { %vm295_vm2 = vweird.f32 %v4964_v22 }
  0xa4   :  { %v785_v19 = vpop.f32.mrf.mxu3  ;;  %vm305_vm7 = vweird.f32 %v4972_v56  ;;  %vm315_vm14 = vweird.f32 %v4993_v62 }
  0xa6   :  { %v873_v20 = vpop.f32.mrf.mxu2 }
  0xa7   :  { %v4856_v21 = vpop.f32.mrf.mxu1  ;;  %v4914_v17 = vadd.f32 %v873_v20, %v825_v9 }
  0xa8   :  { %7780 = vst [vmem:[#allocation21_spill] sm:$0xff] %v4856_v21  ;;  %v4912_v14 = vpop.f32.mrf.mxu0 }
  0xa9   :  { %7789 = vst [vmem:[#allocation30_spill] sm:$0xff] %v4912_v14  ;;  %v154_v45 = vpop.xlane.xlu2 %153 }
  0xaa   :  { %7790 = vst [vmem:[#allocation31_spill] sm:$0xff] %v4914_v17  ;;  %v4989_v36 = vadd.f32 1.0, %v154_v45 }
  0xac   :  { %v4864_v27 = vpop.f32.mrf.mxu3 }
  0xae   :  { %v4866_v28 = vpop.f32.mrf.mxu2 }
  0xaf   :  { %7781 = vst [vmem:[#allocation22_spill] sm:$0xff] %v4866_v28  ;;  %v829_v30 = vpop.f32.mrf.mxu1 }
  0xb1   :  { %936 = vmatmul.bf16.gmra.mxu3 %v3712_v29 }
  0xb4   :  { %v790_v31 = vpop.f32.mrf.mxu3 }
  0xb6   :  { %v878_v32 = vpop.f32.mrf.mxu2 }
  0xb7   :  { %v4868_v33 = vpop.f32.mrf.mxu1 }
  0xb8   :  { %7782 = vst [vmem:[#allocation23_spill] sm:$0xff] %v4868_v33 }
  0xbc   :  { %v4876_v38 = vpop.f32.mrf.mxu3 }
  0xbd   :  { %7783 = vst [vmem:[#allocation24_spill] sm:$0xff] %v4876_v38 }
  0xbe   :  { %v4878_v39 = vpop.f32.mrf.mxu2 }
  0xbf   :  { %7784 = vst [vmem:[#allocation25_spill] sm:$0xff] %v4878_v39  ;;  %v834_v41 = vpop.f32.mrf.mxu1 }
  0xc0   :  { %v835_v43 = vadd.f32 %v834_v41, %v785_v19 }
  0xc1   :  { %941 = vmatmul.bf16.gmra.mxu3 %v3728_v40 }
  0xc4   :  { %v795_v46 = vpop.f32.mrf.mxu3 }
  0xc6   :  { %v883_v47 = vpop.f32.mrf.mxu2 }
  0xc7   :  { %v4880_v48 = vadd.f32 %v883_v47, %v835_v43  ;;  %v4882_v49 = vpop.f32.mrf.mxu1 }
  0xc9   :  { %7785 = vst [vmem:[#allocation26_spill] sm:$0xff] %v4880_v48 }
  0xcc   :  { %v4890_v52 = vpop.f32.mrf.mxu3 }
  0xce   :  { %v4892_v54 = vpop.f32.mrf.mxu2 }
  0xcf   :  { %v839_v58 = vpop.f32.mrf.mxu1 }
  0xd0   :  { %v840_v59 = vadd.f32 %v839_v58, %v790_v31  ;;  %v780_v31 = vpop.f32.mrf.mxu0 }
  0xd1   :  { %946 = vmatmul.bf16.gmra.mxu3 %v3744_v55  ;;  %v830_v34 = vadd.f32 %v829_v30, %v780_v31 }
  0xd3   :  { %v4928_v20 = vadd.f32 %v878_v32, %v830_v34 }
  0xd4   :  { %v4894_v60 = vpop.f32.mrf.mxu3 }
  0xd5   :  { %7792 = vst [vmem:[#allocation33_spill] sm:$0xff] %v4928_v20 }
  0xd6   :  { %v888_v61 = vpop.f32.mrf.mxu2 }
  0xd7   :  { %v4896_v0 = vadd.f32 %v888_v61, %v840_v59  ;;  %v4898_v1 = vpop.f32.mrf.mxu1  ;;  %v170_v59 = vpop.xlane.xlu0 %169 }
  0xd8   :  { %7787 = vst [vmem:[#allocation28_spill] sm:$0xff] %v4898_v1 }
  0xd9   :  { %7786 = vst [vmem:[#allocation27_spill] sm:$0xff] %v4896_v0 }
  0xdc   :  { %v4906_v5 = vpop.f32.mrf.mxu3 }
  0xde   :  { %v4908_v6 = vpop.f32.mrf.mxu2 }
  0xdf   :  { %7788 = vst [vmem:[#allocation29_spill] sm:$0xff] %v4908_v6  ;;  %v844_v8 = vpop.f32.mrf.mxu1 }
  0xe0   :  { %v845_v10 = vadd.f32 %v844_v8, %v795_v46  ;;  %v172_v8 = vpop.xlane.xlu0 %171 }
  0xe1   :  { %951 = vmatmul.bf16.gmra.mxu3 %v3760_v7  ;;  %v4970_v34 = vadd.f32 1.0, %v172_v8 }
  0xe3   :  { %vm345_vm6 = vweird.f32 %v4970_v34 }
  0xe4   :  { %v4910_v11 = vpop.f32.mrf.mxu3 }
  0xe6   :  { %v893_v13 = vpop.f32.mrf.mxu2 }
  0xe7   :  { %v4916_v19 = vadd.f32 %v893_v13, %v845_v10  ;;  %v4946_v55 = vpop.f32.mrf.mxu1  ;;  %v4960_v10 = vadd.f32 1.0, %v170_v59 }
  0xe8   :  { %v158_v44 = vpop.xlane.xlu0 %157 }
  0xe9   :  { %7791 = vst [vmem:[#allocation32_spill] sm:$0xff] %v4916_v19  ;;  %4181 = vrsqrt.f32 %v4960_v10  ;;  %v4976_v59 = vadd.f32 1.0, %v158_v44  ;;  %vm335_vm0 = vweird.f32 %v4960_v10 }
  0xea   :  { %4183 = vrsqrt.f32 %v4964_v22 }
  0xeb   :  { %4185 = vrsqrt.f32 %v4970_v34  ;;  %vm275_vm10 = vweird.f32 %v4976_v59 }
  0xec   :  { %v4924_v29 = vpop.f32.mrf.mxu3  ;;  %4187 = vrsqrt.f32 %v4972_v56 }
  0xed   :  { %4189 = vrsqrt.f32 %v4976_v59 }
  0xee   :  { %v4948_v32 = vpop.f32.mrf.mxu2  ;;  %4191 = vrsqrt.f32 %v4989_v36 }
  0xef   :  { %v4952_v61 = vpop.f32.mrf.mxu1  ;;  %v4978_v15 = vpop.eup %4181  ;;  %4193 = vrsqrt.f32 %v4993_v62 }
  0xf0   :  { %v4984_v57 = vpop.eup %4183  ;;  %v330_v24 = vmul.f32 %v4978_v15, %v4960_v10  ;;  %v156_v45 = vpop.xlane.xlu0 %155  ;;  %vm336_vm1 = vweird.f32 %v4978_v15 }
  0xf1   :  { %956 = vmatmul.bf16.gmra.mxu3 %v3776_v18  ;;  %v168_v18 = vpop.xlane.xlu1 %167  ;;  %v290_v12 = vmul.f32 %v4984_v57, %v4964_v22  ;;  %v4999_v16 = vpop.eup %4185  ;;  %vm296_vm3 = vweird.f32 %v4984_v57  ;;  %vm337_vm4 = vmor %vm335_vm0, %vm336_vm1  ;;  %vm255_vm1 = vweird.f32 %v4989_v36 }
  0xf2   :  { %v5001_v42 = vadd.f32 1.0, %v168_v18  ;;  %v5003_v53 = vpop.eup %4187  ;;  %v331_v23 = vmul.f32 %v4978_v15, %v330_v24  ;;  %v340_v26 = vmul.f32 %v4999_v16, %v4970_v34  ;;  %vm5064_vm5 = vmor %vm295_vm2, %vm296_vm3  ;;  %vm346_vm8 = vweird.f32 %v4999_v16 }
  0xf3   :  { %v5008_v4 = vpop.eup %4189  ;;  %v291_v37 = vmul.f32 %v4984_v57, %v290_v12  ;;  %v300_v18 = vmul.f32 %v5003_v53, %v4972_v56  ;;  %vm306_vm9 = vweird.f32 %v5003_v53  ;;  %vm5097_vm11 = vmor %vm345_vm6, %vm346_vm8 }
  0xf4   :  { %v4926_v35 = vpop.f32.mrf.mxu3  ;;  %4195 = vrsqrt.f32 %v5001_v42  ;;  %v270_v24 = vmul.f32 %v5008_v4, %v4976_v59  ;;  %v5022_v28 = vpop.eup %4191  ;;  %vm276_vm12 = vweird.f32 %v5008_v4  ;;  %vm5109_vm13 = vmor %vm305_vm7, %vm306_vm9  ;;  %vm325_vm3 = vweird.f32 %v5001_v42 }
  0xf5   :  { %v292_v12 = vmul.f32 0.5, %v291_v37  ;;  %v301_v21 = vmul.f32 %v5003_v53, %v300_v18  ;;  %v250_v37 = vmul.f32 %v5022_v28, %v4989_v36  ;;  %vm277_vm15 = vmor %vm275_vm10, %vm276_vm12  ;;  %vm256_vm2 = vweird.f32 %v5022_v28 }
  0xf6   :  { %v4956_v7 = vpop.f32.mrf.mxu2  ;;  %vm5250_vm12 = vmor %vm255_vm1, %vm256_vm2 }
  0xf7   :  { %v4962_v13 = vpop.f32.mrf.mxu1  ;;  %v302_v18 = vmul.f32 0.5, %v301_v21 }
  0xf9   :  { %v160_v8 = vpop.xlane.xlu1 %159  ;;  %v303_v10 = vsub.f32 1.5, %v302_v18 }
  0xfa   :  { %v5034_v14 = vadd.f32 1.0, %v160_v8 }
  0xfc   :  { %v4930_v40 = vpop.f32.mrf.mxu3  ;;  %vm285_vm9 = vweird.f32 %v5034_v14 }
  0xfe   :  { %v4966_v31 = vpop.f32.mrf.mxu2 }
  0xff   :  { %v4982_v3 = vpop.f32.mrf.mxu1 }
 0x101   :  { %v150_v20 = vpop.xlane.xlu1 %149 }
 0x102   :  { %v5081_v1 = vadd.f32 1.0, %v150_v20 }
 0x104   :  { %v4932_v41 = vpop.f32.mrf.mxu3  ;;  %vm235_vm1 = vweird.f32 %v5081_v1 }
 0x105   :  { %7793 = vst [vmem:[#allocation34_spill] sm:$0xff] %v4932_v41  ;;  %v332_v41 = vmul.f32 0.5, %v331_v23  ;;  %v5031_v23 = vpop.eup %4193 }
 0x106   :  { %v4991_v44 = vpop.f32.mrf.mxu2  ;;  %v310_v8 = vmul.f32 %v5031_v23, %v4993_v62  ;;  %vm316_vm0 = vweird.f32 %v5031_v23 }
 0x107   :  { %v5016_v17 = vpop.f32.mrf.mxu1 }
 0x10c   :  { %v4934_v43 = vpop.f32.mrf.mxu3 }
 0x10d   :  { %7794 = vst [vmem:[#allocation35_spill] sm:$0xff] %v4934_v43  ;;  %v5020_v43 = vadd.f32 1.0, %v156_v45  ;;  %v333_v45 = vsub.f32 1.5, %v332_v41  ;;  %v146_v41 = vpop.xlane.xlu0 %145 }
 0x10e   :  { %v5027_v48 = vpop.f32.mrf.mxu2 }
 0x10f   :  { %4197 = vrsqrt.f32 %v5020_v43  ;;  %v334_v0 = vmul.f32 %v4978_v15, %v333_v45  ;;  %v311_v45 = vmul.f32 %v5031_v23, %v310_v8  ;;  %vm265_vm6 = vweird.f32 %v5020_v43 }
 0x111   :  { %v312_v38 = vmul.f32 0.5, %v311_v45  ;;  %v5119_v45 = vadd.f32 1.0, %v146_v41 }
 0x114   :  { %v4936_v46 = vpop.f32.mrf.mxu3 }
 0x115   :  { %7795 = vst [vmem:[#allocation36_spill] sm:$0xff] %v4936_v46  ;;  %v152_v46 = vpop.xlane.xlu2 %151 }
 0x116   :  { %v908_v8 = vpop.f32.mrf.mxu2 }
 0x11c   :  { %v4938_v47 = vpop.f32.mrf.mxu3 }
 0x11d   :  { %7796 = vst [vmem:[#allocation37_spill] sm:$0xff] %v4938_v47  ;;  %v341_v47 = vmul.f32 %v4999_v16, %v340_v26  ;;  %v271_v26 = vmul.f32 %v5008_v4, %v270_v24  ;;  %v142_v56 = vpop.xlane.xlu2 %141 }
 0x11e   :  { %v5145_v59 = vadd.f32 1.0, %v142_v56 }
 0x124   :  { %v4940_v50 = vpop.f32.mrf.mxu3 }
 0x125   :  { %7797 = vst [vmem:[#allocation38_spill] sm:$0xff] %v4940_v50  ;;  %v5025_v50 = vadd.f32 1.0, %v152_v46  ;;  %v293_v46 = vsub.f32 1.5, %v292_v12  ;;  %v251_v12 = vmul.f32 %v5022_v28, %v250_v37 }
 0x127   :  { %4199 = vrsqrt.f32 %v5025_v50  ;;  %v294_v21 = vmul.f32 %v4984_v57, %v293_v46  ;;  %v148_v46 = vpop.xlane.xlu1 %147  ;;  %v252_v18 = vmul.f32 0.5, %v251_v12  ;;  %vm245_vm10 = vweird.f32 %v5025_v50 }
 0x128   :  { %4201 = vrsqrt.f32 %v5034_v14 }
 0x129   :  { %4203 = vrsqrt.f32 %v5081_v1 }
 0x12c   :  { %v4942_v51 = vpop.f32.mrf.mxu3 }
 0x12d   :  { %7798 = vst [vmem:[#allocation39_spill] sm:$0xff] %v4942_v51  ;;  %v5037_v51 = vpop.eup %4195 }
 0x12e   :  { %v320_v24 = vmul.f32 %v5037_v51, %v5001_v42 }
 0x130   :  { %v321_v37 = vmul.f32 %v5037_v51, %v320_v24 }
 0x132   :  { %v322_v19 = vmul.f32 0.5, %v321_v37 }
 0x134   :  { %v4944_v30 = vpop.f32.mrf.mxu3 }
 0x135   :  { %7799 = vst [vmem:[#allocation40_spill] sm:$0xff] %v4944_v30  ;;  %v342_v30 = vmul.f32 0.5, %v341_v47  ;;  %v272_v47 = vmul.f32 0.5, %v271_v26 }
 0x137   :  { %v343_v33 = vsub.f32 1.5, %v342_v30  ;;  %v5073_v30 = vsel %vm337_vm4, %v4978_v15, %v334_v0  ;;  %v5086_v15 = vsel %vm5064_vm5, %v4984_v57, %v294_v21  ;;  %v304_v57 = vmul.f32 %v5003_v53, %v303_v10  ;;  %vm5169_vm5 = vmor %vm315_vm14, %vm316_vm0 }
 0x138   :  { %v253_v21 = vsub.f32 1.5, %v252_v18  ;;  %vm326_vm4 = vweird.f32 %v5037_v51  ;;  %vm215_vm0 = vweird.f32 %v5119_v45 }
 0x139   :  { %v344_v0 = vmul.f32 %v4999_v16, %v343_v33  ;;  %v5103_v33 = vadd.f32 1.0, %v148_v46  ;;  %v5138_v18 = vsel %vm5109_vm13, %v5003_v53, %v304_v57  ;;  %vm5189_vm8 = vmor %vm325_vm3, %vm326_vm4 }
 0x13a   :  { %v5152_v53 = vmul.f32 %v5022_v28, %v253_v21 }
 0x13b   :  { %v5128_v46 = vsel %vm5097_vm11, %v4999_v16, %v344_v0  ;;  %4205 = vrsqrt.f32 %v5103_v33  ;;  %vm225_vm4 = vweird.f32 %v5103_v33 }
 0x13c   :  { %v4950_v58 = vpop.f32.mrf.mxu3  ;;  %4207 = vrsqrt.f32 %v5119_v45 }
 0x13d   :  { %7800 = vst [vmem:[#allocation41_spill] sm:$0xff] %v4950_v58  ;;  %v859_v58 = vpop.f32.mrf.mxu1 }
 0x13e   :  { %v860_v20 = vadd.f32 %v859_v58, %v4926_v35  ;;  %v857_v35 = vadd.f32 %v5016_v17, %v4924_v29  ;;  %v855_v29 = vadd.f32 %v4982_v3, %v4910_v11  ;;  %v7818_v17 = vld [vmem:[#allocation28_spill] sm:$0xff] }
 0x140   :  { %v909_v58 = vadd.f32 %v908_v8, %v860_v20  ;;  %v904_v11 = vadd.f32 %v4991_v44, %v855_v29 }
 0x144   :  { %v4954_v2 = vpop.f32.mrf.mxu3 }
 0x145   :  { %7801 = vst [vmem:[#allocation42_spill] sm:$0xff] %v4954_v2  ;;  %v5062_v2 = vpop.eup %4197  ;;  %v861_v0 = vpop.f32.mrf.mxu1 }
 0x146   :  { %v5070_v26 = vpop.eup %4199  ;;  %v260_v24 = vmul.f32 %v5062_v2, %v5020_v43  ;;  %vm266_vm7 = vweird.f32 %v5062_v2 }
 0x147   :  { %v5078_v6 = vpop.eup %4201  ;;  %vm246_vm13 = vweird.f32 %v5070_v26 }
 0x148   :  { %v280_v34 = vmul.f32 %v5078_v6, %v5034_v14  ;;  %v261_v41 = vmul.f32 %v5062_v2, %v260_v24  ;;  %vm286_vm11 = vweird.f32 %v5078_v6  ;;  %vm247_vm3 = vmor %vm245_vm10, %vm246_vm13 }
 0x149   :  { %vm287_vm14 = vmor %vm285_vm9, %vm286_vm11 }
 0x14c   :  { %v4958_v9 = vpop.f32.mrf.mxu3 }
 0x14d   :  { %7802 = vst [vmem:[#allocation43_spill] sm:$0xff] %v4958_v9  ;;  %v273_v9 = vsub.f32 1.5, %v272_v47  ;;  %v144_v47 = vpop.xlane.xlu0 %143 }
 0x14f   :  { %v274_v12 = vmul.f32 %v5008_v4, %v273_v9  ;;  %v313_v9 = vsub.f32 1.5, %v312_v38  ;;  %v281_v38 = vmul.f32 %v5078_v6, %v280_v34  ;;  %v862_v34 = vadd.f32 %v861_v0, %v4930_v40 }
 0x150   :  { %v906_v40 = vadd.f32 %v5027_v48, %v857_v35  ;;  %v852_v48 = vadd.f32 %v4962_v13, %v4906_v5 }
 0x151   :  { %v5149_v24 = vsel %vm277_vm15, %v5008_v4, %v274_v12  ;;  %v314_v57 = vmul.f32 %v5031_v23, %v313_v9  ;;  %v910_v4 = vpop.f32.mrf.mxu2  ;;  %v282_v21 = vmul.f32 0.5, %v281_v38  ;;  %vm267_vm15 = vmor %vm265_vm6, %vm266_vm7 }
 0x152   :  { %v911_v8 = vadd.f32 %v910_v4, %v862_v34  ;;  %v901_v5 = vadd.f32 %v4966_v31, %v852_v48 }
 0x153   :  { %v5199_v9 = vsel %vm5169_vm5, %v5031_v23, %v314_v57  ;;  %v850_v23 = vadd.f32 %v4952_v61, %v4894_v60  ;;  %v283_v0 = vsub.f32 1.5, %v282_v21  ;;  %v7817_v21 = vld [vmem:[#allocation24_spill] sm:$0xff] }
 0x154   :  { %v4974_v25 = vpop.f32.mrf.mxu3  ;;  %v842_v29 = vadd.f32 %v7818_v17, %v7817_v21  ;;  %v7829_v17 = vld [vmem:[#allocation39_spill] sm:$0xff] }
 0x155   :  { %7803 = vst [vmem:[#allocation44_spill] sm:$0xff] %v4974_v25  ;;  %v837_v25 = vadd.f32 %v4882_v49, %v4864_v27  ;;  %v240_v49 = vmul.f32 %v5070_v26, %v5025_v50  ;;  %v5159_v27 = vmul.f32 0.5, %v261_v41  ;;  %v899_v31 = vadd.f32 %v4956_v7, %v850_v23 }
 0x157   :  { %v5123_v10 = vadd.f32 %v4892_v54, %v837_v25  ;;  %v5141_v25 = vadd.f32 1.0, %v144_v47  ;;  %v241_v16 = vmul.f32 %v5070_v26, %v240_v49  ;;  %v323_v54 = vsub.f32 1.5, %v322_v19  ;;  %v5163_v49 = vpop.eup %4203 }
 0x158   :  { %v5181_v62 = vpop.eup %4205  ;;  %v263_v41 = vsub.f32 1.5, %v5159_v27  ;;  %v230_v42 = vmul.f32 %v5163_v49, %v5081_v1  ;;  %vm236_vm2 = vweird.f32 %v5163_v49 }
 0x159   :  { %4209 = vrsqrt.f32 %v5141_v25  ;;  %v5177_v47 = vmul.f32 0.5, %v241_v16  ;;  %v324_v12 = vmul.f32 %v5037_v51, %v323_v54  ;;  %v5205_v54 = vpop.eup %4207  ;;  %v220_v20 = vmul.f32 %v5181_v62, %v5103_v33  ;;  %vm5327_vm7 = vmor %vm235_vm1, %vm236_vm2 }
 0x15a   :  { %4211 = vrsqrt.f32 %v5145_v59  ;;  %vm226_vm5 = vweird.f32 %v5181_v62  ;;  %vm205_vm6 = vweird.f32 %v5141_v25  ;;  %vm7691_vm2 = vcmask 261120  }
 0x15b   :  { %v5216_v38 = vsel %vm5189_vm8, %v5037_v51, %v324_v12  ;;  %v847_v51 = vadd.f32 %v4946_v55, %v4890_v52  ;;  %v284_v55 = vmul.f32 %v5078_v6, %v283_v0  ;;  %v221_v7 = vmul.f32 %v5181_v62, %v220_v20  ;;  %v7821_v20 = vld [vmem:[#allocation32_spill] sm:$0xff]  ;;  %vm5345_vm9 = vmor %vm225_vm4, %vm226_vm5 }
 0x15c   :  { %v4997_v63 = vpop.f32.mrf.mxu3  ;;  %v7816_v36 = vld [vmem:[#allocation44_spill] sm:$0xff]  ;;  %vm216_vm8 = vweird.f32 %v5205_v54 }
 0x15d   :  { %v950_v27 = vadd.f32 %v4997_v63, %v901_v5  ;;  %v896_v35 = vadd.f32 %v4948_v32, %v847_v51  ;;  %v948_v34 = vadd.f32 %v7816_v36, %v899_v31  ;;  %v7822_v5 = vld [vmem:[#allocation42_spill] sm:$0xff]  ;;  %v782_v51 = vpop.f32.mrf.mxu0  ;;  %vm217_vm11 = vmor %vm215_vm0, %vm216_vm8 }
 0x15f   :  { %v5220_v57 = vpop.eup %4209  ;;  %v5275_v14 = vmul.f32 %v950_v27, %v5138_v18 }
 0x160   :  { %v5230_v61 = vpop.eup %4211  ;;  %v200_v63 = vmul.f32 %v5220_v57, %v5141_v25  ;;  %vm206_vm10 = vweird.f32 %v5220_v57 }
 0x161   :  { %vm196_vm13 = vweird.f32 %v5230_v61 }
 0x164   :  { %v5029_v39 = vpop.f32.mrf.mxu3 }
 0x165   :  { %v953_v13 = vadd.f32 %v5029_v39, %v904_v11  ;;  %v231_v39 = vmul.f32 %v5163_v49, %v230_v42  ;;  %v7819_v42 = vld [vmem:[#allocation43_spill] sm:$0xff]  ;;  %v5283_v11 = vsel %vm5250_vm12, %v5022_v28, %v5152_v53  ;;  %v5298_v28 = vmul.f32 %v948_v34, %v5086_v15 }
 0x166   :  { %vm195_vm12 = vweird.f32 %v5145_v59 }
 0x167   :  { %v5266_v12 = vmul.f32 %v953_v13, %v5199_v9  ;;  %v232_v32 = vmul.f32 0.5, %v231_v39  ;;  %v943_v13 = vadd.f32 %v7822_v5, %v7821_v20  ;;  %v7823_v39 = vld [vmem:[#allocation41_spill] sm:$0xff]  ;;  %v983_v27 = vpack.c.bf16 %v5275_v14, %v5298_v28 }
 0x169   :  { %v5321_v34 = vmul.f32 %v943_v13, %v5149_v24 }
 0x16c   :  { %v5060_v22 = vpop.f32.mrf.mxu3 }
 0x16d   :  { %v955_v3 = vadd.f32 %v5060_v22, %v906_v40  ;;  %v210_v22 = vmul.f32 %v5205_v54, %v5119_v45  ;;  %v243_v40 = vsub.f32 1.5, %v5177_v47  ;;  %v5290_v47 = vsel %vm287_vm14, %v5078_v6, %v284_v55  ;;  %vm207_vm14 = vmor %vm205_vm6, %vm206_vm10  ;;  %v7838_v45 = vld [vmem:[#allocation22_spill] sm:$0xff] }
 0x16e   :  { %v233_v6 = vsub.f32 1.5, %v232_v32 }
 0x16f   :  { %v5242_v4 = vmul.f32 %v955_v3, %v5216_v38  ;;  %v222_v3 = vmul.f32 0.5, %v221_v7  ;;  %v244_v43 = vmul.f32 %v5070_v26, %v243_v40 }
 0x170   :  { %v234_v1 = vmul.f32 %v5163_v49, %v233_v6 }
 0x171   :  { %v984_v48 = vpack.c.bf16 %v5242_v4, %v5266_v12  ;;  %v223_v55 = vsub.f32 1.5, %v222_v3  ;;  %v5339_v32 = vsel %vm247_vm3, %v5070_v26, %v244_v43  ;;  %v7837_v43 = vld [vmem:[#allocation37_spill] sm:$0xff] }
 0x172   :  { %v5360_v13 = vsel %vm5327_vm7, %v5163_v49, %v234_v1 }
 0x174   :  { %v957_v37 = vpop.f32.mrf.mxu3 }
 0x175   :  { %v958_v56 = vadd.f32 %v957_v37, %v909_v58  ;;  %v190_v58 = vmul.f32 %v5230_v61, %v5145_v59 }
 0x177   :  { %v5225_v44 = vmul.f32 %v958_v56, %v5073_v30  ;;  %v264_v56 = vmul.f32 %v5062_v2, %v263_v41  ;;  %v201_v41 = vmul.f32 %v5220_v57, %v200_v63  ;;  %v191_v0 = vmul.f32 %v5230_v61, %v190_v58  ;;  %v7824_v63 = vld [vmem:[#allocation23_spill] sm:$0xff]  ;;  %v7826_v58 = vld [vmem:[#allocation40_spill] sm:$0xff] }
 0x178   :  { %v832_v7 = vadd.f32 %v7824_v63, %v782_v51 }
 0x179   :  { %v202_v52 = vmul.f32 0.5, %v201_v41  ;;  %v5444_v41 = vld [vmem:[%s7638_s0 + $0x30] sm:$0xff] }
 0x17b   :  { %v203_v33 = vsub.f32 1.5, %v202_v52  ;;  %v7840_v52 = vld [vmem:[#allocation36_spill] sm:$0xff] }
 0x17c   :  { %v959_v16 = vpop.f32.mrf.mxu3 }
 0x17d   :  { %v960_v37 = vadd.f32 %v959_v16, %v911_v8  ;;  %v211_v8 = vmul.f32 %v5205_v54, %v210_v22  ;;  %v945_v16 = vadd.f32 %v7819_v42, %v896_v35  ;;  %v5303_v22 = vsel %vm267_vm15, %v5062_v2, %v264_v56  ;;  %v7825_v35 = vld [vmem:[#allocation27_spill] sm:$0xff]  ;;  %v7830_v42 = vld [vmem:[#allocation30_spill] sm:$0xff]  ;;  %vm197_vm15 = vmor %vm195_vm12, %vm196_vm13 }
 0x17e   :  { %v192_v2 = vmul.f32 0.5, %v191_v0  ;;  %v938_v36 = vadd.f32 %v7826_v58, %v7825_v35  ;;  %v224_v56 = vmul.f32 %v5181_v62, %v223_v55 }
 0x17f   :  { %v5228_v60 = vmul.f32 %v960_v37, %v5128_v46  ;;  %v7820_v37 = vld [vmem:[#allocation29_spill] sm:$0xff]  ;;  %v212_v53 = vmul.f32 0.5, %v211_v8 }
 0x180   :  { %v891_v23 = vadd.f32 %v7820_v37, %v842_v29  ;;  %v935_v29 = vadd.f32 %v7829_v17, %v5123_v10  ;;  %v7834_v10 = vld [vmem:[#allocation25_spill] sm:$0xff]  ;;  %v7835_v37 = vld [vmem:[#allocation26_spill] sm:$0xff]  ;;  %v5353_v26 = vmul.f32 %v938_v36, %v5283_v11  ;;  %v193_v5 = vsub.f32 1.5, %v192_v2  ;;  %v7842_v36 = vld [vmem:[#allocation31_spill] sm:$0xff] }
 0x181   :  { %v985_v19 = vpack.c.bf16 %v5228_v60, %v5225_v44  ;;  %v213_v21 = vsub.f32 1.5, %v212_v53  ;;  %v881_v3 = vadd.f32 %v7834_v10, %v832_v7  ;;  %v5376_v49 = vsel %vm5345_vm9, %v5181_v62, %v224_v56  ;;  %v7841_v62 = vld [vmem:[#allocation35_spill] sm:$0xff]  ;;  %v5420_v56 = vld [vmem:[%s7638_s0 + $0x10] sm:$0xff]  ;;  %v4107_v10 = vld [vmem:[%s7643_s5 + $0x8] sm:$0xff] }
 0x182   :  { %v940_v31 = vadd.f32 %v7823_v39, %v891_v23  ;;  %v7836_v23 = vld [vmem:[#allocation38_spill] sm:$0xff]  ;;  %v5368_v51 = vmul.f32 %v935_v29, %v5339_v32  ;;  %v204_v39 = vmul.f32 %v5220_v57, %v203_v33  ;;  %v194_v63 = vmul.f32 %v5230_v61, %v193_v5  ;;  %1270 = vmatpush.bf16.msrb.mxu1 %v4107_v10 }
 0x183   :  { %1034 = vmatpush.bf16.msrb.mxu0 %v985_v19  ;;  %v5309_v19 = vmul.f32 %v945_v16, %v5290_v47  ;;  %v7831_v16 = vld [vmem:[#allocation21_spill] sm:$0xff]  ;;  %v933_v0 = vadd.f32 %v7836_v23, %v7835_v37  ;;  %v214_v20 = vmul.f32 %v5205_v54, %v213_v21  ;;  %v930_v53 = vadd.f32 %v7837_v43, %v881_v3  ;;  %v7843_v21 = vld [vmem:[#allocation34_spill] sm:$0xff]  ;;  %v4106_v37 = vld [vmem:[%s7643_s5] sm:$0xff]  ;;  %s3637_s5 = sshll.u32 %s7650_s12, 4  ;;  %s3638_s5 = int_to_ptr.hbm [resolvable:$true] %s3637_s5 }
 0x184   :  { %v5336_v8 = vmul.f32 %v940_v31, %v5303_v22  ;;  %v5395_v58 = vsel %vm207_vm14, %v5220_v57, %v204_v39  ;;  %v923_v1 = vadd.f32 %v7843_v21, %v7842_v36  ;;  %v5401_v50 = vsel %vm197_vm15, %v5230_v61, %v194_v63  ;;  %v5408_v57 = vld [vmem:[%s7638_s0] sm:$0xff]  ;;  %v5414_v61 = vld [vmem:[%s7638_s0 + $0x8] sm:$0xff]  ;;  %v5453_v3 = vld [vmem:[%s7638_s0 + $0x38] sm:$0xff] }
 0x185   :  { %v982_v40 = vpack.c.bf16 %v5309_v19, %v5321_v34  ;;  %v5384_v59 = vmul.f32 %v933_v0, %v5360_v13  ;;  %v5387_v2 = vsel %vm217_vm11, %v5205_v54, %v214_v20  ;;  %v965_v35 = vmul.f32 %v930_v53, %v5376_v49  ;;  %v5462_v20 = vld [vmem:[%s7642_s4] ss:$0 sm:$0xff] }
 0x186   :  { %v981_v6 = vpack.c.bf16 %v5336_v8, %v5353_v26  ;;  %1271 = vmatpush.bf16.msrb.mxu1 %v4106_v37 }
 0x187   :  { %1035 = vmatpush.bf16.msrb.mxu0 %v984_v48  ;;  %v827_v48 = vadd.f32 %v7831_v16, %v7830_v42  ;;  %v980_v25 = vpack.c.bf16 %v5368_v51, %v5384_v59  ;;  %v5426_v42 = vld [vmem:[%s7638_s0 + $0x18] sm:$0xff]  ;;  %v5432_v16 = vld [vmem:[%s7638_s0 + $0x20] sm:$0xff] }
 0x189   :  { %v876_v31 = vadd.f32 %v7838_v45, %v827_v48  ;;  %v5438_v48 = vld [vmem:[%s7638_s0 + $0x28] sm:$0xff] }
 0x18b   :  { %1036 = vmatpush.bf16.msrb.mxu0 %v983_v27  ;;  %v7839_v27 = vld [vmem:[#allocation33_spill] sm:$0xff]  ;;  %v925_v7 = vadd.f32 %v7841_v62, %v876_v31 }
 0x18c   :  { %v928_v55 = vadd.f32 %v7840_v52, %v7839_v27 }
 0x18d   :  { %v963_v29 = vmul.f32 %v925_v7, %v5395_v58 }
 0x18e   :  { %v964_v54 = vmul.f32 %v928_v55, %v5387_v2 }
 0x18f   :  { %1037 = vmatpush.bf16.msrb.mxu0 %v982_v40  ;;  %v962_v40 = vmul.f32 %v923_v1, %v5401_v50 }
 0x190   :  { %v979_v17 = vpack.c.bf16 %v965_v35, %v964_v54 }
 0x191   :  { %v978_v33 = vpack.c.bf16 %v963_v29, %v962_v40 }
 0x193   :  { %1038 = vmatpush.bf16.msrb.mxu0 %v981_v6 }
 0x197   :  { %1039 = vmatpush.bf16.msrb.mxu0 %v980_v25 }
 0x19b   :  { %1040 = vmatpush.bf16.msrb.mxu0 %v979_v17 }
 0x19f   :  { %1041 = vmatpush.bf16.msrb.mxu0 %v978_v33 }
 0x1a2   :  { %1042 = vmatmul.bf16.vlgmr.msrb.gmra.mxu0 %v5408_v57 }
 0x1b2   :  { %1047 = vmatmul.bf16.gmra.mxu0 %v5414_v61 }
 0x1c2   :  { %1052 = vmatmul.bf16.gmra.mxu0 %v5420_v56 }
 0x1d2   :  { %1057 = vmatmul.bf16.gmra.mxu0 %v5426_v42 }
 0x1e2   :  { %1062 = vmatmul.bf16.gmra.mxu0 %v5432_v16 }
 0x1f2   :  { %1067 = vmatmul.bf16.gmra.mxu0 %v5438_v48 }
 0x202   :  { %1072 = vmatmul.bf16.gmra.mxu0 %v5444_v41 }
 0x212   :  { %1077 = vmatmul.bf16.gmra.mxu0 %v5453_v3 }
 0x21f   :  { %v1043_v23 = vpop.f32.mrf.mxu0 }
 0x220   :  { %v1044_v0 = vadd.f32 %v1043_v23, %v962_v40 }
 0x222   :  { %v1083_v5 = vmul.f32 %v1044_v0, %v5401_v50 }
 0x224   :  { %v1102_v43 = vadd.f32 %v5462_v20, %v1083_v5 }
 0x226   :  { %v1134_v53 = vmin.f32 %v1102_v43, 0.0  ;;  %vm1118_vm0 = vcmp.gt.f32.partialorder %v1102_v43, 0.0 }
 0x227   :  { %v1045_v6 = vpop.f32.mrf.mxu0 }
 0x228   :  { %v1046_v39 = vadd.f32 %v1045_v6, %v963_v29  ;;  %v1150_v45 = vmul.f32 1.442695, %v1134_v53 }
 0x22a   :  { %v1084_v31 = vmul.f32 %v1046_v39, %v5395_v58  ;;  %4213 = vpow2.f32 %v1150_v45 }
 0x22c   :  { %v1103_v27 = vadd.f32 %v5462_v20, %v1084_v31 }
 0x22e   :  { %v1135_v52 = vmin.f32 %v1103_v27, 0.0  ;;  %vm1119_vm1 = vcmp.gt.f32.partialorder %v1103_v27, 0.0 }
 0x22f   :  { %v1048_v55 = vpop.f32.mrf.mxu0 }
 0x230   :  { %v1152_v63 = vmul.f32 1.442695, %v1135_v52  ;;  %v1049_v62 = vadd.f32 %v1048_v55, %v964_v54  ;;  %v4214_v25 = vpop.eup %4213 }
 0x231   :  { %v3937_v17 = vadd.f32 -1.0, %v4214_v25 }
 0x232   :  { %4215 = vpow2.f32 %v1152_v63  ;;  %v1085_v7 = vmul.f32 %v1049_v62, %v5387_v2 }
 0x233   :  { %v1198_v23 = vsel %vm1118_vm0, %v1102_v43, %v3937_v17 }
 0x234   :  { %v1104_v36 = vadd.f32 %v5462_v20, %v1085_v7 }
 0x236   :  { %v1136_v21 = vmin.f32 %v1104_v36, 0.0  ;;  %vm1120_vm3 = vcmp.gt.f32.partialorder %v1104_v36, 0.0 }
 0x237   :  { %v1050_v1 = vpop.f32.mrf.mxu0 }
 0x238   :  { %v4216_v29 = vpop.eup %4215  ;;  %v1051_v40 = vadd.f32 %v1050_v1, %v965_v35  ;;  %v1154_v10 = vmul.f32 1.442695, %v1136_v21 }
 0x239   :  { %v3938_v33 = vadd.f32 -1.0, %v4216_v29 }
 0x23a   :  { %v1086_v37 = vmul.f32 %v1051_v40, %v5376_v49  ;;  %4217 = vpow2.f32 %v1154_v10 }
 0x23b   :  { %v1199_v0 = vsel %vm1119_vm1, %v1103_v27, %v3938_v33 }
 0x23c   :  { %v1105_v54 = vadd.f32 %v5462_v20, %v1086_v37  ;;  %v1214_v5 = vpack.c.bf16 %v1199_v0, %v1198_v23 }
 0x23e   :  { %v1137_v53 = vmin.f32 %v1105_v54, 0.0  ;;  %3961 = vmatmul.msk.bf16.vlgmr.msrb.gmra.mxu1 %vm7691_vm2, %v1214_v5  ;;  %vm1121_vm4 = vcmp.gt.f32.partialorder %v1105_v54, 0.0 }
 0x23f   :  { %v1053_v6 = vpop.f32.mrf.mxu0 }
 0x240   :  { %v1156_v39 = vmul.f32 1.442695, %v1137_v53  ;;  %v1054_v35 = vadd.f32 %v1053_v6, %v5384_v59  ;;  %v4218_v31 = vpop.eup %4217 }
 0x241   :  { %v3939_v55 = vadd.f32 -1.0, %v4218_v31 }
 0x242   :  { %v1087_v45 = vmul.f32 %v1054_v35, %v5360_v13  ;;  %4219 = vpow2.f32 %v1156_v39 }
 0x243   :  { %v1200_v1 = vsel %vm1120_vm3, %v1104_v36, %v3939_v55 }
 0x244   :  { %v1106_v52 = vadd.f32 %v5462_v20, %v1087_v45 }
 0x246   :  { %v1138_v43 = vmin.f32 %v1106_v52, 0.0  ;;  %vm1122_vm5 = vcmp.gt.f32.partialorder %v1106_v52, 0.0 }
 0x247   :  { %v1055_v27 = vpop.f32.mrf.mxu0 }
 0x248   :  { %v4220_v63 = vpop.eup %4219  ;;  %v1056_v62 = vadd.f32 %v1055_v27, %v5368_v51  ;;  %v1158_v25 = vmul.f32 1.442695, %v1138_v43 }
 0x249   :  { %v3940_v7 = vadd.f32 -1.0, %v4220_v63 }
 0x24a   :  { %v1088_v21 = vmul.f32 %v1056_v62, %v5339_v32  ;;  %4221 = vpow2.f32 %v1158_v25 }
 0x24b   :  { %v1201_v59 = vsel %vm1121_vm4, %v1105_v54, %v3940_v7 }
 0x24c   :  { %v1107_v17 = vadd.f32 %v5462_v20, %v1088_v21  ;;  %v1215_v29 = vpack.c.bf16 %v1201_v59, %v1200_v1 }
 0x24e   :  { %v1139_v40 = vmin.f32 %v1107_v17, 0.0  ;;  %3962 = vmatmul.msk.bf16.gmra.mxu1 %vm7691_vm2, %v1215_v29  ;;  %vm1123_vm6 = vcmp.gt.f32.partialorder %v1107_v17, 0.0 }
 0x24f   :  { %v1058_v33 = vpop.f32.mrf.mxu0 }
 0x250   :  { %v1160_v10 = vmul.f32 1.442695, %v1139_v40  ;;  %v1059_v37 = vadd.f32 %v1058_v33, %v5353_v26  ;;  %v4222_v23 = vpop.eup %4221 }
 0x251   :  { %v3941_v54 = vadd.f32 -1.0, %v4222_v23 }
 0x252   :  { %v1089_v51 = vmul.f32 %v1059_v37, %v5283_v11  ;;  %4223 = vpow2.f32 %v1160_v10 }
 0x253   :  { %v1202_v31 = vsel %vm1122_vm5, %v1106_v52, %v3941_v54 }
 0x254   :  { %v1108_v0 = vadd.f32 %v5462_v20, %v1089_v51 }
 0x256   :  { %v1140_v5 = vmin.f32 %v1108_v0, 0.0  ;;  %vm1124_vm7 = vcmp.gt.f32.partialorder %v1108_v0, 0.0 }
 0x257   :  { %v1060_v36 = vpop.f32.mrf.mxu0 }
 0x258   :  { %v4224_v53 = vpop.eup %4223  ;;  %v1061_v6 = vadd.f32 %v1060_v36, %v5336_v8  ;;  %v1162_v35 = vmul.f32 1.442695, %v1140_v5 }
 0x259   :  { %v3942_v39 = vadd.f32 -1.0, %v4224_v53 }
 0x25a   :  { %v1090_v45 = vmul.f32 %v1061_v6, %v5303_v22  ;;  %4225 = vpow2.f32 %v1162_v35 }
 0x25b   :  { %v1203_v26 = vsel %vm1123_vm6, %v1107_v17, %v3942_v39 }
 0x25c   :  { %v1109_v43 = vadd.f32 %v5462_v20, %v1090_v45  ;;  %v1216_v27 = vpack.c.bf16 %v1203_v26, %v1202_v31 }
 0x25e   :  { %v1141_v55 = vmin.f32 %v1109_v43, 0.0  ;;  %3963 = vmatmul.msk.bf16.gmra.mxu1 %vm7691_vm2, %v1216_v27  ;;  %vm1125_vm8 = vcmp.gt.f32.partialorder %v1109_v43, 0.0 }
 0x25f   :  { %v1063_v63 = vpop.f32.mrf.mxu0 }
 0x260   :  { %v1164_v62 = vmul.f32 1.442695, %v1141_v55  ;;  %v1064_v7 = vadd.f32 %v1063_v63, %v5321_v34  ;;  %v4226_v25 = vpop.eup %4225 }
 0x261   :  { %v3943_v59 = vadd.f32 -1.0, %v4226_v25 }
 0x262   :  { %v1091_v8 = vmul.f32 %v1064_v7, %v5149_v24  ;;  %4227 = vpow2.f32 %v1164_v62 }
 0x263   :  { %v1204_v37 = vsel %vm1124_vm7, %v1108_v0, %v3943_v59 }
 0x264   :  { %v1110_v21 = vadd.f32 %v5462_v20, %v1091_v8 }
 0x266   :  { %v1142_v1 = vmin.f32 %v1110_v21, 0.0  ;;  %vm1126_vm9 = vcmp.gt.f32.partialorder %v1110_v21, 0.0 }
 0x267   :  { %v1065_v52 = vpop.f32.mrf.mxu0 }
 0x268   :  { %v4228_v17 = vpop.eup %4227  ;;  %v1066_v29 = vadd.f32 %v1065_v52, %v5309_v19  ;;  %v1166_v33 = vmul.f32 1.442695, %v1142_v1 }
 0x269   :  { %v3944_v40 = vadd.f32 -1.0, %v4228_v17 }
 0x26a   :  { %v1092_v10 = vmul.f32 %v1066_v29, %v5290_v47  ;;  %4229 = vpow2.f32 %v1166_v33 }
 0x26b   :  { %v1205_v34 = vsel %vm1125_vm8, %v1109_v43, %v3944_v40 }
 0x26c   :  { %v1111_v51 = vadd.f32 %v5462_v20, %v1092_v10  ;;  %v1217_v23 = vpack.c.bf16 %v1205_v34, %v1204_v37 }
 0x26e   :  { %v1143_v5 = vmin.f32 %v1111_v51, 0.0  ;;  %3964 = vmatmul.msk.bf16.gmra.mxu1 %vm7691_vm2, %v1217_v23  ;;  %vm1127_vm10 = vcmp.gt.f32.partialorder %v1111_v51, 0.0 }
 0x26f   :  { %v1068_v36 = vpop.f32.mrf.mxu0 }
 0x270   :  { %v1168_v54 = vmul.f32 1.442695, %v1143_v5  ;;  %v1069_v53 = vadd.f32 %v1068_v36, %v5298_v28  ;;  %v4230_v6 = vpop.eup %4229 }
 0x271   :  { %v3945_v0 = vadd.f32 -1.0, %v4230_v6 }
 0x272   :  { %4231 = vpow2.f32 %v1168_v54  ;;  %v1093_v19 = vmul.f32 %v1069_v53, %v5086_v15 }
 0x273   :  { %v1206_v63 = vsel %vm1126_vm9, %v1110_v21, %v3945_v0 }
 0x274   :  { %v1112_v39 = vadd.f32 %v5462_v20, %v1093_v19 }
 0x276   :  { %v1144_v35 = vmin.f32 %v1112_v39, 0.0  ;;  %vm1128_vm11 = vcmp.gt.f32.partialorder %v1112_v39, 0.0 }
 0x277   :  { %v1070_v45 = vpop.f32.mrf.mxu0 }
 0x278   :  { %v4232_v31 = vpop.eup %4231  ;;  %v1071_v26 = vadd.f32 %v1070_v45, %v5275_v14  ;;  %v1170_v27 = vmul.f32 1.442695, %v1144_v35 }
 0x279   :  { %v3946_v43 = vadd.f32 -1.0, %v4232_v31 }
 0x27a   :  { %v1094_v55 = vmul.f32 %v1071_v26, %v5138_v18  ;;  %4233 = vpow2.f32 %v1170_v27 }
 0x27b   :  { %v1207_v28 = vsel %vm1127_vm10, %v1111_v51, %v3946_v43 }
 0x27c   :  { %v1113_v62 = vadd.f32 %v5462_v20, %v1094_v55  ;;  %v1218_v7 = vpack.c.bf16 %v1207_v28, %v1206_v63 }
 0x27e   :  { %v1145_v8 = vmin.f32 %v1113_v62, 0.0  ;;  %3965 = vmatmul.msk.bf16.gmra.mxu1 %vm7691_vm2, %v1218_v7  ;;  %vm1129_vm12 = vcmp.gt.f32.partialorder %v1113_v62, 0.0 }
 0x27f   :  { %v1073_v25 = vpop.f32.mrf.mxu0 }
 0x280   :  { %v1172_v1 = vmul.f32 1.442695, %v1145_v8  ;;  %v1074_v52 = vadd.f32 %v1073_v25, %v5266_v12  ;;  %v4234_v59 = vpop.eup %4233 }
 0x281   :  { %v3947_v21 = vadd.f32 -1.0, %v4234_v59 }
 0x282   :  { %4235 = vpow2.f32 %v1172_v1  ;;  %v1095_v14 = vmul.f32 %v1074_v52, %v5199_v9 }
 0x283   :  { %v1208_v23 = vsel %vm1128_vm11, %v1112_v39, %v3947_v21 }
 0x284   :  { %v1114_v17 = vadd.f32 %v5462_v20, %v1095_v14 }
 0x286   :  { %v1146_v29 = vmin.f32 %v1114_v17, 0.0  ;;  %vm1130_vm13 = vcmp.gt.f32.partialorder %v1114_v17, 0.0 }
 0x287   :  { %v1075_v40 = vpop.f32.mrf.mxu0 }
 0x288   :  { %v4236_v33 = vpop.eup %4235  ;;  %v1076_v10 = vadd.f32 %v1075_v40, %v5242_v4  ;;  %v1174_v34 = vmul.f32 1.442695, %v1146_v29 }
 0x289   :  { %v3948_v37 = vadd.f32 -1.0, %v4236_v33 }
 0x28a   :  { %v1096_v51 = vmul.f32 %v1076_v10, %v5216_v38  ;;  %4237 = vpow2.f32 %v1174_v34 }
 0x28b   :  { %v1209_v12 = vsel %vm1129_vm12, %v1113_v62, %v3948_v37 }
 0x28c   :  { %v1115_v5 = vadd.f32 %v5462_v20, %v1096_v51  ;;  %v1219_v36 = vpack.c.bf16 %v1209_v12, %v1208_v23 }
 0x28e   :  { %v1147_v54 = vmin.f32 %v1115_v5, 0.0  ;;  %3966 = vmatmul.msk.bf16.gmra.mxu1 %vm7691_vm2, %v1219_v36  ;;  %vm1131_vm14 = vcmp.gt.f32.partialorder %v1115_v5, 0.0 }
 0x28f   :  { %v1078_v53 = vpop.f32.mrf.mxu0 }
 0x290   :  { %v1176_v19 = vmul.f32 1.442695, %v1147_v54  ;;  %v1079_v6 = vadd.f32 %v1078_v53, %v5225_v44  ;;  %v4238_v35 = vpop.eup %4237 }
 0x291   :  { %v3949_v39 = vadd.f32 -1.0, %v4238_v35 }
 0x292   :  { %4239 = vpow2.f32 %v1176_v19  ;;  %v1097_v4 = vmul.f32 %v1079_v6, %v5073_v30 }
 0x293   :  { %v1210_v28 = vsel %vm1130_vm13, %v1114_v17, %v3949_v39 }
 0x294   :  { %v1116_v0 = vadd.f32 %v5462_v20, %v1097_v4 }
 0x296   :  { %v1148_v45 = vmin.f32 %v1116_v0, 0.0  ;;  %vm1132_vm15 = vcmp.gt.f32.partialorder %v1116_v0, 0.0 }
 0x297   :  { %v1080_v31 = vpop.f32.mrf.mxu0 }
 0x298   :  { %v4240_v26 = vpop.eup %4239  ;;  %v1081_v43 = vadd.f32 %v1080_v31, %v5228_v60  ;;  %v1178_v55 = vmul.f32 1.442695, %v1148_v45 }
 0x299   :  { %v3950_v27 = vadd.f32 -1.0, %v4240_v26 }
 0x29a   :  { %v1098_v63 = vmul.f32 %v1081_v43, %v5128_v46  ;;  %4241 = vpow2.f32 %v1178_v55 }
 0x29b   :  { %v1211_v44 = vsel %vm1131_vm14, %v1115_v5, %v3950_v27 }
 0x29c   :  { %v1117_v62 = vadd.f32 %v5462_v20, %v1098_v63  ;;  %v1220_v7 = vpack.c.bf16 %v1211_v44, %v1210_v28 }
 0x29e   :  { %v1149_v8 = vmin.f32 %v1117_v62, 0.0  ;;  %3967 = vmatmul.msk.bf16.gmra.mxu1 %vm7691_vm2, %v1220_v7  ;;  %vm1133_vm0 = vcmp.gt.f32.partialorder %v1117_v62, 0.0 }
 0x2a0   :  { %v1180_v25 = vmul.f32 1.442695, %v1149_v8  ;;  %v4242_v1 = vpop.eup %4241 }
 0x2a1   :  { %v3951_v52 = vadd.f32 -1.0, %v4242_v1 }
 0x2a2   :  { %4243 = vpow2.f32 %v1180_v25 }
 0x2a3   :  { %v1212_v59 = vsel %vm1132_vm15, %v1116_v0, %v3951_v52 }
 0x2a8   :  { %v4244_v60 = vpop.eup %4243 }
 0x2a9   :  { %v3952_v14 = vadd.f32 -1.0, %v4244_v60 }
 0x2ab   :  { %v1213_v29 = vsel %vm1133_vm0, %v1117_v62, %v3952_v14 }
 0x2ac   :  { %v1221_v21 = vpack.c.bf16 %v1213_v29, %v1212_v59 }
 0x2ae   :  { %3968 = vmatmul.msk.bf16.gmra.mxu1 %vm7691_vm2, %v1221_v21 }
 0x2bb   :  { %v1273_v17 = vpop.f32.mrf.mxu1 }
 0x2bc   :  { %v5564_v29 = vmul.f32 %v1273_v17, %v5401_v50 }
 0x2c3   :  { %v1275_v20 = vpop.f32.mrf.mxu1 }
 0x2c4   :  { %v5559_v14 = vmul.f32 %v1275_v20, %v5395_v58 }
 0x2c6   :  { %v1329_v21 = vpack.c.bf16 %v5559_v14, %v5564_v29 }
 0x2cb   :  { %v1278_v40 = vpop.f32.mrf.mxu1 }
 0x2cc   :  { %v5556_v60 = vmul.f32 %v1278_v40, %v5387_v2 }
 0x2d3   :  { %v1280_v33 = vpop.f32.mrf.mxu1 }
 0x2d4   :  { %v5552_v1 = vmul.f32 %v1280_v33, %v5376_v49 }
 0x2d6   :  { %v1330_v59 = vpack.c.bf16 %v5552_v1, %v5556_v60 }
 0x2db   :  { %v1283_v10 = vpop.f32.mrf.mxu1 }
 0x2dc   :  { %v1317_v25 = vmul.f32 %v1283_v10, %v5360_v13 }
 0x2e3   :  { %v1285_v37 = vpop.f32.mrf.mxu1 }
 0x2e4   :  { %v5547_v7 = vmul.f32 %v1285_v37, %v5339_v32 }
 0x2e6   :  { %v1331_v52 = vpack.c.bf16 %v5547_v7, %v1317_v25 }
 0x2eb   :  { %v1288_v34 = vpop.f32.mrf.mxu1 }
 0x2ec   :  { %v5544_v62 = vmul.f32 %v1288_v34, %v5283_v11 }
 0x2f3   :  { %v1290_v51 = vpop.f32.mrf.mxu1 }
 0x2f4   :  { %v1320_v28 = vmul.f32 %v1290_v51, %v5303_v22 }
 0x2f6   :  { %v1332_v8 = vpack.c.bf16 %v1320_v28, %v5544_v62 }
 0x2fb   :  { %v1293_v23 = vpop.f32.mrf.mxu1 }
 0x2fc   :  { %v5538_v63 = vmul.f32 %v1293_v23, %v5149_v24 }
 0x303   :  { %v1295_v12 = vpop.f32.mrf.mxu1 }
 0x304   :  { %v5535_v27 = vmul.f32 %v1295_v12, %v5290_v47 }
 0x306   :  { %v1333_v44 = vpack.c.bf16 %v5535_v27, %v5538_v63 }
 0x30b   :  { %v1298_v5 = vpop.f32.mrf.mxu1 }
 0x30c   :  { %v1323_v43 = vmul.f32 %v1298_v5, %v5086_v15 }
 0x313   :  { %v1300_v36 = vpop.f32.mrf.mxu1 }
 0x314   :  { %v1324_v31 = vmul.f32 %v1300_v36, %v5138_v18 }
 0x316   :  { %v1334_v55 = vpack.c.bf16 %v1324_v31, %v1323_v43 }
 0x31b   :  { %v1303_v54 = vpop.f32.mrf.mxu1 }
 0x31c   :  { %v5528_v39 = vmul.f32 %v1303_v54, %v5199_v9 }
 0x323   :  { %v1305_v53 = vpop.f32.mrf.mxu1 }
 0x324   :  { %v5523_v0 = vmul.f32 %v1305_v53, %v5216_v38 }
 0x326   :  { %v1335_v26 = vpack.c.bf16 %v5523_v0, %v5528_v39 }
 0x32b   :  { %v1308_v19 = vpop.f32.mrf.mxu1 }
 0x32c   :  { %v5517_v4 = vmul.f32 %v1308_v19, %v5073_v30 }
 0x333   :  { %v1310_v6 = vpop.f32.mrf.mxu1 }
 0x334   :  { %v5520_v35 = vmul.f32 %v1310_v6, %v5128_v46 }
 0x336   :  { %v1336_v45 = vpack.c.bf16 %v5520_v35, %v5517_v4 }
 0x338   :  { %1337 = vmatpush.bf16.msrb.mxu2 %v1336_v45 }
 0x33c   :  { %1338 = vmatpush.bf16.msrb.mxu2 %v1335_v26 }
 0x340   :  { %1339 = vmatpush.bf16.msrb.mxu2 %v1334_v55 }
 0x344   :  { %1340 = vmatpush.bf16.msrb.mxu2 %v1333_v44 }
 0x348   :  { %1341 = vmatpush.bf16.msrb.mxu2 %v1332_v8 }
 0x34c   :  { %1342 = vmatpush.bf16.msrb.mxu2 %v1331_v52 }
 0x350   :  { %1343 = vmatpush.bf16.msrb.mxu2 %v1330_v59 }
 0x354   :  { %1344 = vmatpush.bf16.msrb.mxu2 %v1329_v21 }
 0x357   :  { %1345 = vmatmul.bf16.vlgmr.msrb.gmra.mxu2 %v5408_v57 }
 0x367   :  { %1350 = vmatmul.bf16.gmra.mxu2 %v5414_v61 }
 0x377   :  { %1355 = vmatmul.bf16.gmra.mxu2 %v5420_v56 }
 0x387   :  { %1360 = vmatmul.bf16.gmra.mxu2 %v5426_v42 }
 0x397   :  { %1365 = vmatmul.bf16.gmra.mxu2 %v5432_v16 }
 0x3a7   :  { %1370 = vmatmul.bf16.gmra.mxu2 %v5438_v48 }
 0x3b7   :  { %1375 = vmatmul.bf16.gmra.mxu2 %v5444_v41  ;;  %v5587_v41 = vld [vmem:[%s7644_s6] ss:$0 sm:$0xff]  ;;  %s4459_s6 = smov 128  }
 0x3c7   :  { %1380 = vmatmul.bf16.gmra.mxu2 %v5453_v3 }
 0x3da   :  { %v5576_v17 = vpop.f32.mrf.mxu2 }
 0x3e2   :  { %v1348_v20 = vpop.f32.mrf.mxu2 }
 0x3ea   :  { %v5578_v40 = vpop.f32.mrf.mxu2 }
 0x3f2   :  { %v5580_v57 = vpop.f32.mrf.mxu2 }
 0x3fa   :  { %v1356_v61 = vpop.f32.mrf.mxu2 }
 0x402   :  { %v1358_v33 = vpop.f32.mrf.mxu2 }
 0x40a   :  { %v5582_v56 = vpop.f32.mrf.mxu2 }
 0x412   :  { %v1363_v42 = vpop.f32.mrf.mxu2 }
 0x413   :  { %v1364_v53 = vadd.f32 %v1363_v42, %v1320_v28 }
 0x415   :  { %v1393_v55 = vmul.f32 %v1364_v53, %v5303_v22 }
 0x41a   :  { %v1366_v10 = vpop.f32.mrf.mxu2 }
 0x41b   :  { %v1367_v21 = vadd.f32 %v1366_v10, %v5538_v63 }
 0x422   :  { %v1368_v16 = vpop.f32.mrf.mxu2 }
 0x42a   :  { %v1371_v37 = vpop.f32.mrf.mxu2 }
 0x42b   :  { %v1372_v48 = vadd.f32 %v1371_v37, %v1323_v43 }
 0x42d   :  { %v1396_v3 = vmul.f32 %v1372_v48, %v5086_v15  ;;  %v1357_v48 = vadd.f32 %v1356_v61, %v1317_v25  ;;  %v1359_v25 = vadd.f32 %v1358_v33, %v5547_v7 }
 0x42f   :  { %v1415_v34 = vadd.f32 %v5587_v41, %v1396_v3  ;;  %v1390_v63 = vmul.f32 %v1357_v48, %v5360_v13 }
 0x431   :  { %v1447_v51 = vmin.f32 %v1415_v34, 0.0  ;;  %vm1431_vm1 = vcmp.gt.f32.partialorder %v1415_v34, 0.0 }
 0x432   :  { %v1373_v23 = vpop.f32.mrf.mxu2 }
 0x433   :  { %v1473_v12 = vmul.f32 1.442695, %v1447_v51  ;;  %v1374_v5 = vadd.f32 %v1373_v23, %v1324_v31  ;;  %v5599_v31 = vld [vmem:[%s7645_s7] ss:$0 sm:$0xff] }
 0x435   :  { %v1397_v36 = vmul.f32 %v1374_v5, %v5138_v18  ;;  %4245 = vpow2.f32 %v1473_v12  ;;  %v1394_v5 = vmul.f32 %v1367_v21, %v5149_v24 }
 0x437   :  { %v1416_v54 = vadd.f32 %v5587_v41, %v1397_v36 }
 0x439   :  { %v1448_v19 = vmin.f32 %v1416_v54, 0.0  ;;  %vm1432_vm3 = vcmp.gt.f32.partialorder %v1416_v54, 0.0 }
 0x43a   :  { %v1376_v6 = vpop.f32.mrf.mxu2 }
 0x43b   :  { %v4246_v45 = vpop.eup %4245  ;;  %v1475_v26 = vmul.f32 1.442695, %v1448_v19  ;;  %v1377_v43 = vadd.f32 %v1376_v6, %v5528_v39  ;;  %v5607_v39 = vadd.f32 %v5587_v41, %v1393_v55  ;;  %v5623_v6 = vadd.f32 %v5587_v41, %v1394_v5 }
 0x43c   :  { %v3979_v44 = vadd.f32 -1.0, %v4246_v45  ;;  %v1369_v45 = vadd.f32 %v1368_v16, %v5535_v27  ;;  %v1349_v55 = vadd.f32 %v1348_v20, %v5559_v14 }
 0x43d   :  { %v1398_v8 = vmul.f32 %v1377_v43, %v5199_v9  ;;  %4247 = vpow2.f32 %v1475_v26  ;;  %v1444_v12 = vmin.f32 %v5607_v39, 0.0  ;;  %v1445_v21 = vmin.f32 %v5623_v6, 0.0 }
 0x43e   :  { %v5601_v52 = vsel %vm1431_vm1, %v1415_v34, %v3979_v44  ;;  %v1391_v44 = vmul.f32 %v1359_v25, %v5339_v32  ;;  %v1395_v27 = vmul.f32 %v1369_v45, %v5290_v47  ;;  %v1387_v14 = vmul.f32 %v1349_v55, %v5395_v58 }
 0x43f   :  { %7844 = vst [vmem:[#allocation44_spill] sm:$0xff] %v5601_v52  ;;  %v1417_v28 = vadd.f32 %v5587_v41, %v1398_v8  ;;  %v1531_v59 = vmul.f32 %v5599_v31, %v5601_v52  ;;  %v1467_v19 = vmul.f32 1.442695, %v1444_v12  ;;  %v1362_v12 = vadd.f32 %v5582_v56, %v5544_v62  ;;  %v5850_v52 = vld [vmem:[%s7640_s2 + $0x8] sm:$0xff] }
 0x440   :  { %v5641_v48 = vadd.f32 %v5587_v41, %v1391_v44  ;;  %vm1428_vm6 = vcmp.gt.f32.partialorder %v5607_v39, 0.0  ;;  %vm1429_vm8 = vcmp.gt.f32.partialorder %v5623_v6, 0.0  ;;  %7877 = vst [vmem:[#allocation37_spill] sm:$0xff] %v5850_v52 }
 0x441   :  { %v1449_v42 = vmin.f32 %v1417_v28, 0.0  ;;  %v1567_v37 = vsel %vm7691_vm2, %v1531_v59, 0.0  ;;  %vm1433_vm4 = vcmp.gt.f32.partialorder %v1417_v28, 0.0 }
 0x442   :  { %v1378_v3 = vpop.f32.mrf.mxu2  ;;  %1568 = vadd.xlane.f32.xlu0 %v1567_v37  ;;  %vm1426_vm12 = vcmp.gt.f32.partialorder %v5641_v48, 0.0 }
 0x443   :  { %v4248_v51 = vpop.eup %4247  ;;  %v1477_v23 = vmul.f32 1.442695, %v1449_v42  ;;  %v1379_v34 = vadd.f32 %v1378_v3, %v5523_v0 }
 0x444   :  { %v3980_v36 = vadd.f32 -1.0, %v4248_v51  ;;  %v1352_v51 = vadd.f32 %v5578_v40, %v5556_v60  ;;  %v1442_v60 = vmin.f32 %v5641_v48, 0.0 }
 0x445   :  { %v1399_v53 = vmul.f32 %v1379_v34, %v5216_v38  ;;  %4249 = vpow2.f32 %v1477_v23  ;;  %v1469_v23 = vmul.f32 1.442695, %v1445_v21  ;;  %v5649_v34 = vadd.f32 %v5587_v41, %v1395_v27 }
 0x446   :  { %v5616_v10 = vsel %vm1432_vm3, %v1416_v54, %v3980_v36  ;;  %v5629_v54 = vadd.f32 %v5587_v41, %v1390_v63  ;;  %4251 = vpow2.f32 %v1467_v19  ;;  %v1388_v45 = vmul.f32 %v1352_v51, %v5387_v2 }
 0x447   :  { %7845 = vst [vmem:[#allocation24_spill] sm:$0xff] %v5616_v10  ;;  %v1418_v61 = vadd.f32 %v5587_v41, %v1399_v53  ;;  %v1532_v0 = vmul.f32 %v5599_v31, %v5616_v10  ;;  %v5655_v53 = vadd.f32 %v5587_v41, %v1387_v14  ;;  %v1446_v62 = vmin.f32 %v5649_v34, 0.0 }
 0x448   :  { %v1441_v20 = vmin.f32 %v5629_v54, 0.0  ;;  %v1354_v21 = vadd.f32 %v5580_v57, %v5552_v1  ;;  %vm1425_vm9 = vcmp.gt.f32.partialorder %v5629_v54, 0.0  ;;  %vm1430_vm11 = vcmp.gt.f32.partialorder %v5649_v34, 0.0 }
 0x449   :  { %v1450_v26 = vmin.f32 %v1418_v61, 0.0  ;;  %v1570_v43 = vsel %vm7691_vm2, %v1532_v0, 0.0  ;;  %vm1434_vm5 = vcmp.gt.f32.partialorder %v1418_v61, 0.0  ;;  %v1438_v55 = vmin.f32 %v5655_v53, 0.0 }
 0x44a   :  { %v1381_v7 = vpop.f32.mrf.mxu2  ;;  %1571 = vadd.xlane.f32.xlu2 %v1570_v43  ;;  %v1461_v63 = vmul.f32 1.442695, %v1441_v20  ;;  %v1471_v27 = vmul.f32 1.442695, %v1446_v62  ;;  %v1389_v57 = vmul.f32 %v1354_v21, %v5376_v49  ;;  %vm1422_vm13 = vcmp.gt.f32.partialorder %v5655_v53, 0.0 }
 0x44b   :  { %v4250_v33 = vpop.eup %4249  ;;  %v1479_v8 = vmul.f32 1.442695, %v1450_v26  ;;  %v1382_v59 = vadd.f32 %v1381_v7, %v5517_v4  ;;  %v1392_v26 = vmul.f32 %v1362_v12, %v5283_v11 }
 0x44c   :  { %v3981_v16 = vadd.f32 -1.0, %v4250_v33  ;;  %v4252_v36 = vpop.eup %4251 }
 0x44d   :  { %v1400_v42 = vmul.f32 %v1382_v59, %v5073_v30  ;;  %4253 = vpow2.f32 %v1479_v8  ;;  %v3976_v33 = vadd.f32 -1.0, %v4252_v36  ;;  %v1463_v8 = vmul.f32 1.442695, %v1442_v60 }
 0x44e   :  { %v5638_v37 = vsel %vm1433_vm4, %v1417_v28, %v3981_v16  ;;  %4255 = vpow2.f32 %v1469_v23  ;;  %v5670_v59 = vadd.f32 %v5587_v41, %v1388_v45  ;;  %v5675_v16 = vadd.f32 %v5587_v41, %v1392_v26 }
 0x44f   :  { %7846 = vst [vmem:[#allocation28_spill] sm:$0xff] %v5638_v37  ;;  %v1419_v4 = vadd.f32 %v5587_v41, %v1400_v42  ;;  %v1533_v3 = vmul.f32 %v5599_v31, %v5638_v37  ;;  %v5680_v20 = vsel %vm1428_vm6, %v5607_v39, %v3976_v33  ;;  %v1347_v60 = vadd.f32 %v5576_v17, %v5564_v29 }
 0x450   :  { %7848 = vst [vmem:[#allocation29_spill] sm:$0xff] %v5680_v20  ;;  %v1439_v1 = vmin.f32 %v5670_v59, 0.0  ;;  %v1528_v36 = vmul.f32 %v5599_v31, %v5680_v20  ;;  %vm1427_vm14 = vcmp.gt.f32.partialorder %v5675_v16, 0.0  ;;  %vm1423_vm15 = vcmp.gt.f32.partialorder %v5670_v59, 0.0 }
 0x451   :  { %v1451_v28 = vmin.f32 %v1419_v4, 0.0  ;;  %v1573_v5 = vsel %vm7691_vm2, %v1533_v3, 0.0  ;;  %v1455_v3 = vmul.f32 1.442695, %v1438_v55  ;;  %vm1435_vm7 = vcmp.gt.f32.partialorder %v1419_v4, 0.0 }
 0x452   :  { %v1383_v25 = vpop.f32.mrf.mxu2  ;;  %1574 = vadd.xlane.f32.xlu1 %v1573_v5  ;;  %v1443_v5 = vmin.f32 %v5675_v16, 0.0  ;;  %v1386_v33 = vmul.f32 %v1347_v60, %v5401_v50  ;;  %vm7738_vm4 = vcmp.gt.f32.partialorder %v5850_v52, 0.0 }
 0x453   :  { %v4254_v0 = vpop.eup %4253  ;;  %v1481_v40 = vmul.f32 1.442695, %v1451_v28  ;;  %v1384_v19 = vadd.f32 %v1383_v25, %v5520_v35 }
 0x454   :  { %v3982_v56 = vadd.f32 -1.0, %v4254_v0  ;;  %v4256_v14 = vpop.eup %4255  ;;  %v1465_v62 = vmul.f32 1.442695, %v1443_v5 }
 0x455   :  { %v1401_v43 = vmul.f32 %v1384_v19, %v5128_v46  ;;  %4257 = vpow2.f32 %v1481_v40  ;;  %v1457_v40 = vmul.f32 1.442695, %v1439_v1  ;;  %v5694_v19 = vadd.f32 %v5587_v41, %v1389_v57 }
 0x456   :  { %v5664_v7 = vsel %vm1434_vm5, %v1418_v61, %v3982_v56  ;;  %4259 = vpow2.f32 %v1461_v63  ;;  %v3977_v63 = vadd.f32 -1.0, %v4256_v14 }
 0x457   :  { %7847 = vst [vmem:[#allocation43_spill] sm:$0xff] %v5664_v7  ;;  %v1420_v35 = vadd.f32 %v5587_v41, %v1401_v43  ;;  %v1534_v44 = vmul.f32 %v5599_v31, %v5664_v7  ;;  %4261 = vpow2.f32 %v1463_v8  ;;  %vm1424_vm0 = vcmp.gt.f32.partialorder %v5694_v19, 0.0 }
 0x458   :  { %4263 = vpow2.f32 %v1471_v27  ;;  %v5700_v43 = vsel %vm1429_vm8, %v5623_v6, %v3977_v63 }
 0x459   :  { %v1452_v61 = vmin.f32 %v1420_v35, 0.0  ;;  %v1576_v42 = vsel %vm7691_vm2, %v1534_v44, 0.0  ;;  %7850 = vst [vmem:[#allocation42_spill] sm:$0xff] %v5700_v43  ;;  %v1440_v44 = vmin.f32 %v5694_v19, 0.0  ;;  %vm1436_vm10 = vcmp.gt.f32.partialorder %v1420_v35, 0.0 }
 0x45a   :  { %1577 = vadd.xlane.f32.xlu0 %v1576_v42  ;;  %v1529_v21 = vmul.f32 %v5599_v31, %v5700_v43 }
 0x45b   :  { %v4258_v51 = vpop.eup %4257  ;;  %v1483_v23 = vmul.f32 1.442695, %v1452_v61 }
 0x45c   :  { %v4260_v12 = vpop.eup %4259  ;;  %v3983_v28 = vadd.f32 -1.0, %v4258_v51  ;;  %v1459_v51 = vmul.f32 1.442695, %v1440_v44 }
 0x45d   :  { %4265 = vpow2.f32 %v1483_v23  ;;  %v3973_v0 = vadd.f32 -1.0, %v4260_v12  ;;  %v4262_v45 = vpop.eup %4261  ;;  %v1561_v12 = vsel %vm7691_vm2, %v1529_v21, 0.0 }
 0x45e   :  { %v5687_v39 = vsel %vm1435_vm7, %v1419_v4, %v3983_v28  ;;  %4267 = vpow2.f32 %v1455_v3  ;;  %v1558_v4 = vsel %vm7691_vm2, %v1528_v36, 0.0  ;;  %v4264_v26 = vpop.eup %4263  ;;  %v1405_v3 = vadd.f32 %v5587_v41, %v1386_v33 }
 0x45f   :  { %7849 = vst [vmem:[#allocation32_spill] sm:$0xff] %v5687_v39  ;;  %v1535_v25 = vmul.f32 %v5599_v31, %v5687_v39  ;;  %v5704_v17 = vsel %vm1425_vm9, %v5629_v54, %v3973_v0  ;;  %4269 = vpow2.f32 %v1457_v40  ;;  %v3978_v61 = vadd.f32 -1.0, %v4264_v26  ;;  %v5838_v39 = vld [vmem:[%s7640_s2] sm:$0xff] }
 0x460   :  { %7851 = vst [vmem:[#allocation41_spill] sm:$0xff] %v5704_v17  ;;  %4271 = vpow2.f32 %v1465_v62  ;;  %v1525_v27 = vmul.f32 %v5599_v31, %v5704_v17  ;;  %v3974_v54 = vadd.f32 -1.0, %v4262_v45  ;;  %v1437_v36 = vmin.f32 %v1405_v3, 0.0 }
 0x461   :  { %v1579_v56 = vsel %vm7691_vm2, %v1535_v25, 0.0  ;;  %v5723_v57 = vsel %vm1430_vm11, %v5649_v34, %v3978_v61  ;;  %4273 = vpow2.f32 %v1459_v51  ;;  %vm1421_vm1 = vcmp.gt.f32.partialorder %v1405_v3, 0.0  ;;  %7876 = vst [vmem:[#allocation38_spill] sm:$0xff] %v5838_v39 }
 0x462   :  { %1580 = vadd.xlane.f32.xlu2 %v1579_v56  ;;  %1559 = vadd.xlane.f32.xlu0 %v1558_v4  ;;  %v1549_v1 = vsel %vm7691_vm2, %v1525_v27, 0.0  ;;  %7853 = vst [vmem:[#allocation27_spill] sm:$0xff] %v5723_v57  ;;  %v5726_v28 = vsel %vm1426_vm12, %v5641_v48, %v3974_v54  ;;  %v1530_v63 = vmul.f32 %v5599_v31, %v5723_v57  ;;  %v1453_v60 = vmul.f32 1.442695, %v1437_v36 }
 0x463   :  { %v4266_v29 = vpop.eup %4265  ;;  %7854 = vst [vmem:[#allocation40_spill] sm:$0xff] %v5726_v28  ;;  %v1526_v25 = vmul.f32 %v5599_v31, %v5726_v28  ;;  %vm7737_vm3 = vcmp.gt.f32.partialorder %v5838_v39, 0.0 }
 0x464   :  { %v4268_v55 = vpop.eup %4267  ;;  %v3984_v8 = vadd.f32 -1.0, %v4266_v29  ;;  %v1564_v40 = vsel %vm7691_vm2, %v1530_v63, 0.0  ;;  %4275 = vpow2.f32 %v1453_v60 }
 0x465   :  { %v3970_v14 = vadd.f32 -1.0, %v4268_v55  ;;  %v1552_v45 = vsel %vm7691_vm2, %v1526_v25, 0.0 }
 0x466   :  { %v5710_v6 = vsel %vm1436_vm10, %v1420_v35, %v3984_v8  ;;  %v4270_v35 = vpop.eup %4269 }
 0x467   :  { %7852 = vst [vmem:[#allocation23_spill] sm:$0xff] %v5710_v6  ;;  %v1536_v42 = vmul.f32 %v5599_v31, %v5710_v6  ;;  %v4272_v41 = vpop.eup %4271  ;;  %v5730_v5 = vsel %vm1422_vm13, %v5655_v53, %v3970_v14  ;;  %v3971_v0 = vadd.f32 -1.0, %v4270_v35  ;;  %v7875_v6 = vld [vmem:[#allocation7_spill] sm:$0xff] }
 0x468   :  { %7855 = vst [vmem:[#allocation39_spill] sm:$0xff] %v5730_v5  ;;  %v1522_v34 = vmul.f32 %v5599_v31, %v5730_v5  ;;  %v3975_v48 = vadd.f32 -1.0, %v4272_v41  ;;  %v4274_v4 = vpop.eup %4273 }
 0x469   :  { %v1582_v23 = vsel %vm7691_vm2, %v1536_v42, 0.0  ;;  %v5747_v56 = vsel %vm1423_vm15, %v5670_v59, %v3971_v0  ;;  %v3972_v55 = vadd.f32 -1.0, %v4274_v4 }
 0x46a   :  { %1583 = vadd.xlane.f32.xlu1 %v1582_v23  ;;  %1562 = vadd.xlane.f32.xlu2 %v1561_v12  ;;  %v1540_v53 = vsel %vm7691_vm2, %v1522_v34, 0.0  ;;  %v5744_v62 = vsel %vm1427_vm14, %v5675_v16, %v3975_v48  ;;  %7857 = vst [vmem:[#allocation21_spill] sm:$0xff] %v5747_v56  ;;  %v1523_v29 = vmul.f32 %v5599_v31, %v5747_v56  ;;  %v4276_v16 = vpop.eup %4275  ;;  %v6071_v56 = vld [vmem:[%s7648_s10 + $0x10] sm:$0xff] }
 0x46b   :  { %1550 = vadd.xlane.f32.xlu0 %v1549_v1  ;;  %7856 = vst [vmem:[#allocation30_spill] sm:$0xff] %v5744_v62  ;;  %v1527_v26 = vmul.f32 %v5599_v31, %v5744_v62  ;;  %v5757_v59 = vsel %vm1424_vm0, %v5694_v19, %v3972_v55  ;;  %v3969_v21 = vadd.f32 -1.0, %v4276_v16 }
 0x46c   :  { %v1543_v44 = vsel %vm7691_vm2, %v1523_v29, 0.0  ;;  %7858 = vst [vmem:[#allocation25_spill] sm:$0xff] %v5757_v59  ;;  %v1524_v8 = vmul.f32 %v5599_v31, %v5757_v59 }
 0x46d   :  { %v1555_v33 = vsel %vm7691_vm2, %v1527_v26, 0.0  ;;  %v5762_v61 = vsel %vm1421_vm1, %v1405_v3, %v3969_v21 }
 0x46e   :  { %v1546_v27 = vsel %vm7691_vm2, %v1524_v8, 0.0  ;;  %7859 = vst [vmem:[#allocation26_spill] sm:$0xff] %v5762_v61  ;;  %v1521_v54 = vmul.f32 %v5599_v31, %v5762_v61 }
 0x470   :  { %v1537_v42 = vsel %vm7691_vm2, %v1521_v54, 0.0 }
 0x472   :  { %1565 = vadd.xlane.f32.xlu1 %v1564_v40  ;;  %1553 = vadd.xlane.f32.xlu2 %v1552_v45 }
 0x473   :  { %1541 = vadd.xlane.f32.xlu0 %v1540_v53 }
 0x47a   :  { %1556 = vadd.xlane.f32.xlu1 %v1555_v33  ;;  %1544 = vadd.xlane.f32.xlu2 %v1543_v44 }
 0x482   :  { %1547 = vadd.xlane.f32.xlu1 %v1546_v27 }
 0x48a   :  { %1538 = vadd.xlane.f32.xlu1 %v1537_v42 }
 0x4b5   :  { %v1569_v19 = vpop.xlane.xlu0 %1568 }
 0x4b6   :  { %v5787_v48 = vmul.f32 %v1569_v19, %v5086_v15  ;;  %v7861_v19 = vld [vmem:[#allocation18_spill] sm:$0xff] }
 0x4bd   :  { %v1572_v14 = vpop.xlane.xlu2 %1571 }
 0x4be   :  { %v5783_v34 = vmul.f32 %v1572_v14, %v5138_v18  ;;  %v7860_v14 = vld [vmem:[#allocation16_spill] sm:$0xff] }
 0x4c5   :  { %v1575_v51 = vpop.xlane.xlu1 %1574 }
 0x4c6   :  { %v5779_v63 = vmul.f32 %v1575_v51, %v5199_v9  ;;  %v7862_v51 = vld [vmem:[#allocation14_spill] sm:$0xff] }
 0x4cd   :  { %v1578_v12 = vpop.xlane.xlu0 %1577 }
 0x4ce   :  { %v5775_v31 = vmul.f32 %v1578_v12, %v5216_v38  ;;  %v7864_v12 = vld [vmem:[#allocation19_spill] sm:$0xff] }
 0x4d5   :  { %v1581_v23 = vpop.xlane.xlu2 %1580  ;;  %v1560_v36 = vpop.xlane.xlu0 %1559 }
 0x4d6   :  { %v5771_v41 = vmul.f32 %v1581_v23, %v5073_v30  ;;  %v5799_v4 = vmul.f32 %v1560_v36, %v5303_v22  ;;  %v7863_v23 = vld [vmem:[#allocation20_spill] sm:$0xff]  ;;  %v7867_v36 = vld [vmem:[#allocation11_spill] sm:$0xff] }
 0x4dd   :  { %v1584_v35 = vpop.xlane.xlu1 %1583  ;;  %v1563_v3 = vpop.xlane.xlu2 %1562 }
 0x4de   :  { %v5768_v1 = vmul.f32 %v1584_v35, %v5128_v46  ;;  %v5795_v40 = vmul.f32 %v1563_v3, %v5149_v24  ;;  %v1551_v45 = vpop.xlane.xlu0 %1550  ;;  %v7865_v35 = vld [vmem:[#allocation13_spill] sm:$0xff]  ;;  %v7866_v3 = vld [vmem:[#allocation10_spill] sm:$0xff] }
 0x4df   :  { %v5811_v55 = vmul.f32 %v1551_v45, %v5360_v13  ;;  %v7870_v45 = vld [vmem:[#allocation6_spill] sm:$0xff] }
 0x4e0   :  { %1601 = vmatpush.msra.mxu3 %v5768_v1 }
 0x4e2   :  { %1602 = vmatpush.msra.mxu3 %v5771_v41 }
 0x4e4   :  { %1603 = vmatpush.msra.mxu3 %v5775_v31 }
 0x4e5   :  { %v1566_v25 = vpop.xlane.xlu1 %1565  ;;  %v1554_v60 = vpop.xlane.xlu2 %1553 }
 0x4e6   :  { %1604 = vmatpush.msra.mxu3 %v5779_v63  ;;  %v5791_v0 = vmul.f32 %v1566_v25, %v5290_v47  ;;  %v5807_v29 = vmul.f32 %v1554_v60, %v5339_v32  ;;  %v1542_v8 = vpop.xlane.xlu0 %1541  ;;  %v7868_v25 = vld [vmem:[#allocation9_spill] sm:$0xff] }
 0x4e7   :  { %v1586_v27 = vmul.f32 %v1542_v8, %v5395_v58  ;;  %v7869_v60 = vld [vmem:[#allocation17_spill] sm:$0xff]  ;;  %v7873_v8 = vld [vmem:[#allocation15_spill] sm:$0xff] }
 0x4e8   :  { %1605 = vmatpush.msra.mxu3 %v5783_v34 }
 0x4ea   :  { %1606 = vmatpush.msra.mxu3 %v5787_v48 }
 0x4ec   :  { %1607 = vmatpush.msra.mxu3 %v5791_v0 }
 0x4ed   :  { %v1557_v53 = vpop.xlane.xlu1 %1556  ;;  %v1545_v33 = vpop.xlane.xlu2 %1544 }
 0x4ee   :  { %1608 = vmatpush.msra.mxu3 %v5795_v40  ;;  %v5803_v26 = vmul.f32 %v1557_v53, %v5283_v11  ;;  %v1587_v21 = vmul.f32 %v1545_v33, %v5387_v2  ;;  %v7871_v53 = vld [vmem:[#allocation8_spill] sm:$0xff] }
 0x4ef   :  { %v7872_v33 = vld [vmem:[#allocation12_spill] sm:$0xff] }
 0x4f0   :  { %1609 = vmatpush.msra.mxu3 %v5799_v4 }
 0x4f2   :  { %1610 = vmatpush.msra.mxu3 %v5803_v26 }
 0x4f4   :  { %1611 = vmatpush.msra.mxu3 %v5807_v29 }
 0x4f5   :  { %v1548_v44 = vpop.xlane.xlu1 %1547 }
 0x4f6   :  { %v1588_v16 = vmul.f32 %v1548_v44, %v5376_v49  ;;  %1612 = vmatpush.msra.mxu3 %v5811_v55  ;;  %v4455_v44 = vmov 0  }
 0x4f7   :  { %4134 = vset.pattern.permute.xlu2 %v4455_v44  ;;  %4135 = vset.pattern.permute.xlu0 %v4455_v44 }
 0x4f8   :  { %1613 = vmatpush.msra.mxu3 %v1588_v16  ;;  %4136 = vset.pattern.permute.xlu1 %v4455_v44 }
 0x4fa   :  { %1614 = vmatpush.msra.mxu3 %v1587_v21 }
 0x4fc   :  { %1615 = vmatpush.msra.mxu3 %v1586_v27 }
 0x4fd   :  { %v1539_v54 = vpop.xlane.xlu1 %1538 }
 0x4fe   :  { %v1585_v42 = vmul.f32 %v1539_v54, %v5401_v50  ;;  %v7874_v54 = vld [vmem:[#allocation5_spill] sm:$0xff] }
 0x500   :  { %1616 = vmatpush.msra.mxu3 %v1585_v42 }
 0x501   :  { %1617 = vmatmul.f32.vlgmr.msra.gmra.mxu3 %v7860_v14 }
 0x509   :  { %1620 = vmatmul.f32.gmra.mxu3 %v7861_v19 }
 0x511   :  { %1623 = vmatmul.f32.gmra.mxu3 %v7862_v51  ;;  %v6121_v51 = vld [vmem:[%s7648_s10 + $0x60] sm:$0xff] }
 0x519   :  { %1626 = vmatmul.f32.gmra.mxu3 %v7863_v23 }
 0x521   :  { %1629 = vmatmul.f32.gmra.mxu3 %v7864_v12 }
 0x529   :  { %1632 = vmatmul.f32.gmra.mxu3 %v7865_v35 }
 0x531   :  { %1635 = vmatmul.f32.gmra.mxu3 %v7866_v3  ;;  %v6110_v3 = vld [vmem:[%s7648_s10 + $0x68] sm:$0xff] }
 0x539   :  { %1638 = vmatmul.f32.gmra.mxu3 %v7867_v36  ;;  %v6092_v36 = vld [vmem:[%s7648_s10 + $0x40] sm:$0xff] }
 0x541   :  { %1641 = vmatmul.f32.gmra.mxu3 %v7868_v25 }
 0x549   :  { %1644 = vmatmul.f32.gmra.mxu3 %v7869_v60  ;;  %v6081_v60 = vld [vmem:[%s7648_s10 + $0x48] sm:$0xff] }
 0x551   :  { %1647 = vmatmul.f32.gmra.mxu3 %v7870_v45 }
 0x559   :  { %1650 = vmatmul.f32.gmra.mxu3 %v7871_v53 }
 0x561   :  { %1653 = vmatmul.f32.gmra.mxu3 %v7872_v33 }
 0x569   :  { %1656 = vmatmul.f32.gmra.mxu3 %v7873_v8  ;;  %v6076_v8 = vld [vmem:[%s7648_s10 + $0x30] sm:$0xff] }
 0x571   :  { %1659 = vmatmul.f32.gmra.mxu3 %v7874_v54  ;;  %v6066_v54 = vld [vmem:[%s7648_s10 + $0x28] sm:$0xff] }
 0x579   :  { %1662 = vmatmul.f32.gmra.mxu3 %v7875_v6 }
 0x584   :  { %v1618_v37 = vpop.f32.mrf.mxu3 }
 0x585   :  { %v1619_v7 = vadd.f32 %v1618_v37, %v1585_v42 }
 0x587   :  { %v5842_v10 = vmul.f32 %v1619_v7, %v5401_v50  ;;  %v5862_v7 = vld [vmem:[%s7640_s2 + $0x10] sm:$0xff] }
 0x588   :  { %7878 = vst [vmem:[#allocation22_spill] sm:$0xff] %v5862_v7  ;;  %vm7739_vm5 = vcmp.gt.f32.partialorder %v5862_v7, 0.0 }
 0x589   :  { %v1714_v44 = vsel %vm7737_vm3, %v5842_v10, -1e+30 }
 0x58a   :  { %1732 = vperm.xlu2 %4134, %v1714_v44  }
 0x58c   :  { %v1621_v57 = vpop.f32.mrf.mxu3 }
 0x58d   :  { %v1622_v43 = vadd.f32 %v1621_v57, %v1586_v27 }
 0x58f   :  { %v5854_v37 = vmul.f32 %v1622_v43, %v5395_v58  ;;  %v5874_v43 = vld [vmem:[%s7640_s2 + $0x18] sm:$0xff] }
 0x590   :  { %7879 = vst [vmem:[#allocation33_spill] sm:$0xff] %v5874_v43  ;;  %vm7740_vm6 = vcmp.gt.f32.partialorder %v5874_v43, 0.0 }
 0x591   :  { %v1715_v50 = vsel %vm7738_vm4, %v5854_v37, -1e+30 }
 0x592   :  { %1737 = vperm.xlu0 %4135, %v1715_v50  }
 0x594   :  { %v1624_v42 = vpop.f32.mrf.mxu3 }
 0x595   :  { %v1625_v44 = vadd.f32 %v1624_v42, %v1587_v21  ;;  %v5886_v42 = vld [vmem:[%s7640_s2 + $0x20] sm:$0xff] }
 0x596   :  { %7880 = vst [vmem:[#allocation36_spill] sm:$0xff] %v5886_v42  ;;  %vm7754_vm7 = vcmp.gt.f32.partialorder %v5886_v42, 0.0 }
 0x597   :  { %v5866_v57 = vmul.f32 %v1625_v44, %v5387_v2 }
 0x599   :  { %v1716_v58 = vsel %vm7739_vm5, %v5866_v57, -1e+30 }
 0x59a   :  { %1742 = vperm.xlu1 %4136, %v1716_v58  }
 0x59c   :  { %v1627_v27 = vpop.f32.mrf.mxu3 }
 0x59d   :  { %v1628_v50 = vadd.f32 %v1627_v27, %v1588_v16  ;;  %v5899_v27 = vld [vmem:[%s7640_s2 + $0x28] sm:$0xff] }
 0x59e   :  { %7881 = vst [vmem:[#allocation35_spill] sm:$0xff] %v5899_v27  ;;  %vm1687_vm8 = vcmp.gt.f32.partialorder %v5899_v27, 0.0 }
 0x59f   :  { %v5878_v21 = vmul.f32 %v1628_v50, %v5376_v49 }
 0x5a1   :  { %v1717_v2 = vsel %vm7740_vm6, %v5878_v21, -1e+30 }
 0x5a2   :  { %1747 = vperm.xlu2 %4134, %v1717_v2  }
 0x5a4   :  { %v1630_v44 = vpop.f32.mrf.mxu3 }
 0x5a5   :  { %v1631_v58 = vadd.f32 %v1630_v44, %v5811_v55  ;;  %v5912_v44 = vld [vmem:[%s7640_s2 + $0x30] sm:$0xff] }
 0x5a6   :  { %7882 = vst [vmem:[#allocation31_spill] sm:$0xff] %v5912_v44  ;;  %vm7707_vm9 = vcmp.gt.f32.partialorder %v5912_v44, 0.0 }
 0x5a7   :  { %v5891_v16 = vmul.f32 %v1631_v58, %v5360_v13 }
 0x5a9   :  { %v1718_v49 = vsel %vm7754_vm7, %v5891_v16, -1e+30 }
 0x5aa   :  { %1752 = vperm.xlu2 %4134, %v1718_v49  }
 0x5ac   :  { %v1633_v50 = vpop.f32.mrf.mxu3 }
 0x5ad   :  { %v1634_v2 = vadd.f32 %v1633_v50, %v5807_v29  ;;  %v5925_v50 = vld [vmem:[%s7640_s2 + $0x38] sm:$0xff] }
 0x5ae   :  { %7883 = vst [vmem:[#allocation34_spill] sm:$0xff] %v5925_v50  ;;  %vm7715_vm10 = vcmp.gt.f32.partialorder %v5925_v50, 0.0 }
 0x5af   :  { %v5904_v55 = vmul.f32 %v1634_v2, %v5339_v32 }
 0x5b1   :  { %v1719_v13 = vsel %vm1687_vm8, %v5904_v55, -1e+30 }
 0x5b2   :  { %1757 = vperm.xlu1 %4136, %v1719_v13  }
 0x5b4   :  { %v1636_v58 = vpop.f32.mrf.mxu3 }
 0x5b5   :  { %v1637_v49 = vadd.f32 %v1636_v58, %v5803_v26  ;;  %v5938_v58 = vld [vmem:[%s7640_s2 + $0x40] sm:$0xff] }
 0x5b6   :  { %7884 = vst [vmem:[#allocation45_spill] sm:$0xff] %v5938_v58  ;;  %vm7708_vm11 = vcmp.gt.f32.partialorder %v5938_v58, 0.0 }
 0x5b7   :  { %v5917_v29 = vmul.f32 %v1637_v49, %v5283_v11 }
 0x5b9   :  { %v1720_v32 = vsel %vm7707_vm9, %v5917_v29, -1e+30 }
 0x5ba   :  { %1762 = vperm.xlu2 %4134, %v1720_v32  }
 0x5bc   :  { %v1639_v2 = vpop.f32.mrf.mxu3 }
 0x5bd   :  { %v1640_v13 = vadd.f32 %v1639_v2, %v5799_v4  ;;  %v5951_v2 = vld [vmem:[%s7640_s2 + $0x48] sm:$0xff] }
 0x5be   :  { %7885 = vst [vmem:[#allocation46_spill] sm:$0xff] %v5951_v2  ;;  %vm7702_vm12 = vcmp.gt.f32.partialorder %v5951_v2, 0.0 }
 0x5bf   :  { %v5930_v26 = vmul.f32 %v1640_v13, %v5303_v22 }
 0x5c1   :  { %v1721_v11 = vsel %vm7715_vm10, %v5930_v26, -1e+30  ;;  %vm1710_vm10 = vcmp.gt.f32.partialorder %v6121_v51, 0.0 }
 0x5c2   :  { %1767 = vperm.xlu1 %4136, %v1721_v11  }
 0x5c4   :  { %v1642_v49 = vpop.f32.mrf.mxu3 }
 0x5c5   :  { %v1643_v32 = vadd.f32 %v1642_v49, %v5795_v40  ;;  %v5964_v49 = vld [vmem:[%s7640_s2 + $0x50] sm:$0xff] }
 0x5c6   :  { %7886 = vst [vmem:[#allocation47_spill] sm:$0xff] %v5964_v49  ;;  %vm7706_vm13 = vcmp.gt.f32.partialorder %v5964_v49, 0.0 }
 0x5c7   :  { %v5943_v4 = vmul.f32 %v1643_v32, %v5149_v24 }
 0x5c9   :  { %v1722_v22 = vsel %vm7708_vm11, %v5943_v4, -1e+30 }
 0x5ca   :  { %1772 = vperm.xlu0 %4135, %v1722_v22  }
 0x5cc   :  { %v1645_v13 = vpop.f32.mrf.mxu3 }
 0x5cd   :  { %v1646_v11 = vadd.f32 %v1645_v13, %v5791_v0  ;;  %v5977_v13 = vld [vmem:[%s7640_s2 + $0x58] sm:$0xff] }
 0x5ce   :  { %7887 = vst [vmem:[#allocation48_spill] sm:$0xff] %v5977_v13  ;;  %vm7705_vm14 = vcmp.gt.f32.partialorder %v5977_v13, 0.0 }
 0x5cf   :  { %v5956_v40 = vmul.f32 %v1646_v11, %v5290_v47 }
 0x5d1   :  { %v1723_v24 = vsel %vm7702_vm12, %v5956_v40, -1e+30  ;;  %vm1826_vm12 = vcmask 130048  }
 0x5d2   :  { %1777 = vperm.xlu2 %4134, %v1723_v24  }
 0x5d4   :  { %v1648_v32 = vpop.f32.mrf.mxu3 }
 0x5d5   :  { %v1649_v22 = vadd.f32 %v1648_v32, %v5787_v48  ;;  %v5990_v32 = vld [vmem:[%s7640_s2 + $0x60] sm:$0xff] }
 0x5d6   :  { %7888 = vst [vmem:[#allocation49_spill] sm:$0xff] %v5990_v32  ;;  %vm7699_vm15 = vcmp.gt.f32.partialorder %v5990_v32, 0.0 }
 0x5d7   :  { %v5969_v0 = vmul.f32 %v1649_v22, %v5086_v15 }
 0x5d9   :  { %v1724_v47 = vsel %vm7706_vm13, %v5969_v0, -1e+30  ;;  %vm1706_vm13 = vcmp.gt.f32.partialorder %v6092_v36, 0.0 }
 0x5da   :  { %1782 = vperm.xlu1 %4136, %v1724_v47  }
 0x5dc   :  { %v1651_v11 = vpop.f32.mrf.mxu3 }
 0x5dd   :  { %v1652_v24 = vadd.f32 %v1651_v11, %v5783_v34  ;;  %v6003_v11 = vld [vmem:[%s7640_s2 + $0x68] sm:$0xff] }
 0x5de   :  { %7890 = vst [vmem:[#allocation51_spill] sm:$0xff] %v6003_v11  ;;  %vm7701_vm0 = vcmp.gt.f32.partialorder %v6003_v11, 0.0  ;;  %v6139_v11 = vld [vmem:[%s7648_s10 + $0x70] sm:$0xff] }
 0x5df   :  { %v5982_v48 = vmul.f32 %v1652_v24, %v5138_v18 }
 0x5e1   :  { %v1725_v15 = vsel %vm7705_vm14, %v5982_v48, -1e+30 }
 0x5e2   :  { %1787 = vperm.xlu0 %4135, %v1725_v15  }
 0x5e4   :  { %v1654_v22 = vpop.f32.mrf.mxu3 }
 0x5e5   :  { %v1655_v47 = vadd.f32 %v1654_v22, %v5779_v63  ;;  %v6016_v22 = vld [vmem:[%s7640_s2 + $0x70] sm:$0xff] }
 0x5e6   :  { %7892 = vst [vmem:[#allocation53_spill] sm:$0xff] %v6016_v22  ;;  %vm7700_vm1 = vcmp.gt.f32.partialorder %v6016_v22, 0.0 }
 0x5e7   :  { %v5995_v34 = vmul.f32 %v1655_v47, %v5199_v9 }
 0x5e9   :  { %7889 = vst [vmem:[#allocation50_spill] sm:$0xff] %v5995_v34  ;;  %v1726_v18 = vsel %vm7699_vm15, %v5995_v34, -1e+30 }
 0x5ea   :  { %1792 = vperm.xlu2 %4134, %v1726_v18  }
 0x5ec   :  { %v1657_v24 = vpop.f32.mrf.mxu3 }
 0x5ed   :  { %v1658_v15 = vadd.f32 %v1657_v24, %v5775_v31  ;;  %v6029_v24 = vld [vmem:[%s7640_s2 + $0x78] sm:$0xff] }
 0x5ee   :  { %7894 = vst [vmem:[#allocation55_spill] sm:$0xff] %v6029_v24  ;;  %vm7698_vm2 = vcmp.gt.f32.partialorder %v6029_v24, 0.0 }
 0x5ef   :  { %v6008_v63 = vmul.f32 %v1658_v15, %v5216_v38 }
 0x5f1   :  { %7891 = vst [vmem:[#allocation52_spill] sm:$0xff] %v6008_v63  ;;  %v1727_v9 = vsel %vm7701_vm0, %v6008_v63, -1e+30 }
 0x5f2   :  { %1797 = vperm.xlu1 %4136, %v1727_v9  }
 0x5f4   :  { %v1660_v47 = vpop.f32.mrf.mxu3 }
 0x5f5   :  { %v1661_v18 = vadd.f32 %v1660_v47, %v5771_v41  ;;  %v1733_v47 = vpop.permute.xlu2 %1732 }
 0x5f7   :  { %v6021_v31 = vmul.f32 %v1661_v18, %v5073_v30 }
 0x5f9   :  { %7893 = vst [vmem:[#allocation54_spill] sm:$0xff] %v6021_v31  ;;  %v1728_v38 = vsel %vm7700_vm1, %v6021_v31, -1e+30 }
 0x5fa   :  { %1802 = vperm.xlu0 %4135, %v1728_v38  }
 0x5fc   :  { %v1663_v15 = vpop.f32.mrf.mxu3 }
 0x5fd   :  { %v1664_v9 = vadd.f32 %v1663_v15, %v5768_v1  ;;  %v1748_v18 = vpop.permute.xlu2 %1747  ;;  %v6042_v1 = vld [vmem:[%s7648_s10] sm:$0xff]  ;;  %v6052_v15 = vld [vmem:[%s7648_s10 + $0x8] sm:$0xff] }
 0x5fe   :  { %vm1699_vm1 = vcmp.gt.f32.partialorder %v6052_v15, 0.0 }
 0x5ff   :  { %v6034_v41 = vmul.f32 %v1664_v9, %v5128_v46  ;;  %v6047_v46 = vld [vmem:[%s7648_s10 + $0x18] sm:$0xff]  ;;  %v6057_v9 = vld [vmem:[%s7648_s10 + $0x20] sm:$0xff] }
 0x600   :  { %vm1701_vm15 = vcmp.gt.f32.partialorder %v6047_v46, 0.0  ;;  %vm1702_vm0 = vcmp.gt.f32.partialorder %v6057_v9, 0.0 }
 0x601   :  { %7895 = vst [vmem:[#allocation56_spill] sm:$0xff] %v6034_v41  ;;  %v1729_v30 = vsel %vm7698_vm2, %v6034_v41, -1e+30  ;;  %vm1698_vm2 = vcmp.gt.f32.partialorder %v6042_v1, 0.0  ;;  %v1813_v53 = vsel %vm1701_vm15, %v1748_v18, -1e+30 }
 0x602   :  { %1807 = vperm.xlu2 %4134, %v1729_v30   ;;  %v1810_v59 = vsel %vm1698_vm2, %v1733_v47, -1e+30  ;;  %v6086_v47 = vld [vmem:[%s7648_s10 + $0x38] sm:$0xff]  ;;  %vm1703_vm2 = vcmp.gt.f32.partialorder %v6066_v54, 0.0  ;;  %vm1700_vm15 = vcmp.gt.f32.partialorder %v6071_v56, 0.0  ;;  %v6100_v18 = vld [vmem:[%s7648_s10 + $0x50] sm:$0xff] }
 0x603   :  { %vm1705_vm14 = vcmp.gt.f32.partialorder %v6086_v47, 0.0  ;;  %vm1708_vm9 = vcmp.gt.f32.partialorder %v6100_v18, 0.0 }
 0x604   :  { %v1738_v20 = vpop.permute.xlu0 %1737 }
 0x605   :  { %v1753_v61 = vpop.permute.xlu2 %1752  ;;  %v1811_v45 = vsel %vm1699_vm1, %v1738_v20, -1e+30  ;;  %v1827_v20 = vsel %vm1826_vm12, %v1810_v59, -inf  ;;  %vm1704_vm1 = vcmp.gt.f32.partialorder %v6076_v8, 0.0  ;;  %v1830_v59 = vsel %vm1826_vm12, %v1813_v53, -inf  ;;  %v6126_v53 = vld [vmem:[%s7648_s10 + $0x78] sm:$0xff] }
 0x606   :  { %v1814_v25 = vsel %vm1702_vm0, %v1753_v61, -1e+30  ;;  %v6105_v61 = vld [vmem:[%s7648_s10 + $0x58] sm:$0xff]  ;;  %v1828_v35 = vsel %vm1826_vm12, %v1811_v45, -inf  ;;  %vm1707_vm0 = vcmp.gt.f32.partialorder %v6081_v60, 0.0 }
 0x607   :  { %v1831_v12 = vsel %vm1826_vm12, %v1814_v25, -inf  ;;  %vm1709_vm11 = vcmp.gt.f32.partialorder %v6105_v61, 0.0 }
 0x608   :  { %v1832_v41 = vmax.f32 %v1827_v20, %v1831_v12 }
 0x60c   :  { %v1743_v38 = vpop.permute.xlu1 %1742 }
 0x60d   :  { %v1812_v45 = vsel %vm1700_vm15, %v1743_v38, -1e+30  ;;  %vm1713_vm15 = vcmp.gt.f32.partialorder %v6126_v53, 0.0 }
 0x614   :  { %v1763_v62 = vpop.permute.xlu2 %1762 }
 0x615   :  { %v1816_v25 = vsel %vm1704_vm1, %v1763_v62, -1e+30 }
 0x624   :  { %v1758_v5 = vpop.permute.xlu1 %1757 }
 0x625   :  { %v1815_v23 = vsel %vm1703_vm2, %v1758_v5, -1e+30  ;;  %vm1711_vm2 = vcmp.gt.f32.partialorder %v6110_v3, 0.0 }
 0x626   :  { %v1833_v32 = vsel %vm1826_vm12, %v1815_v23, -inf }
 0x62c   :  { %v1778_v28 = vpop.permute.xlu2 %1777 }
 0x62d   :  { %v1819_v14 = vsel %vm1707_vm0, %v1778_v28, -1e+30  ;;  %v1829_v28 = vsel %vm1826_vm12, %v1812_v45, -inf }
 0x62e   :  { %v1841_v62 = vsel %vm1826_vm12, %v1819_v14, -inf }
 0x634   :  { %v1768_v17 = vpop.permute.xlu1 %1767 }
 0x635   :  { %v1817_v24 = vsel %vm1705_vm14, %v1768_v17, -1e+30  ;;  %v1835_v17 = vsel %vm1826_vm12, %v1816_v25, -inf }
 0x636   :  { %v1837_v23 = vsel %vm1826_vm12, %v1817_v24, -inf }
 0x637   :  { %v1838_v45 = vmax.f32 %v1830_v59, %v1837_v23 }
 0x63c   :  { %v1773_v30 = vpop.permute.xlu0 %1772 }
 0x63d   :  { %v1818_v22 = vsel %vm1706_vm13, %v1773_v30, -1e+30  ;;  %v1834_v30 = vmax.f32 %v1828_v35, %v1833_v32 }
 0x63e   :  { %v1839_v34 = vsel %vm1826_vm12, %v1818_v22, -inf }
 0x63f   :  { %v1842_v20 = vmax.f32 %v1834_v30, %v1841_v62 }
 0x644   :  { %v1793_v33 = vpop.permute.xlu2 %1792 }
 0x645   :  { %v1822_v31 = vsel %vm1710_vm10, %v1793_v33, -1e+30 }
 0x646   :  { %v1847_v14 = vsel %vm1826_vm12, %v1822_v31, -inf }
 0x64c   :  { %v1783_v6 = vpop.permute.xlu1 %1782 }
 0x64d   :  { %v1820_v2 = vsel %vm1708_vm9, %v1783_v6, -1e+30  ;;  %vm1712_vm9 = vcmp.gt.f32.partialorder %v6139_v11, 0.0 }
 0x64e   :  { %v1843_v44 = vsel %vm1826_vm12, %v1820_v2, -inf }
 0x654   :  { %v1788_v19 = vpop.permute.xlu0 %1787 }
 0x655   :  { %v1821_v13 = vsel %vm1709_vm11, %v1788_v19, -1e+30  ;;  %v1836_v19 = vmax.f32 %v1829_v28, %v1835_v17 }
 0x656   :  { %v1845_v12 = vsel %vm1826_vm12, %v1821_v13, -inf }
 0x657   :  { %v1844_v22 = vmax.f32 %v1836_v19, %v1843_v44  ;;  %v1846_v33 = vmax.f32 %v1838_v45, %v1845_v12 }
 0x65c   :  { %v1808_v38 = vpop.permute.xlu2 %1807 }
 0x65d   :  { %v1825_v63 = vsel %vm1713_vm15, %v1808_v38, -1e+30 }
 0x65e   :  { %v1853_v35 = vsel %vm1826_vm12, %v1825_v63, -inf }
 0x65f   :  { %v1854_v38 = vmax.f32 %v1846_v33, %v1853_v35 }
 0x664   :  { %v1798_v5 = vpop.permute.xlu1 %1797 }
 0x665   :  { %v1823_v49 = vsel %vm1711_vm2, %v1798_v5, -1e+30  ;;  %v1840_v5 = vmax.f32 %v1832_v41, %v1839_v34 }
 0x666   :  { %v1849_v6 = vsel %vm1826_vm12, %v1823_v49, -inf }
 0x667   :  { %v1850_v24 = vmax.f32 %v1842_v20, %v1849_v6  ;;  %v1848_v13 = vmax.f32 %v1840_v5, %v1847_v14 }
 0x669   :  { %v1855_v58 = vmax.f32 %v1848_v13, %v1850_v24 }
 0x66c   :  { %v1803_v32 = vpop.permute.xlu0 %1802 }
 0x66d   :  { %v1824_v25 = vsel %vm1712_vm9, %v1803_v32, -1e+30 }
 0x66e   :  { %v1851_v2 = vsel %vm1826_vm12, %v1824_v25, -inf }
 0x66f   :  { %v1852_v49 = vmax.f32 %v1844_v22, %v1851_v2 }
 0x671   :  { %v1856_v50 = vmax.f32 %v1852_v49, %v1854_v38 }
 0x673   :  { %v1857_v28 = vmax.f32 %v1855_v58, %v1856_v50 }
 0x675   :  { %v1858_v17 = vrot.slane %v1857_v28, 4 }
 0x677   :  { %v1859_v59 = vmax.f32 %v1857_v28, %v1858_v17 }
 0x679   :  { %v1860_v34 = vrot.slane %v1859_v59, 2 }
 0x67b   :  { %v1861_v41 = vmax.f32 %v1859_v59, %v1860_v34 }
 0x67d   :  { %v1862_v31 = vrot.slane %v1861_v41, 1 }
 0x67f   :  { %v1863_v62 = vmax.f32 %v1861_v41, %v1862_v31 }
 0x681   :  { %v1866_v63 = vmul.f32 %v1863_v62, %v6071_v56  ;;  %v1865_v44 = vmul.f32 %v1863_v62, %v6052_v15  ;;  %v1864_v23 = vmul.f32 %v1863_v62, %v6042_v1  ;;  %v1868_v50 = vmul.f32 %v1863_v62, %v6057_v9 }
 0x682   :  { %v1869_v58 = vmul.f32 %v1863_v62, %v6066_v54  ;;  %v1867_v19 = vmul.f32 %v1863_v62, %v6047_v46  ;;  %v1871_v14 = vmul.f32 %v1863_v62, %v6086_v47  ;;  %v1872_v35 = vmul.f32 %v1863_v62, %v6092_v36 }
 0x683   :  { %v1886_v30 = vsel %vm1826_vm12, %v1866_v63, 0.0  ;;  %v1883_v12 = vsel %vm1826_vm12, %v1865_v44, 0.0  ;;  %v1880_v6 = vsel %vm1826_vm12, %v1864_v23, 0.0  ;;  %v1892_v20 = vsel %vm1826_vm12, %v1868_v50, 0.0 }
 0x684   :  { %1887 = vadd.xlane.f32.xlu2 %v1886_v30  ;;  %1884 = vadd.xlane.f32.xlu0 %v1883_v12  ;;  %v1895_v45 = vsel %vm1826_vm12, %v1869_v58, 0.0  ;;  %v1889_v5 = vsel %vm1826_vm12, %v1867_v19, 0.0  ;;  %v1870_v32 = vmul.f32 %v1863_v62, %v6076_v8  ;;  %v1901_v22 = vsel %vm1826_vm12, %v1871_v14, 0.0 }
 0x685   :  { %1881 = vadd.xlane.f32.xlu1 %v1880_v6  ;;  %v1904_v33 = vsel %vm1826_vm12, %v1872_v35, 0.0  ;;  %v1874_v25 = vmul.f32 %v1863_v62, %v6100_v18  ;;  %v1875_v2 = vmul.f32 %v1863_v62, %v6105_v61  ;;  %v1873_v13 = vmul.f32 %v1863_v62, %v6081_v60 }
 0x686   :  { %v1898_v24 = vsel %vm1826_vm12, %v1870_v32, 0.0  ;;  %v1877_v17 = vmul.f32 %v1863_v62, %v6110_v3  ;;  %v1878_v59 = vmul.f32 %v1863_v62, %v6139_v11  ;;  %v1876_v34 = vmul.f32 %v1863_v62, %v6121_v51 }
 0x687   :  { %v1910_v38 = vsel %vm1826_vm12, %v1874_v25, 0.0  ;;  %v1913_v49 = vsel %vm1826_vm12, %v1875_v2, 0.0  ;;  %v1907_v28 = vsel %vm1826_vm12, %v1873_v13, 0.0  ;;  %v1879_v44 = vmul.f32 %v1863_v62, %v6126_v53 }
 0x688   :  { %v1919_v41 = vsel %vm1826_vm12, %v1877_v17, 0.0  ;;  %v1922_v31 = vsel %vm1826_vm12, %v1878_v59, 0.0  ;;  %v1916_v63 = vsel %vm1826_vm12, %v1876_v34, 0.0 }
 0x689   :  { %v1925_v23 = vsel %vm1826_vm12, %v1879_v44, 0.0 }
 0x68c   :  { %1893 = vadd.xlane.f32.xlu2 %v1892_v20  ;;  %1896 = vadd.xlane.f32.xlu0 %v1895_v45 }
 0x68d   :  { %1890 = vadd.xlane.f32.xlu1 %v1889_v5 }
 0x694   :  { %1902 = vadd.xlane.f32.xlu2 %v1901_v22  ;;  %1905 = vadd.xlane.f32.xlu0 %v1904_v33 }
 0x695   :  { %1899 = vadd.xlane.f32.xlu1 %v1898_v24 }
 0x69c   :  { %1911 = vadd.xlane.f32.xlu2 %v1910_v38  ;;  %1914 = vadd.xlane.f32.xlu0 %v1913_v49 }
 0x69d   :  { %1908 = vadd.xlane.f32.xlu1 %v1907_v28 }
 0x6a4   :  { %1920 = vadd.xlane.f32.xlu2 %v1919_v41  ;;  %1923 = vadd.xlane.f32.xlu0 %v1922_v31 }
 0x6a5   :  { %1917 = vadd.xlane.f32.xlu1 %v1916_v63 }
 0x6ad   :  { %1926 = vadd.xlane.f32.xlu1 %v1925_v23 }
 0x6f7   :  { %v1888_v30 = vpop.xlane.xlu2 %1887  ;;  %v1885_v12 = vpop.xlane.xlu0 %1884 }
 0x6f8   :  { %v1930_v6 = vsub.f32 %v5866_v57, %v1888_v30  ;;  %v1929_v50 = vsub.f32 %v5854_v37, %v1885_v12  ;;  %v1882_v58 = vpop.xlane.xlu1 %1881 }
 0x6f9   :  { %v1928_v19 = vsub.f32 %v5842_v10, %v1882_v58 }
 0x6fa   :  { %v1946_v20 = vmin.f32 %v1930_v6, 0.0  ;;  %v1945_v45 = vmin.f32 %v1929_v50, 0.0 }
 0x6fb   :  { %v1944_v5 = vmin.f32 %v1928_v19, 0.0 }
 0x6fc   :  { %v1964_v14 = vmul.f32 1.442695, %v1946_v20  ;;  %v1962_v35 = vmul.f32 1.442695, %v1945_v45 }
 0x6fd   :  { %v1960_v32 = vmul.f32 1.442695, %v1944_v5 }
 0x6fe   :  { %4277 = vpow2.f32 %v1964_v14 }
 0x6ff   :  { %4279 = vpow2.f32 %v1962_v35  ;;  %v1894_v62 = vpop.xlane.xlu2 %1893  ;;  %v1897_v22 = vpop.xlane.xlu0 %1896 }
 0x700   :  { %4281 = vpow2.f32 %v1960_v32  ;;  %v1932_v33 = vsub.f32 %v5891_v16, %v1894_v62  ;;  %v1933_v57 = vsub.f32 %v5904_v55, %v1897_v22  ;;  %v1891_v24 = vpop.xlane.xlu1 %1890 }
 0x701   :  { %v1931_v37 = vsub.f32 %v5878_v21, %v1891_v24 }
 0x702   :  { %v1948_v25 = vmin.f32 %v1932_v33, 0.0  ;;  %v1949_v10 = vmin.f32 %v1933_v57, 0.0 }
 0x703   :  { %v1947_v2 = vmin.f32 %v1931_v37, 0.0 }
 0x704   :  { %v4278_v13 = vpop.eup %4277  ;;  %v1968_v38 = vmul.f32 1.442695, %v1948_v25  ;;  %v1970_v49 = vmul.f32 1.442695, %v1949_v10 }
 0x705   :  { %v4280_v28 = vpop.eup %4279  ;;  %v1966_v17 = vmul.f32 1.442695, %v1947_v2  ;;  %v6193_v59 = vsel %vm7739_vm5, %v4278_v13, 0.0 }
 0x706   :  { %v4282_v34 = vpop.eup %4281  ;;  %4283 = vpow2.f32 %v1968_v38  ;;  %v6197_v16 = vsel %vm7738_vm4, %v4280_v28, 0.0  ;;  %2020 = vperm.xlu1 %4136, %v6193_v59  }
 0x707   :  { %4285 = vpow2.f32 %v1970_v49  ;;  %2015 = vperm.xlu0 %4135, %v6197_v16   ;;  %v6203_v21 = vsel %vm7737_vm3, %v4282_v34, 0.0  ;;  %v1903_v55 = vpop.xlane.xlu2 %1902  ;;  %v1906_v41 = vpop.xlane.xlu0 %1905  ;;  %v7896_v49 = vld [vmem:[#allocation34_spill] sm:$0xff] }
 0x708   :  { %4287 = vpow2.f32 %v1966_v17  ;;  %2010 = vperm.xlu2 %4134, %v6203_v21   ;;  %v1935_v31 = vsub.f32 %v5930_v26, %v1903_v55  ;;  %v1936_v63 = vsub.f32 %v5943_v4, %v1906_v41  ;;  %v1900_v44 = vpop.xlane.xlu1 %1899  ;;  %vm7897_vm10 = vcmp.gt.f32.partialorder %v7896_v49, 0.0 }
 0x709   :  { %v1934_v23 = vsub.f32 %v5917_v29, %v1900_v44  ;;  %v7903_v44 = vld [vmem:[#allocation54_spill] sm:$0xff] }
 0x70a   :  { %v1951_v30 = vmin.f32 %v1935_v31, 0.0  ;;  %v1952_v12 = vmin.f32 %v1936_v63, 0.0  ;;  %v7902_v31 = vld [vmem:[#allocation52_spill] sm:$0xff] }
 0x70b   :  { %v1950_v6 = vmin.f32 %v1934_v23, 0.0 }
 0x70c   :  { %v4284_v50 = vpop.eup %4283  ;;  %v1974_v58 = vmul.f32 1.442695, %v1951_v30  ;;  %v1976_v19 = vmul.f32 1.442695, %v1952_v12  ;;  %v7904_v12 = vld [vmem:[#allocation50_spill] sm:$0xff] }
 0x70d   :  { %v4286_v20 = vpop.eup %4285  ;;  %v1972_v45 = vmul.f32 1.442695, %v1950_v6  ;;  %v6211_v5 = vsel %vm7754_vm7, %v4284_v50, 0.0 }
 0x70e   :  { %v4288_v14 = vpop.eup %4287  ;;  %4289 = vpow2.f32 %v1974_v58  ;;  %v6215_v26 = vsel %vm1687_vm8, %v4286_v20, 0.0 }
 0x70f   :  { %4291 = vpow2.f32 %v1976_v19  ;;  %2035 = vperm.xlu1 %4136, %v6215_v26   ;;  %v6220_v29 = vsel %vm7740_vm6, %v4288_v14, 0.0  ;;  %v1912_v4 = vpop.xlane.xlu2 %1911  ;;  %v1915_v35 = vpop.xlane.xlu0 %1914 }
 0x710   :  { %4293 = vpow2.f32 %v1972_v45  ;;  %2030 = vperm.xlu2 %4134, %v6211_v5   ;;  %2025 = vperm.xlu0 %4135, %v6220_v29   ;;  %v1938_v32 = vsub.f32 %v5969_v0, %v1912_v4  ;;  %v1939_v62 = vsub.f32 %v5982_v48, %v1915_v35  ;;  %v1909_v22 = vpop.xlane.xlu1 %1908  ;;  %v7898_v0 = vld [vmem:[#allocation45_spill] sm:$0xff] }
 0x711   :  { %v1937_v33 = vsub.f32 %v5956_v40, %v1909_v22  ;;  %vm7899_vm11 = vcmp.gt.f32.partialorder %v7898_v0, 0.0  ;;  %v7900_v40 = vld [vmem:[#allocation31_spill] sm:$0xff] }
 0x712   :  { %v1954_v57 = vmin.f32 %v1938_v32, 0.0  ;;  %v1955_v24 = vmin.f32 %v1939_v62, 0.0  ;;  %vm7901_vm13 = vcmp.gt.f32.partialorder %v7900_v40, 0.0  ;;  %v7905_v32 = vld [vmem:[#allocation47_spill] sm:$0xff] }
 0x713   :  { %v1953_v37 = vmin.f32 %v1937_v33, 0.0  ;;  %vm7906_vm14 = vcmp.gt.f32.partialorder %v7905_v32, 0.0  ;;  %v7907_v33 = vld [vmem:[#allocation48_spill] sm:$0xff] }
 0x714   :  { %v4290_v25 = vpop.eup %4289  ;;  %v1980_v10 = vmul.f32 1.442695, %v1954_v57  ;;  %v1982_v2 = vmul.f32 1.442695, %v1955_v24  ;;  %vm7908_vm1 = vcmp.gt.f32.partialorder %v7907_v33, 0.0  ;;  %v7909_v24 = vld [vmem:[#allocation46_spill] sm:$0xff] }
 0x715   :  { %v4292_v13 = vpop.eup %4291  ;;  %v1978_v38 = vmul.f32 1.442695, %v1953_v37  ;;  %v6229_v28 = vsel %vm7897_vm10, %v4290_v25, 0.0  ;;  %vm7910_vm0 = vcmp.gt.f32.partialorder %v7909_v24, 0.0 }
 0x716   :  { %v4294_v17 = vpop.eup %4293  ;;  %4295 = vpow2.f32 %v1980_v10  ;;  %v6233_v48 = vsel %vm7899_vm11, %v4292_v13, 0.0  ;;  %v7911_v10 = vld [vmem:[#allocation56_spill] sm:$0xff] }
 0x717   :  { %4297 = vpow2.f32 %v1982_v2  ;;  %2050 = vperm.xlu1 %4136, %v6233_v48   ;;  %v6238_v34 = vsel %vm7901_vm13, %v4294_v17, 0.0  ;;  %v1921_v55 = vpop.xlane.xlu2 %1920  ;;  %v1924_v41 = vpop.xlane.xlu0 %1923 }
 0x718   :  { %4299 = vpow2.f32 %v1978_v38  ;;  %2045 = vperm.xlu2 %4134, %v6229_v28   ;;  %2040 = vperm.xlu0 %4135, %v6238_v34   ;;  %v1941_v63 = vsub.f32 %v7902_v31, %v1921_v55  ;;  %v1942_v23 = vsub.f32 %v7903_v44, %v1924_v41  ;;  %v1918_v30 = vpop.xlane.xlu1 %1917  ;;  %v7912_v41 = vld [vmem:[#allocation51_spill] sm:$0xff]  ;;  %v7914_v44 = vld [vmem:[#allocation53_spill] sm:$0xff] }
 0x719   :  { %v1940_v6 = vsub.f32 %v7904_v12, %v1918_v30  ;;  %vm7913_vm2 = vcmp.gt.f32.partialorder %v7912_v41, 0.0  ;;  %vm7915_vm15 = vcmp.gt.f32.partialorder %v7914_v44, 0.0  ;;  %v7916_v30 = vld [vmem:[#allocation49_spill] sm:$0xff] }
 0x71a   :  { %v1957_v50 = vmin.f32 %v1941_v63, 0.0  ;;  %v1958_v58 = vmin.f32 %v1942_v23, 0.0  ;;  %vm7917_vm9 = vcmp.gt.f32.partialorder %v7916_v30, 0.0 }
 0x71b   :  { %v1956_v19 = vmin.f32 %v1940_v6, 0.0 }
 0x71c   :  { %v4296_v20 = vpop.eup %4295  ;;  %v1986_v45 = vmul.f32 1.442695, %v1957_v50  ;;  %v1988_v14 = vmul.f32 1.442695, %v1958_v58  ;;  %v7918_v50 = vld [vmem:[#allocation55_spill] sm:$0xff] }
 0x71d   :  { %v4298_v4 = vpop.eup %4297  ;;  %v1984_v35 = vmul.f32 1.442695, %v1956_v19  ;;  %v6247_v62 = vsel %vm7906_vm14, %v4296_v20, 0.0  ;;  %vm7919_vm10 = vcmp.gt.f32.partialorder %v7918_v50, 0.0 }
 0x71e   :  { %v4300_v22 = vpop.eup %4299  ;;  %4301 = vpow2.f32 %v1986_v45  ;;  %v6251_v57 = vsel %vm7908_vm1, %v4298_v4, 0.0 }
 0x71f   :  { %4303 = vpow2.f32 %v1988_v14  ;;  %2065 = vperm.xlu1 %4136, %v6251_v57   ;;  %v6256_v37 = vsel %vm7910_vm0, %v4300_v22, 0.0 }
 0x720   :  { %4305 = vpow2.f32 %v1984_v35  ;;  %2060 = vperm.xlu2 %4134, %v6247_v62   ;;  %2055 = vperm.xlu0 %4135, %v6256_v37   ;;  %v1927_v25 = vpop.xlane.xlu1 %1926 }
 0x721   :  { %v1943_v2 = vsub.f32 %v7911_v10, %v1927_v25 }
 0x723   :  { %v1959_v13 = vmin.f32 %v1943_v2, 0.0 }
 0x724   :  { %v4302_v38 = vpop.eup %4301 }
 0x725   :  { %v4304_v17 = vpop.eup %4303  ;;  %v1990_v55 = vmul.f32 1.442695, %v1959_v13  ;;  %v6263_v31 = vsel %vm7913_vm2, %v4302_v38, 0.0 }
 0x726   :  { %v4306_v63 = vpop.eup %4305  ;;  %v6267_v23 = vsel %vm7915_vm15, %v4304_v17, 0.0 }
 0x727   :  { %4307 = vpow2.f32 %v1990_v55  ;;  %2080 = vperm.xlu1 %4136, %v6267_v23   ;;  %v6272_v12 = vsel %vm7917_vm9, %v4306_v63, 0.0 }
 0x728   :  { %2075 = vperm.xlu2 %4134, %v6263_v31   ;;  %2070 = vperm.xlu0 %4135, %v6272_v12  }
 0x72d   :  { %v4308_v6 = vpop.eup %4307 }
 0x72e   :  { %v6278_v58 = vsel %vm7919_vm10, %v4308_v6, 0.0 }
 0x730   :  { %2085 = vperm.xlu0 %4135, %v6278_v58  }
 0x762   :  { %v2011_v19 = vpop.permute.xlu2 %2010 }
 0x763   :  { %v2088_v35 = vmul.f32 %v2011_v19, %v6042_v1 }
 0x765   :  { %v2104_v25 = vsel %vm1826_vm12, %v2088_v35, 0.0 }
 0x76a   :  { %v2031_v14 = vpop.permute.xlu2 %2030 }
 0x76b   :  { %v2092_v17 = vmul.f32 %v2031_v14, %v6057_v9 }
 0x772   :  { %v2046_v6 = vpop.permute.xlu2 %2045 }
 0x778   :  { %v2021_v20 = vpop.permute.xlu1 %2020 }
 0x779   :  { %v2016_v45 = vpop.permute.xlu0 %2015  ;;  %v2090_v10 = vmul.f32 %v2021_v20, %v6071_v56 }
 0x77a   :  { %v2089_v4 = vmul.f32 %v2016_v45, %v6052_v15 }
 0x77b   :  { %v2107_v55 = vsel %vm1826_vm12, %v2090_v10, 0.0 }
 0x77c   :  { %v2105_v22 = vsel %vm1826_vm12, %v2089_v4, 0.0  ;;  %v2111_v4 = vsel %vm1826_vm12, %v2092_v17, 0.0 }
 0x77d   :  { %v2106_v2 = vadd.f32 %v2105_v22, %v2104_v25  ;;  %v2095_v25 = vmul.f32 %v2046_v6, %v6086_v47 }
 0x77f   :  { %v2108_v39 = vadd.f32 %v2107_v55, %v2106_v2  ;;  %v2061_v2 = vpop.permute.xlu2 %2060 }
 0x781   :  { %v2036_v13 = vpop.permute.xlu1 %2035 }
 0x782   :  { %v2026_v38 = vpop.permute.xlu0 %2025  ;;  %v2093_v35 = vmul.f32 %v2036_v13, %v6066_v54 }
 0x783   :  { %v2091_v63 = vmul.f32 %v2026_v38, %v6047_v46 }
 0x784   :  { %v2113_v14 = vsel %vm1826_vm12, %v2093_v35, 0.0 }
 0x785   :  { %v2109_v45 = vsel %vm1826_vm12, %v2091_v63, 0.0 }
 0x786   :  { %v2110_v19 = vadd.f32 %v2109_v45, %v2108_v39  ;;  %v2117_v39 = vsel %vm1826_vm12, %v2095_v25, 0.0 }
 0x787   :  { %v2076_v25 = vpop.permute.xlu2 %2075 }
 0x788   :  { %v2112_v52 = vadd.f32 %v2111_v4, %v2110_v19  ;;  %v2098_v19 = vmul.f32 %v2061_v2, %v6100_v18 }
 0x789   :  { %v2051_v20 = vpop.permute.xlu1 %2050 }
 0x78a   :  { %v2041_v22 = vpop.permute.xlu0 %2040  ;;  %v2114_v7 = vadd.f32 %v2113_v14, %v2112_v52  ;;  %v2096_v17 = vmul.f32 %v2051_v20, %v6092_v36  ;;  %v2123_v14 = vsel %vm1826_vm12, %v2098_v19, 0.0 }
 0x78b   :  { %v2094_v10 = vmul.f32 %v2041_v22, %v6076_v8 }
 0x78c   :  { %v2119_v6 = vsel %vm1826_vm12, %v2096_v17, 0.0 }
 0x78d   :  { %v2115_v38 = vsel %vm1826_vm12, %v2094_v10, 0.0 }
 0x78e   :  { %v2116_v55 = vadd.f32 %v2115_v38, %v2114_v7  ;;  %v2101_v38 = vmul.f32 %v2076_v25, %v6110_v3 }
 0x790   :  { %v2118_v63 = vadd.f32 %v2117_v39, %v2116_v55 }
 0x791   :  { %v2066_v45 = vpop.permute.xlu1 %2065 }
 0x792   :  { %v2056_v13 = vpop.permute.xlu0 %2055  ;;  %v2120_v35 = vadd.f32 %v2119_v6, %v2118_v63  ;;  %v2099_v7 = vmul.f32 %v2066_v45, %v6105_v61  ;;  %v2129_v6 = vsel %vm1826_vm12, %v2101_v38, 0.0 }
 0x793   :  { %v2097_v4 = vmul.f32 %v2056_v13, %v6081_v60 }
 0x794   :  { %v2125_v55 = vsel %vm1826_vm12, %v2099_v7, 0.0 }
 0x795   :  { %v2121_v52 = vsel %vm1826_vm12, %v2097_v4, 0.0 }
 0x796   :  { %v2122_v22 = vadd.f32 %v2121_v52, %v2120_v35 }
 0x798   :  { %v2124_v10 = vadd.f32 %v2123_v14, %v2122_v22 }
 0x799   :  { %v2081_v17 = vpop.permute.xlu1 %2080 }
 0x79a   :  { %v2071_v20 = vpop.permute.xlu0 %2070  ;;  %v2126_v39 = vadd.f32 %v2125_v55, %v2124_v10  ;;  %v2102_v19 = vmul.f32 %v2081_v17, %v6139_v11 }
 0x79b   :  { %v2100_v2 = vmul.f32 %v2071_v20, %v6121_v51 }
 0x79c   :  { %v2131_v35 = vsel %vm1826_vm12, %v2102_v19, 0.0 }
 0x79d   :  { %v2127_v63 = vsel %vm1826_vm12, %v2100_v2, 0.0 }
 0x79e   :  { %v2128_v13 = vadd.f32 %v2127_v63, %v2126_v39 }
 0x7a0   :  { %v2130_v4 = vadd.f32 %v2129_v6, %v2128_v13 }
 0x7a2   :  { %v2086_v45 = vpop.permute.xlu0 %2085  ;;  %v2132_v22 = vadd.f32 %v2131_v35, %v2130_v4 }
 0x7a3   :  { %v2103_v52 = vmul.f32 %v2086_v45, %v6126_v53 }
 0x7a5   :  { %v2133_v14 = vsel %vm1826_vm12, %v2103_v52, 0.0 }
 0x7a6   :  { %v2134_v7 = vadd.f32 %v2133_v14, %v2132_v22 }
 0x7a8   :  { %v2135_v25 = vrot.slane %v2134_v7, 4 }
 0x7aa   :  { %v2136_v10 = vadd.f32 %v2135_v25, %v2134_v7 }
 0x7ac   :  { %v2137_v20 = vrot.slane %v2136_v10, 2 }
 0x7ae   :  { %v2138_v55 = vadd.f32 %v2137_v20, %v2136_v10 }
 0x7b0   :  { %v2139_v2 = vrot.slane %v2138_v55, 1 }
 0x7b2   :  { %v2140_v39 = vadd.f32 %v2139_v2, %v2138_v55 }
 0x7b4   :  { %v2143_v38 = vmul.f32 %v2140_v39, %v6071_v56  ;;  %v2142_v17 = vmul.f32 %v2140_v39, %v6052_v15  ;;  %v2141_v63 = vmul.f32 %v2140_v39, %v6042_v1  ;;  %v2146_v4 = vmul.f32 %v2140_v39, %v6066_v54 }
 0x7b5   :  { %v2145_v45 = vmul.f32 %v2140_v39, %v6057_v9  ;;  %v2144_v35 = vmul.f32 %v2140_v39, %v6047_v46  ;;  %v2149_v52 = vmul.f32 %v2140_v39, %v6092_v36  ;;  %v2148_v22 = vmul.f32 %v2140_v39, %v6086_v47 }
 0x7b6   :  { %v2163_v13 = vsel %vm1826_vm12, %v2143_v38, 0.0  ;;  %v2160_v6 = vsel %vm1826_vm12, %v2142_v17, 0.0  ;;  %v2157_v19 = vsel %vm1826_vm12, %v2141_v63, 0.0  ;;  %v2172_v56 = vsel %vm1826_vm12, %v2146_v4, 0.0 }
 0x7b7   :  { %2164 = vadd.xlane.f32.xlu0 %v2163_v13  ;;  %2161 = vadd.xlane.f32.xlu1 %v2160_v6  ;;  %v2169_v15 = vsel %vm1826_vm12, %v2145_v45, 0.0  ;;  %v2166_v1 = vsel %vm1826_vm12, %v2144_v35, 0.0  ;;  %v2147_v14 = vmul.f32 %v2140_v39, %v6076_v8  ;;  %v2181_v54 = vsel %vm1826_vm12, %v2149_v52, 0.0 }
 0x7b8   :  { %2158 = vadd.xlane.f32.xlu2 %v2157_v19  ;;  %v2178_v9 = vsel %vm1826_vm12, %v2148_v22, 0.0  ;;  %v2152_v7 = vmul.f32 %v2140_v39, %v6105_v61  ;;  %v2151_v25 = vmul.f32 %v2140_v39, %v6100_v18  ;;  %v2150_v10 = vmul.f32 %v2140_v39, %v6081_v60 }
 0x7b9   :  { %v2175_v46 = vsel %vm1826_vm12, %v2147_v14, 0.0  ;;  %v2155_v20 = vmul.f32 %v2140_v39, %v6139_v11  ;;  %v2154_v55 = vmul.f32 %v2140_v39, %v6110_v3  ;;  %v2153_v2 = vmul.f32 %v2140_v39, %v6121_v51 }
 0x7ba   :  { %v2190_v36 = vsel %vm1826_vm12, %v2152_v7, 0.0  ;;  %v2187_v47 = vsel %vm1826_vm12, %v2151_v25, 0.0  ;;  %v2184_v8 = vsel %vm1826_vm12, %v2150_v10, 0.0  ;;  %v2156_v38 = vmul.f32 %v2140_v39, %v6126_v53 }
 0x7bb   :  { %v2199_v61 = vsel %vm1826_vm12, %v2155_v20, 0.0  ;;  %v2196_v18 = vsel %vm1826_vm12, %v2154_v55, 0.0  ;;  %v2193_v60 = vsel %vm1826_vm12, %v2153_v2, 0.0 }
 0x7bc   :  { %v2202_v17 = vsel %vm1826_vm12, %v2156_v38, 0.0 }
 0x7bf   :  { %2173 = vadd.xlane.f32.xlu0 %v2172_v56  ;;  %2170 = vadd.xlane.f32.xlu1 %v2169_v15 }
 0x7c0   :  { %2167 = vadd.xlane.f32.xlu2 %v2166_v1 }
 0x7c7   :  { %2182 = vadd.xlane.f32.xlu0 %v2181_v54  ;;  %2179 = vadd.xlane.f32.xlu1 %v2178_v9 }
 0x7c8   :  { %2176 = vadd.xlane.f32.xlu2 %v2175_v46 }
 0x7cf   :  { %2191 = vadd.xlane.f32.xlu0 %v2190_v36  ;;  %2188 = vadd.xlane.f32.xlu1 %v2187_v47 }
 0x7d0   :  { %2185 = vadd.xlane.f32.xlu2 %v2184_v8 }
 0x7d7   :  { %2200 = vadd.xlane.f32.xlu0 %v2199_v61  ;;  %2197 = vadd.xlane.f32.xlu1 %v2196_v18 }
 0x7d8   :  { %2194 = vadd.xlane.f32.xlu2 %v2193_v60 }
 0x7e0   :  { %2203 = vadd.xlane.f32.xlu2 %v2202_v17 }
 0x82a   :  { %v2165_v63 = vpop.xlane.xlu0 %2164  ;;  %v2162_v11 = vpop.xlane.xlu1 %2161 }
 0x82b   :  { %v2207_v13 = vadd.f32 1e-16, %v2165_v63  ;;  %v6345_v3 = vadd.f32 1e-16, %v2162_v11  ;;  %v2159_v51 = vpop.xlane.xlu2 %2158 }
 0x82c   :  { %v6347_v6 = vadd.f32 1e-16, %v2159_v51 }
 0x82d   :  { %4309 = vrcp.f32 %v2207_v13  ;;  %v2245_v19 = vand.u32 2147483647, %v6345_v3  ;;  %v2247_v53 = vand.u32 2147483648, %v6345_v3  ;;  %v2260_v39 = vand.u32 2147483647, %v2207_v13 }
 0x82e   :  { %4311 = vrcp.f32 %v6345_v3  ;;  %v2262_v35 = vand.u32 2147483648, %v2207_v13  ;;  %vm2241_vm11 = vweird.f32 %v6345_v3  ;;  %v2232_v22 = vand.u32 2147483648, %v6347_v6 }
 0x82f   :  { %4313 = vrcp.f32 %v6347_v6  ;;  %vm2256_vm13 = vweird.f32 %v2207_v13  ;;  %v2230_v46 = vand.u32 2147483647, %v6347_v6  ;;  %vm6369_vm14 = vcmp.eq.f32.partialorder %v2245_v19, 8.507059e+37 }
 0x830   :  { %v2248_v36 = vor.u32 1.1754944e-38, %v2247_v53  ;;  %vm6373_vm1 = vcmp.eq.f32.partialorder %v2260_v39, 8.507059e+37  ;;  %v2263_v55 = vor.u32 1.1754944e-38, %v2262_v35  ;;  %vm2226_vm0 = vweird.f32 %v6347_v6 }
 0x831   :  { %v2233_v61 = vor.u32 1.1754944e-38, %v2232_v22  ;;  %vm6385_vm15 = vcmp.eq.f32.partialorder %v2230_v46, 8.507059e+37 }
 0x832   :  { %v2174_v4 = vpop.xlane.xlu0 %2173  ;;  %v2171_v45 = vpop.xlane.xlu1 %2170 }
 0x833   :  { %v6353_v56 = vpop.eup %4309  ;;  %v6355_v15 = vadd.f32 1e-16, %v2174_v4  ;;  %v6357_v1 = vadd.f32 1e-16, %v2171_v45  ;;  %v2168_v52 = vpop.xlane.xlu2 %2167 }
 0x834   :  { %v4312_v14 = vpop.eup %4311  ;;  %v2252_v54 = vmul.f32 %v6353_v56, %v2207_v13  ;;  %v6362_v9 = vadd.f32 1e-16, %v2168_v52  ;;  %vm2257_vm2 = vweird.f32 %v6353_v56 }
 0x835   :  { %v6365_v7 = vpop.eup %4313  ;;  %v2237_v25 = vmul.f32 %v4312_v14, %v6345_v3  ;;  %4315 = vrcp.f32 %v6355_v15  ;;  %v2307_v18 = vand.u32 2147483648, %v6355_v15  ;;  %v2305_v63 = vand.u32 2147483647, %v6355_v15  ;;  %vm2258_vm4 = vmor %vm2256_vm13, %vm2257_vm2 }
 0x836   :  { %v2253_v8 = vsub.f32 1.0, %v2252_v54  ;;  %v2222_v20 = vmul.f32 %v6365_v7, %v6347_v6  ;;  %4317 = vrcp.f32 %v6357_v1  ;;  %vm2242_vm9 = vweird.f32 %v4312_v14 }
 0x837   :  { %v2238_v2 = vsub.f32 1.0, %v2237_v25  ;;  %4319 = vrcp.f32 %v6362_v9  ;;  %vm2227_vm10 = vweird.f32 %v6365_v7  ;;  %v2292_v51 = vand.u32 2147483648, %v6357_v1  ;;  %vm2243_vm6 = vmor %vm2241_vm11, %vm2242_vm9 }
 0x838   :  { %v2223_v60 = vsub.f32 1.0, %v2222_v20  ;;  %v2254_v38 = vmul.f32 %v6353_v56, %v2253_v8  ;;  %vm2301_vm3 = vweird.f32 %v6355_v15  ;;  %v6395_v45 = vor.u32 1.1754944e-38, %v2307_v18 }
 0x839   :  { %v2239_v11 = vmul.f32 %v4312_v14, %v2238_v2  ;;  %v2290_v35 = vand.u32 2147483647, %v6357_v1  ;;  %vm2286_vm5 = vweird.f32 %v6357_v1  ;;  %v6408_v8 = vor.u32 1.1754944e-38, %v2292_v51 }
 0x83a   :  { %v2183_v19 = vpop.xlane.xlu0 %2182  ;;  %v2180_v53 = vpop.xlane.xlu1 %2179  ;;  %v2255_v39 = vadd.f32 %v6353_v56, %v2254_v38  ;;  %v2224_v4 = vmul.f32 %v6365_v7, %v2223_v60  ;;  %vm6421_vm13 = vcmp.eq.f32.partialorder %v2305_v63, 8.507059e+37  ;;  %vm2271_vm11 = vweird.f32 %v6362_v9 }
 0x83b   :  { %v6398_v52 = vpop.eup %4315  ;;  %v6400_v22 = vadd.f32 1e-16, %v2183_v19  ;;  %v6402_v54 = vadd.f32 1e-16, %v2180_v53  ;;  %v2177_v46 = vpop.xlane.xlu2 %2176  ;;  %v2240_v25 = vadd.f32 %v4312_v14, %v2239_v11 }
 0x83c   :  { %v6410_v20 = vpop.eup %4317  ;;  %v2297_v2 = vmul.f32 %v6398_v52, %v6355_v15  ;;  %v6414_v18 = vadd.f32 1e-16, %v2177_v46  ;;  %v2259_v60 = vsel %vm2258_vm4, %v6353_v56, %v2255_v39  ;;  %v2225_v13 = vadd.f32 %v6365_v7, %v2224_v4 }
 0x83d   :  { %v6425_v11 = vpop.eup %4319  ;;  %v2282_v51 = vmul.f32 %v6410_v20, %v6357_v1  ;;  %4321 = vrcp.f32 %v6400_v22  ;;  %v2244_v19 = vsel %vm2243_vm6, %v4312_v14, %v2240_v25  ;;  %v2264_v3 = vsel %vm6373_vm1, %v2263_v55, %v2259_v60  ;;  %vm2228_vm6 = vmor %vm2226_vm0, %vm2227_vm10 }
 0x83e   :  { %v2298_v56 = vsub.f32 1.0, %v2297_v2  ;;  %v2267_v63 = vmul.f32 %v6425_v11, %v6362_v9  ;;  %4323 = vrcp.f32 %v6402_v54  ;;  %v2249_v53 = vsel %vm6369_vm14, %v2248_v36, %v2244_v19 }
 0x83f   :  { %vm6438_vm4 = vcmp.eq.f32.partialorder %v2290_v35, 8.507059e+37  ;;  %v2283_v4 = vsub.f32 1.0, %v2282_v51  ;;  %4325 = vrcp.f32 %v6414_v18  ;;  %v6444_v14 = vmul.f32 %v2249_v53, %v6197_v16 }
 0x840   :  { %v6447_v47 = vmul.f32 %v2264_v3, %v6193_v59  ;;  %v2268_v10 = vsub.f32 1.0, %v2267_v63  ;;  %v2229_v36 = vsel %vm2228_vm6, %v6365_v7, %v2225_v13  ;;  %v2299_v55 = vmul.f32 %v6398_v52, %v2298_v56 }
 0x841   :  { %7930 = vst [vmem:[#allocation34_spill] sm:$0xff] %v6444_v14  ;;  %vm2302_vm14 = vweird.f32 %v6398_v52  ;;  %2468 = vperm.xlu0 %4135, %v6444_v14   ;;  %v2234_v59 = vsel %vm6385_vm15, %v2233_v61, %v2229_v36  ;;  %v2284_v16 = vmul.f32 %v6410_v20, %v2283_v4  ;;  %vm2287_vm1 = vweird.f32 %v6410_v20 }
 0x842   :  { %7931 = vst [vmem:[#allocation45_spill] sm:$0xff] %v6447_v47  ;;  %2473 = vperm.xlu2 %4134, %v6447_v47   ;;  %vm2272_vm0 = vweird.f32 %v6425_v11  ;;  %v6464_v6 = vmul.f32 %v2234_v59, %v6203_v21  ;;  %v2192_v7 = vpop.xlane.xlu0 %2191  ;;  %v2189_v35 = vpop.xlane.xlu1 %2188  ;;  %v2300_v46 = vadd.f32 %v6398_v52, %v2299_v55  ;;  %v2269_v25 = vmul.f32 %v6425_v11, %v2268_v10  ;;  %vm2303_vm2 = vmor %vm2301_vm3, %vm2302_vm14 }
 0x843   :  { %v2275_v2 = vand.u32 2147483647, %v6362_v9  ;;  %v6469_v60 = vpop.eup %4321  ;;  %v6471_v61 = vadd.f32 1e-16, %v2192_v7  ;;  %v6473_v17 = vadd.f32 1e-16, %v2189_v35  ;;  %v2186_v13 = vpop.xlane.xlu2 %2185  ;;  %v2285_v21 = vadd.f32 %v6410_v20, %v2284_v16  ;;  %vm2288_vm3 = vmor %vm2286_vm5, %vm2287_vm1 }
 0x844   :  { %7932 = vst [vmem:[#allocation31_spill] sm:$0xff] %v6464_v6  ;;  %v2277_v51 = vand.u32 2147483648, %v6362_v9  ;;  %v6481_v19 = vpop.eup %4323  ;;  %v2342_v3 = vmul.f32 %v6469_v60, %v6400_v22  ;;  %2463 = vperm.xlu1 %4136, %v6464_v6   ;;  %v6486_v56 = vadd.f32 1e-16, %v2186_v13  ;;  %v2304_v63 = vsel %vm2303_vm2, %v6398_v52, %v2300_v46  ;;  %vm2273_vm5 = vmor %vm2271_vm11, %vm2272_vm0 }
 0x845   :  { %v2270_v15 = vadd.f32 %v6425_v11, %v2269_v25  ;;  %v6494_v53 = vpop.eup %4325  ;;  %v2327_v4 = vmul.f32 %v6481_v19, %v6402_v54  ;;  %4327 = vrcp.f32 %v6471_v61  ;;  %v2309_v10 = vsel %vm6421_vm13, %v6395_v45, %v2304_v63 }
 0x846   :  { %v2289_v52 = vsel %vm2288_vm3, %v6410_v20, %v2285_v21  ;;  %v2343_v36 = vsub.f32 1.0, %v2342_v3  ;;  %v2312_v1 = vmul.f32 %v6494_v53, %v6414_v18  ;;  %4329 = vrcp.f32 %v6473_v17 }
 0x847   :  { %v6507_v55 = vmul.f32 %v2309_v10, %v6215_v26  ;;  %v2328_v59 = vsub.f32 1.0, %v2327_v4  ;;  %4331 = vrcp.f32 %v6486_v56  ;;  %v2294_v45 = vsel %vm6438_vm4, %v6408_v8, %v2289_v52 }
 0x848   :  { %v2274_v20 = vsel %vm2273_vm5, %v6425_v11, %v2270_v15  ;;  %v2313_v38 = vsub.f32 1.0, %v2312_v1  ;;  %v6519_v16 = vmul.f32 %v2294_v45, %v6211_v5  ;;  %vm2276_vm15 = vcmp.eq.f32.partialorder %v2275_v2, 8.507059e+37 }
 0x849   :  { %v2278_v26 = vor.u32 1.1754944e-38, %v2277_v51  ;;  %v2344_v9 = vmul.f32 %v6469_v60, %v2343_v36  ;;  %vm2346_vm9 = vweird.f32 %v6400_v22  ;;  %vm2347_vm10 = vweird.f32 %v6469_v60 }
 0x84a   :  { %7933 = vst [vmem:[#allocation52_spill] sm:$0xff] %v6519_v16  ;;  %2488 = vperm.xlu2 %4134, %v6507_v55   ;;  %v2350_v7 = vand.u32 2147483647, %v6400_v22  ;;  %v2201_v8 = vpop.xlane.xlu0 %2200  ;;  %v2198_v35 = vpop.xlane.xlu1 %2197  ;;  %v2352_v11 = vand.u32 2147483648, %v6400_v22  ;;  %v2329_v5 = vmul.f32 %v6481_v19, %v2328_v59  ;;  %vm2331_vm13 = vweird.f32 %v6402_v54  ;;  %vm2348_vm11 = vmor %vm2346_vm9, %vm2347_vm10 }
 0x84b   :  { %v2279_v39 = vsel %vm2276_vm15, %v2278_v26, %v2274_v20  ;;  %v6529_v46 = vpop.eup %4327  ;;  %v6534_v2 = vadd.f32 1e-16, %v2201_v8  ;;  %v6536_v13 = vadd.f32 1e-16, %v2198_v35  ;;  %v2195_v21 = vpop.xlane.xlu2 %2194  ;;  %v2345_v51 = vadd.f32 %v6469_v60, %v2344_v9 }
 0x84c   :  { %v6532_v25 = vmul.f32 %v2279_v39, %v6220_v29  ;;  %v6539_v3 = vpop.eup %4329  ;;  %v2387_v63 = vmul.f32 %v6529_v46, %v6471_v61  ;;  %2483 = vperm.xlu1 %4136, %v6519_v16   ;;  %v6544_v15 = vadd.f32 1e-16, %v2195_v21  ;;  %vm2351_vm4 = vcmp.eq.f32.partialorder %v2350_v7, 8.507059e+37 }
 0x84d   :  { %v2353_v29 = vor.u32 1.1754944e-38, %v2352_v11  ;;  %v6550_v4 = vpop.eup %4331  ;;  %v2372_v10 = vmul.f32 %v6539_v3, %v6473_v17  ;;  %4333 = vrcp.f32 %v6534_v2  ;;  %v2349_v52 = vsel %vm2348_vm11, %v6469_v60, %v2345_v51 }
 0x84e   :  { %7934 = vst [vmem:[#allocation54_spill] sm:$0xff] %v6532_v25  ;;  %2478 = vperm.xlu0 %4135, %v6532_v25   ;;  %v2330_v36 = vadd.f32 %v6481_v19, %v2329_v5  ;;  %v2388_v1 = vsub.f32 1.0, %v2387_v63  ;;  %v2357_v22 = vmul.f32 %v6550_v4, %v6486_v56  ;;  %4335 = vrcp.f32 %v6536_v13 }
 0x84f   :  { %v2354_v59 = vsel %vm2351_vm4, %v2353_v29, %v2349_v52  ;;  %v2373_v45 = vsub.f32 1.0, %v2372_v10  ;;  %4337 = vrcp.f32 %v6544_v15  ;;  %vm2332_vm6 = vweird.f32 %v6481_v19 }
 0x850   :  { %v6563_v20 = vmul.f32 %v2354_v59, %v6233_v48  ;;  %v2358_v26 = vsub.f32 1.0, %v2357_v22  ;;  %vm6568_vm14 = vmor %vm2331_vm13, %vm2332_vm6  ;;  %v2335_v9 = vand.u32 2147483647, %v6402_v54  ;;  %v2337_v7 = vand.u32 2147483648, %v6402_v54 }
 0x851   :  { %v2314_v39 = vmul.f32 %v6494_v53, %v2313_v38  ;;  %v2334_v48 = vsel %vm6568_vm14, %v6481_v19, %v2330_v36  ;;  %vm2316_vm1 = vweird.f32 %v6414_v18  ;;  %vm2317_vm0 = vweird.f32 %v6494_v53 }
 0x852   :  { %2503 = vperm.xlu2 %4134, %v6563_v20   ;;  %v2320_v8 = vand.u32 2147483647, %v6414_v18  ;;  %vm2336_vm2 = vcmp.eq.f32.partialorder %v2335_v9, 8.507059e+37  ;;  %v2338_v35 = vor.u32 1.1754944e-38, %v2337_v7  ;;  %v2322_v54 = vand.u32 2147483648, %v6414_v18  ;;  %vm6586_vm3 = vmor %vm2316_vm1, %vm2317_vm0 }
 0x853   :  { %v2315_v11 = vadd.f32 %v6494_v53, %v2314_v39  ;;  %v6584_v5 = vpop.eup %4333  ;;  %v2204_v21 = vpop.xlane.xlu2 %2203  ;;  %v2389_v51 = vmul.f32 %v6529_v46, %v2388_v1  ;;  %vm2391_vm15 = vweird.f32 %v6471_v61  ;;  %vm2392_vm9 = vweird.f32 %v6529_v46 }
 0x854   :  { %vm6590_vm5 = vcmp.eq.f32.partialorder %v2320_v8, 8.507059e+37  ;;  %v6597_v63 = vpop.eup %4335  ;;  %v2432_v18 = vmul.f32 %v6584_v5, %v6534_v2  ;;  %v2339_v29 = vsel %vm2336_vm2, %v2338_v35, %v2334_v48  ;;  %v2323_v52 = vor.u32 1.1754944e-38, %v2322_v54  ;;  %vm6622_vm10 = vmor %vm2391_vm15, %vm2392_vm9 }
 0x855   :  { %v2319_v10 = vsel %vm6586_vm3, %v6494_v53, %v2315_v11  ;;  %v6604_v36 = vpop.eup %4337  ;;  %v2417_v1 = vmul.f32 %v6597_v63, %v6536_v13  ;;  %v6609_v22 = vmul.f32 %v2339_v29, %v6229_v28  ;;  %v6611_v59 = vadd.f32 1e-16, %v2204_v21 }
 0x856   :  { %v2390_v60 = vadd.f32 %v6529_v46, %v2389_v51  ;;  %v2433_v9 = vsub.f32 1.0, %v2432_v18  ;;  %v6616_v7 = vmul.f32 %v6604_v36, %v6544_v15  ;;  %v2324_v53 = vsel %vm6590_vm5, %v2323_v52, %v2319_v10 }
 0x857   :  { %v2395_v28 = vand.u32 2147483647, %v6471_v61  ;;  %v2418_v48 = vsub.f32 1.0, %v2417_v1  ;;  %2498 = vperm.xlu1 %4136, %v6609_v22   ;;  %v6629_v8 = vmul.f32 %v2324_v53, %v6238_v34  ;;  %4339 = vrcp.f32 %v6611_v59 }
 0x858   :  { %v2394_v35 = vsel %vm6622_vm10, %v6529_v46, %v2390_v60  ;;  %v2403_v11 = vsub.f32 1.0, %v6616_v7  ;;  %v2397_v38 = vand.u32 2147483648, %v6471_v61  ;;  %v2374_v19 = vmul.f32 %v6539_v3, %v2373_v45 }
 0x859   :  { %vm6636_vm13 = vcmp.eq.f32.partialorder %v2395_v28, 8.507059e+37  ;;  %2493 = vperm.xlu0 %4135, %v6629_v8   ;;  %vm2376_vm11 = vweird.f32 %v6473_v17  ;;  %vm2377_vm4 = vweird.f32 %v6539_v3  ;;  %v2380_v34 = vand.u32 2147483647, %v6473_v17 }
 0x85a   :  { %v2382_v46 = vand.u32 2147483648, %v6473_v17  ;;  %v2398_v21 = vor.u32 1.1754944e-38, %v2397_v38  ;;  %v2375_v51 = vadd.f32 %v6539_v3, %v2374_v19  ;;  %v2359_v18 = vmul.f32 %v6550_v4, %v2358_v26  ;;  %vm2378_vm14 = vmor %vm2376_vm11, %vm2377_vm4 }
 0x85b   :  { %vm2361_vm6 = vweird.f32 %v6486_v56  ;;  %vm2381_vm1 = vcmp.eq.f32.partialorder %v2380_v34, 8.507059e+37  ;;  %vm2362_vm0 = vweird.f32 %v6550_v4  ;;  %v2365_v45 = vand.u32 2147483647, %v6486_v56 }
 0x85c   :  { %v2383_v61 = vor.u32 1.1754944e-38, %v2382_v46  ;;  %v2399_v29 = vsel %vm6636_vm13, %v2398_v21, %v2394_v35  ;;  %v2379_v10 = vsel %vm2378_vm14, %v6539_v3, %v2375_v51  ;;  %v2360_v17 = vadd.f32 %v6550_v4, %v2359_v18  ;;  %vm2363_vm2 = vmor %vm2361_vm6, %vm2362_vm0 }
 0x85d   :  { %v2367_v52 = vand.u32 2147483648, %v6486_v56  ;;  %v6657_v1 = vpop.eup %4339  ;;  %v6660_v26 = vmul.f32 %v2399_v29, %v6251_v57  ;;  %vm2366_vm3 = vcmp.eq.f32.partialorder %v2365_v45, 8.507059e+37  ;;  %v2434_v7 = vmul.f32 %v6584_v5, %v2433_v9 }
 0x85e   :  { %v2384_v60 = vsel %vm2381_vm1, %v2383_v61, %v2379_v10  ;;  %v2447_v53 = vmul.f32 %v6657_v1, %v6611_v59  ;;  %v2364_v3 = vsel %vm2363_vm2, %v6550_v4, %v2360_v17  ;;  %vm2436_vm5 = vweird.f32 %v6534_v2 }
 0x85f   :  { %v6666_v39 = vmul.f32 %v2384_v60, %v6247_v62  ;;  %v2368_v28 = vor.u32 1.1754944e-38, %v2367_v52  ;;  %2518 = vperm.xlu2 %4134, %v6660_v26   ;;  %v2435_v56 = vadd.f32 %v6584_v5, %v2434_v7  ;;  %vm2437_vm15 = vweird.f32 %v6584_v5 }
 0x860   :  { %v2440_v57 = vand.u32 2147483647, %v6534_v2  ;;  %vm6675_vm9 = vmor %vm2436_vm5, %vm2437_vm15  ;;  %v2442_v62 = vand.u32 2147483648, %v6534_v2  ;;  %v2419_v4 = vmul.f32 %v6597_v63, %v2418_v48  ;;  %v2448_v54 = vsub.f32 1.0, %v2447_v53 }
 0x861   :  { %2513 = vperm.xlu1 %4136, %v6666_v39   ;;  %v2369_v9 = vsel %vm2366_vm3, %v2368_v28, %v2364_v3  ;;  %v2439_v19 = vsel %vm6675_vm9, %v6584_v5, %v2435_v56  ;;  %vm2421_vm10 = vweird.f32 %v6536_v13  ;;  %vm2422_vm13 = vweird.f32 %v6597_v63 }
 0x862   :  { %v6682_v38 = vmul.f32 %v2369_v9, %v6256_v37  ;;  %v2443_v34 = vor.u32 1.1754944e-38, %v2442_v62  ;;  %v2420_v46 = vadd.f32 %v6597_v63, %v2419_v4  ;;  %v2425_v21 = vand.u32 2147483647, %v6536_v13  ;;  %vm6692_vm4 = vmor %vm2421_vm10, %vm2422_vm13 }
 0x863   :  { %vm2441_vm11 = vcmp.eq.f32.partialorder %v2440_v57, 8.507059e+37  ;;  %v2427_v37 = vand.u32 2147483648, %v6536_v13  ;;  %v2404_v5 = vmul.f32 %v6604_v36, %v2403_v11  ;;  %vm2407_vm6 = vweird.f32 %v6604_v36 }
 0x864   :  { %2508 = vperm.xlu0 %4135, %v6682_v38   ;;  %v2444_v48 = vsel %vm2441_vm11, %v2443_v34, %v2439_v19  ;;  %v2424_v51 = vsel %vm6692_vm4, %v6597_v63, %v2420_v46  ;;  %vm2406_vm14 = vweird.f32 %v6544_v15  ;;  %v2410_v18 = vand.u32 2147483647, %v6544_v15  ;;  %v6733_v46 = vld [vmem:[%s7648_s10 + $0x20] sm:$0xff] }
 0x865   :  { %v6705_v61 = vmul.f32 %v2444_v48, %v6267_v23  ;;  %v2428_v45 = vor.u32 1.1754944e-38, %v2427_v37  ;;  %v2405_v29 = vadd.f32 %v6604_v36, %v2404_v5  ;;  %v2412_v13 = vand.u32 2147483648, %v6544_v15  ;;  %vm2408_vm0 = vmor %vm2406_vm14, %vm2407_vm6  ;;  %v6745_v37 = vld [vmem:[%s7648_s10] sm:$0xff]  ;;  %v6751_v48 = vld [vmem:[%s7648_s10 + $0x38] sm:$0xff] }
 0x866   :  { %vm2426_vm1 = vcmp.eq.f32.partialorder %v2425_v21, 8.507059e+37  ;;  %vm2411_vm2 = vcmp.eq.f32.partialorder %v2410_v18, 8.507059e+37  ;;  %v2449_v11 = vmul.f32 %v6657_v1, %v2448_v54  ;;  %vm2452_vm3 = vweird.f32 %v6657_v1  ;;  %v6739_v21 = vld [vmem:[%s7648_s10 + $0x8] sm:$0xff]  ;;  %v6757_v18 = vld [vmem:[%s7648_s10 + $0x30] sm:$0xff] }
 0x867   :  { %2533 = vperm.xlu2 %4134, %v6705_v61   ;;  %v2429_v63 = vsel %vm2426_vm1, %v2428_v45, %v2424_v51  ;;  %v2409_v10 = vsel %vm2408_vm0, %v6604_v36, %v2405_v29  ;;  %v2413_v17 = vor.u32 1.1754944e-38, %v2412_v13  ;;  %vm2451_vm5 = vweird.f32 %v6611_v59  ;;  %v6763_v29 = vld [vmem:[%s7648_s10 + $0x10] sm:$0xff] }
 0x868   :  { %v6715_v23 = vmul.f32 %v2429_v63, %v6263_v31  ;;  %v2450_v15 = vadd.f32 %v6657_v1, %v2449_v11  ;;  %v2455_v52 = vand.u32 2147483647, %v6611_v59  ;;  %v2457_v60 = vand.u32 2147483648, %v6611_v59  ;;  %vm2453_vm15 = vmor %vm2451_vm5, %vm2452_vm3  ;;  %v6769_v11 = vld [vmem:[%s7648_s10 + $0x28] sm:$0xff] }
 0x869   :  { %v2414_v7 = vsel %vm2411_vm2, %v2413_v17, %v2409_v10  ;;  %vm7949_vm11 = vcmp.gt.f32.partialorder %v7918_v50, 0.0  ;;  %vm7955_vm1 = vcmp.gt.f32.partialorder %v7912_v41, 0.0  ;;  %v7956_v50 = vmov 0 }
 0x86a   :  { %2528 = vperm.xlu1 %4136, %v6715_v23   ;;  %v6722_v53 = vmul.f32 %v2414_v7, %v6272_v12  ;;  %v2454_v36 = vsel %vm2453_vm15, %v6657_v1, %v2450_v15  ;;  %v2458_v3 = vor.u32 1.1754944e-38, %v2457_v60  ;;  %vm2456_vm9 = vcmp.eq.f32.partialorder %v2455_v52, 8.507059e+37  ;;  %v6776_v52 = vld [vmem:[%s7648_s10 + $0x18] sm:$0xff]  ;;  %v6782_v7 = vld [vmem:[%s7648_s10 + $0x50] sm:$0xff] }
 0x86b   :  { %vm7958_vm5 = vcmp.gt.f32.partialorder %v7916_v30, 0.0 }
 0x86c   :  { %2523 = vperm.xlu0 %4135, %v6722_v53   ;;  %v2459_v31 = vsel %vm2456_vm9, %v2458_v3, %v2454_v36  ;;  %v6788_v3 = vld [vmem:[%s7648_s10 + $0x48] sm:$0xff] }
 0x86d   :  { %v6727_v28 = vmul.f32 %v2459_v31, %v6278_v58 }
 0x874   :  { %2538 = vperm.xlu0 %4135, %v6727_v28  }
 0x89c   :  { %v2474_v57 = vpop.permute.xlu2 %2473 }
 0x89d   :  { %v2543_v13 = vmul.f32 %v6763_v29, %v2474_v57 }
 0x8a4   :  { %v2489_v62 = vpop.permute.xlu2 %2488 }
 0x8a5   :  { %v2546_v63 = vmul.f32 %v6769_v11, %v2489_v62 }
 0x8ac   :  { %v2504_v54 = vpop.permute.xlu2 %2503 }
 0x8b3   :  { %v2469_v56 = vpop.permute.xlu0 %2468 }
 0x8b4   :  { %v2542_v2 = vmul.f32 %v6739_v21, %v2469_v56 }
 0x8b6   :  { %v2464_v59 = vpop.permute.xlu1 %2463  ;;  %v2558_v57 = vsel %vm1826_vm12, %v2542_v2, -inf }
 0x8b7   :  { %v2541_v5 = vmul.f32 %v6745_v37, %v2464_v59  ;;  %v6794_v59 = vld [vmem:[%s7648_s10 + $0x40] sm:$0xff] }
 0x8b8   :  { %v2549_v56 = vmul.f32 %v6794_v59, %v2504_v54  ;;  %v2559_v54 = vsel %vm1826_vm12, %v2543_v13, -inf }
 0x8b9   :  { %v2519_v34 = vpop.permute.xlu2 %2518 }
 0x8ba   :  { %v2569_v13 = vsel %vm1826_vm12, %v2549_v56, -inf }
 0x8be   :  { %v2484_v9 = vpop.permute.xlu1 %2483 }
 0x8bf   :  { %v2545_v58 = vmul.f32 %v6733_v46, %v2484_v9  ;;  %v2557_v9 = vsel %vm1826_vm12, %v2541_v5, -inf }
 0x8c0   :  { %v2479_v35 = vpop.permute.xlu0 %2478 }
 0x8c1   :  { %v2561_v15 = vsel %vm1826_vm12, %v2545_v58, -inf  ;;  %v2544_v60 = vmul.f32 %v6776_v52, %v2479_v35  ;;  %v2563_v58 = vsel %vm1826_vm12, %v2546_v63, -inf  ;;  %v2534_v5 = vpop.permute.xlu2 %2533  ;;  %v4419_v63 = vld [vmem:[%s7648_s10 + $0x70] sm:$0xff] }
 0x8c2   :  { %v2562_v2 = vmax.f32 %v2557_v9, %v2561_v15  ;;  %v2564_v43 = vmax.f32 %v2558_v57, %v2563_v58  ;;  %v2555_v15 = vmul.f32 %v4419_v63, %v2534_v5 }
 0x8c3   :  { %v2560_v6 = vsel %vm1826_vm12, %v2544_v60, -inf }
 0x8c4   :  { %v2570_v42 = vmax.f32 %v2562_v2, %v2569_v13 }
 0x8c9   :  { %v2499_v12 = vpop.permute.xlu1 %2498 }
 0x8ca   :  { %v2548_v51 = vmul.f32 %v6751_v48, %v2499_v12  ;;  %v4416_v12 = vld [vmem:[%s7648_s10 + $0x68] sm:$0xff] }
 0x8cb   :  { %v2494_v4 = vpop.permute.xlu0 %2493 }
 0x8cc   :  { %v2547_v45 = vmul.f32 %v6757_v18, %v2494_v4  ;;  %v2567_v35 = vsel %vm1826_vm12, %v2548_v51, -inf  ;;  %v4418_v51 = vld [vmem:[%s7648_s10 + $0x58] sm:$0xff] }
 0x8cd   :  { %v2568_v47 = vmax.f32 %v2560_v6, %v2567_v35  ;;  %v4420_v6 = vld [vmem:[%s7648_s10 + $0x78] sm:$0xff] }
 0x8ce   :  { %v2565_v62 = vsel %vm1826_vm12, %v2547_v45, -inf  ;;  %v2552_v45 = vmul.f32 %v4418_v51, %v2519_v34 }
 0x8d3   :  { %v2514_v1 = vpop.permute.xlu1 %2513 }
 0x8d4   :  { %v2551_v36 = vmul.f32 %v6782_v7, %v2514_v1  ;;  %v4417_v1 = vld [vmem:[%s7648_s10 + $0x60] sm:$0xff] }
 0x8d6   :  { %v2509_v19 = vpop.permute.xlu0 %2508 }
 0x8d7   :  { %v2550_v31 = vmul.f32 %v6788_v3, %v2509_v19 }
 0x8d9   :  { %v2571_v14 = vsel %vm1826_vm12, %v2550_v31, -inf  ;;  %v2575_v31 = vsel %vm1826_vm12, %v2552_v45, -inf }
 0x8da   :  { %v2572_v60 = vmax.f32 %v2564_v43, %v2571_v14 }
 0x8dc   :  { %v2529_v10 = vpop.permute.xlu1 %2528 }
 0x8dd   :  { %v2554_v4 = vmul.f32 %v4416_v12, %v2529_v10  ;;  %v2573_v10 = vsel %vm1826_vm12, %v2551_v36, -inf }
 0x8de   :  { %v2524_v17 = vpop.permute.xlu0 %2523 }
 0x8df   :  { %v2553_v19 = vmul.f32 %v4417_v1, %v2524_v17  ;;  %v2566_v17 = vmax.f32 %v2559_v54, %v2565_v62  ;;  %v2579_v9 = vsel %vm1826_vm12, %v2554_v4, -inf  ;;  %v2576_v62 = vmax.f32 %v2568_v47, %v2575_v31 }
 0x8e0   :  { %v2580_v57 = vmax.f32 %v2572_v60, %v2579_v9  ;;  %v2581_v54 = vsel %vm1826_vm12, %v2555_v15, -inf }
 0x8e1   :  { %v2577_v34 = vsel %vm1826_vm12, %v2553_v19, -inf  ;;  %v2574_v25 = vmax.f32 %v2566_v17, %v2573_v10 }
 0x8e2   :  { %v2578_v35 = vmax.f32 %v2570_v42, %v2577_v34 }
 0x8e3   :  { %v2582_v58 = vmax.f32 %v2574_v25, %v2581_v54 }
 0x8e4   :  { %v2585_v5 = vmax.f32 %v2578_v35, %v2580_v57 }
 0x8e6   :  { %v2539_v36 = vpop.permute.xlu0 %2538 }
 0x8e7   :  { %v2556_v56 = vmul.f32 %v4420_v6, %v2539_v36 }
 0x8e9   :  { %v2583_v4 = vsel %vm1826_vm12, %v2556_v56, -inf }
 0x8ea   :  { %v2584_v19 = vmax.f32 %v2576_v62, %v2583_v4 }
 0x8ec   :  { %v2586_v43 = vmax.f32 %v2582_v58, %v2584_v19 }
 0x8ee   :  { %v2587_v14 = vmax.f32 %v2585_v5, %v2586_v43 }
 0x8f0   :  { %v2588_v2 = vrot.slane %v2587_v14, 4 }
 0x8f2   :  { %v2589_v10 = vmax.f32 %v2587_v14, %v2588_v2  ;;  %v4456_v2 = vmov 1.0  }
 0x8f4   :  { %v2590_v45 = vrot.slane %v2589_v10, 2 }
 0x8f6   :  { %v2591_v17 = vmax.f32 %v2589_v10, %v2590_v45 }
 0x8f8   :  { %v2592_v13 = vrot.slane %v2591_v17, 1 }
 0x8fa   :  { %v2593_v27 = vmax.f32 %v2591_v17, %v2592_v13 }
 0x8fc   :  { %v3985_v16 = vadd.f32 -1e-07, %v2593_v27 }
 0x8fe   :  { %v2595_v36 = vmin.f32 %v3985_v16, 0.11 }
 0x900   :  { %v2611_v9 = vmul.f32 %v4420_v6, %v2595_v36  ;;  %v2610_v42 = vmul.f32 %v4419_v63, %v2595_v36  ;;  %v2609_v47 = vmul.f32 %v4416_v12, %v2595_v36  ;;  %v2608_v60 = vmul.f32 %v4417_v1, %v2595_v36 }
 0x901   :  { %v2607_v31 = vmul.f32 %v4418_v51, %v2595_v36  ;;  %v2606_v56 = vmul.f32 %v6782_v7, %v2595_v36  ;;  %v2605_v12 = vmul.f32 %v6788_v3, %v2595_v36  ;;  %v2604_v63 = vmul.f32 %v6794_v59, %v2595_v36 }
 0x902   :  { %v2657_v15 = vsel %vm1826_vm12, %v2611_v9, 0.0  ;;  %v2654_v34 = vsel %vm1826_vm12, %v2610_v42, 0.0  ;;  %v2651_v25 = vsel %vm1826_vm12, %v2609_v47, 0.0  ;;  %v2648_v57 = vsel %vm1826_vm12, %v2608_v60, 0.0  ;;  %v7983_v60 = vld [vmem:[#allocation36_spill] sm:$0xff] }
 0x903   :  { %2658 = vadd.xlane.f32.xlu1 %v2657_v15  ;;  %2655 = vadd.xlane.f32.xlu2 %v2654_v34  ;;  %v2645_v27 = vsel %vm1826_vm12, %v2607_v31, 0.0  ;;  %v2642_v16 = vsel %vm1826_vm12, %v2606_v56, 0.0  ;;  %v2603_v6 = vmul.f32 %v6751_v48, %v2595_v36  ;;  %v2639_v1 = vsel %vm1826_vm12, %v2605_v12, 0.0  ;;  %v7986_v12 = vld [vmem:[#allocation45_spill] sm:$0xff] }
 0x904   :  { %2652 = vadd.xlane.f32.xlu0 %v2651_v25  ;;  %v2636_v51 = vsel %vm1826_vm12, %v2604_v63, 0.0  ;;  %v2602_v35 = vmul.f32 %v6757_v18, %v2595_v36  ;;  %v2601_v62 = vmul.f32 %v6769_v11, %v2595_v36  ;;  %v2600_v54 = vmul.f32 %v6733_v46, %v2595_v36  ;;  %v8012_v25 = vld [vmem:[#allocation17_spill] sm:$0xff] }
 0x905   :  { %v2633_v7 = vsel %vm1826_vm12, %v2603_v6, 0.0  ;;  %v2599_v4 = vmul.f32 %v6776_v52, %v2595_v36  ;;  %v2598_v58 = vmul.f32 %v6763_v29, %v2595_v36  ;;  %v2597_v19 = vmul.f32 %v6739_v21, %v2595_v36  ;;  %v7987_v6 = vld [vmem:[#allocation33_spill] sm:$0xff] }
 0x906   :  { %v2630_v3 = vsel %vm1826_vm12, %v2602_v35, 0.0  ;;  %v2627_v59 = vsel %vm1826_vm12, %v2601_v62, 0.0  ;;  %v2624_v48 = vsel %vm1826_vm12, %v2600_v54, 0.0  ;;  %v2596_v5 = vmul.f32 %v6745_v37, %v2595_v36  ;;  %v7991_v35 = vld [vmem:[#allocation34_spill] sm:$0xff] }
 0x907   :  { %v2621_v18 = vsel %vm1826_vm12, %v2599_v4, 0.0  ;;  %v2618_v11 = vsel %vm1826_vm12, %v2598_v58, 0.0  ;;  %v2615_v46 = vsel %vm1826_vm12, %v2597_v19, 0.0  ;;  %v7950_v29 = vmov 0 }
 0x908   :  { %v2612_v43 = vsel %vm1826_vm12, %v2596_v5, 0.0  ;;  %vm7952_vm12 = vcmp.gt.f32.partialorder %v7914_v44, 0.0 }
 0x90b   :  { %2649 = vadd.xlane.f32.xlu1 %v2648_v57  ;;  %2646 = vadd.xlane.f32.xlu2 %v2645_v27 }
 0x90c   :  { %2643 = vadd.xlane.f32.xlu0 %v2642_v16  ;;  %v7985_v16 = vld [vmem:[#allocation54_spill] sm:$0xff] }
 0x913   :  { %2640 = vadd.xlane.f32.xlu1 %v2639_v1  ;;  %2637 = vadd.xlane.f32.xlu2 %v2636_v51 }
 0x914   :  { %2634 = vadd.xlane.f32.xlu0 %v2633_v7  ;;  %v7989_v7 = vld [vmem:[#allocation22_spill] sm:$0xff] }
 0x91b   :  { %2631 = vadd.xlane.f32.xlu1 %v2630_v3  ;;  %2628 = vadd.xlane.f32.xlu2 %v2627_v59  ;;  %v7992_v59 = vld [vmem:[#allocation37_spill] sm:$0xff] }
 0x91c   :  { %2625 = vadd.xlane.f32.xlu0 %v2624_v48 }
 0x923   :  { %2622 = vadd.xlane.f32.xlu1 %v2621_v18  ;;  %2619 = vadd.xlane.f32.xlu2 %v2618_v11  ;;  %v7996_v18 = vld [vmem:[#allocation31_spill] sm:$0xff] }
 0x924   :  { %2616 = vadd.xlane.f32.xlu0 %v2615_v46  ;;  %v8021_v46 = vld [vmem:[#allocation7_spill] sm:$0xff] }
 0x92b   :  { %2613 = vadd.xlane.f32.xlu1 %v2612_v43  ;;  %v8001_v43 = vld [vmem:[#allocation16_spill] sm:$0xff] }
 0x976   :  { %v2659_v14 = vpop.xlane.xlu1 %2658  ;;  %v2656_v52 = vpop.xlane.xlu2 %2655 }
 0x977   :  { %vm2675_vm10 = vcmp.gt.f32.partialorder %v6727_v28, %v2659_v14  ;;  %vm2674_vm13 = vcmp.gt.f32.partialorder %v6705_v61, %v2656_v52  ;;  %v2653_v21 = vpop.xlane.xlu0 %2652 }
 0x978   :  { %vm6858_vm4 = vmand %vm2675_vm10, %vm7949_vm11  ;;  %vm2673_vm6 = vcmp.gt.f32.partialorder %v6715_v23, %v2653_v21  ;;  %vm7961_vm10 = vcmp.gt.f32.partialorder %v7907_v33, 0.0  ;;  %vm7964_vm11 = vcmp.gt.f32.partialorder %v7905_v32, 0.0 }
 0x979   :  { %v7951_v29 = vsel %vm6858_vm4, 4294967295, %v7950_v29  ;;  %3986 = vmatpush.msk.msra.mxu0 %vm6858_vm4, %v4456_v2  ;;  %vm6868_vm14 = vmand %vm2674_vm13, %vm7952_vm12  ;;  %vm7984_vm4 = vcmp.gt.f32.partialorder %v7983_v60, 0.0  ;;  %v4109_v60 = vld [vmem:[%s7646_s8 + $0x8] sm:$0xff] }
 0x97a   :  { %vm6877_vm0 = vmand %vm2673_vm6, %vm7955_vm1  ;;  %4118 = vmatpush.bf16.msra.mxu1 %v4109_v60 }
 0x97b   :  { %3987 = vmatpush.msk.msra.mxu0 %vm6868_vm14, %v4456_v2  ;;  %v7957_v50 = vsel %vm6877_vm0, 4294967295, %v7956_v50 }
 0x97d   :  { %3988 = vmatpush.msk.msra.mxu0 %vm6877_vm0, %v4456_v2 }
 0x97e   :  { %v2650_v10 = vpop.xlane.xlu1 %2649  ;;  %v2647_v44 = vpop.xlane.xlu2 %2646 }
 0x97f   :  { %vm2672_vm2 = vcmp.gt.f32.partialorder %v6722_v53, %v2650_v10  ;;  %vm2671_vm3 = vcmp.gt.f32.partialorder %v6660_v26, %v2647_v44  ;;  %v2644_v45 = vpop.xlane.xlu0 %2643 }
 0x980   :  { %vm6888_vm15 = vmand %vm2672_vm2, %vm7958_vm5  ;;  %vm2670_vm9 = vcmp.gt.f32.partialorder %v6666_v39, %v2644_v45  ;;  %vm7967_vm2 = vcmp.gt.f32.partialorder %v7909_v24, 0.0 }
 0x981   :  { %3989 = vmatpush.msk.msra.mxu0 %vm6888_vm15, %v4456_v2  ;;  %vm6898_vm13 = vmand %vm2671_vm3, %vm7961_vm10 }
 0x982   :  { %vm6907_vm6 = vmand %vm2670_vm9, %vm7964_vm11  ;;  %vm7970_vm9 = vcmp.gt.f32.partialorder %v7898_v0, 0.0  ;;  %vm7973_vm11 = vcmp.gt.f32.partialorder %v7896_v49, 0.0  ;;  %v7979_v49 = vld [vmem:[#allocation52_spill] sm:$0xff] }
 0x983   :  { %3990 = vmatpush.msk.msra.mxu0 %vm6898_vm13, %v4456_v2 }
 0x985   :  { %3991 = vmatpush.msk.msra.mxu0 %vm6907_vm6, %v4456_v2 }
 0x986   :  { %v2641_v13 = vpop.xlane.xlu1 %2640  ;;  %v2638_v33 = vpop.xlane.xlu2 %2637 }
 0x987   :  { %vm2669_vm12 = vcmp.gt.f32.partialorder %v6682_v38, %v2641_v13  ;;  %vm2668_vm1 = vcmp.gt.f32.partialorder %v6563_v20, %v2638_v33  ;;  %v2635_v36 = vpop.xlane.xlu0 %2634 }
 0x988   :  { %vm6918_vm3 = vmand %vm2669_vm12, %vm7967_vm2  ;;  %vm2667_vm5 = vcmp.gt.f32.partialorder %v6609_v22, %v2635_v36 }
 0x989   :  { %3992 = vmatpush.msk.msra.mxu0 %vm6918_vm3, %v4456_v2  ;;  %vm6928_vm10 = vmand %vm2668_vm1, %vm7970_vm9  ;;  %vm7976_vm9 = vcmp.gt.f32.partialorder %v7900_v40, 0.0  ;;  %v4457_v40 = vmov 0.0  }
 0x98a   :  { %vm6937_vm12 = vmand %vm2667_vm5, %vm7973_vm11  ;;  %v6980_v1 = vsel %vm6928_vm10, 1.0, %v4457_v40  ;;  %v7028_v5 = vsel %vm6898_vm13, 1.0, %v4457_v40  ;;  %v7065_v37 = vsel %vm6907_vm6, 1.0, %v4457_v40  ;;  %v7070_v41 = vsel %vm6888_vm15, 1.0, %v4457_v40 }
 0x98b   :  { %3993 = vmatpush.msk.msra.mxu0 %vm6928_vm10, %v4456_v2  ;;  %vm7993_vm10 = vcmp.gt.f32.partialorder %v7992_v59, 0.0  ;;  %v2973_v4 = vmul.f32 %v6980_v1, %v6563_v20  ;;  %v7997_v20 = vld [vmem:[#allocation38_spill] sm:$0xff]  ;;  %v2976_v21 = vmul.f32 %v7028_v5, %v6660_v26  ;;  %v7043_v10 = vsel %vm6937_vm12, 1.0, %v4457_v40  ;;  %v8018_v59 = vld [vmem:[#allocation25_spill] sm:$0xff] }
 0x98c   :  { %v2972_v26 = vmul.f32 %v7043_v10, %v6609_v22  ;;  %v2977_v30 = vmul.f32 %v7070_v41, %v6722_v53  ;;  %v4147_v24 = vpack.i.bf16 %v7028_v5, %v7065_v37  ;;  %vm8020_vm15 = vcmask 261120  }
 0x98d   :  { %3994 = vmatpush.msk.msra.mxu0 %vm6937_vm12, %v4456_v2  ;;  %vm8024_vm13 = vmmov %vm8020_vm15 }
 0x98e   :  { %v2632_v42 = vpop.xlane.xlu1 %2631  ;;  %v2629_v0 = vpop.xlane.xlu2 %2628  ;;  %vm8027_vm6 = vmmov %vm8024_vm13 }
 0x98f   :  { %vm2666_vm1 = vcmp.gt.f32.partialorder %v6629_v8, %v2632_v42  ;;  %vm2665_vm2 = vcmp.gt.f32.partialorder %v6507_v55, %v2629_v0  ;;  %v2626_v47 = vpop.xlane.xlu0 %2625  ;;  %v8009_v42 = vld [vmem:[#allocation10_spill] sm:$0xff] }
 0x990   :  { %vm6948_vm7 = vmand %vm2666_vm1, %vm7976_vm9  ;;  %vm2664_vm5 = vcmp.gt.f32.partialorder %v7979_v49, %v2626_v47  ;;  %vm7988_vm1 = vcmp.gt.f32.partialorder %v7987_v6, 0.0  ;;  %v8010_v47 = vld [vmem:[#allocation11_spill] sm:$0xff] }
 0x991   :  { %vm6955_vm11 = vmand %vm2665_vm2, %vm1687_vm8  ;;  %3995 = vmatpush.msk.msra.mxu0 %vm6948_vm7, %v4456_v2  ;;  %v7017_v11 = vsel %vm6948_vm7, 1.0, %v4457_v40  ;;  %vm8004_vm7 = vnez %v7957_v50  ;;  %v8007_v50 = vld [vmem:[#allocation19_spill] sm:$0xff] }
 0x992   :  { %vm2680_vm0 = vmand %vm2664_vm5, %vm7984_vm4  ;;  %v7011_v19 = vsel %vm6955_vm11, 1.0, %v4457_v40  ;;  %v2971_v52 = vmul.f32 %v7017_v11, %v6629_v8  ;;  %v8002_v8 = vld [vmem:[#allocation18_spill] sm:$0xff]  ;;  %v7087_v17 = vsel %vm8004_vm7, 1.0, %v4457_v40  ;;  %v4157_v15 = vpack.i.bf16 %v7043_v10, %v7017_v11 }
 0x993   :  { %v6965_v31 = vsel %vm2680_vm0, 1.0, %v4457_v40  ;;  %3996 = vmatpush.msk.msra.mxu0 %vm6955_vm11, %v4456_v2  ;;  %v2970_v14 = vmul.f32 %v7011_v19, %v6507_v55  ;;  %v7053_v55 = vsel %vm6868_vm14, 1.0, %v4457_v40  ;;  %vm8005_vm14 = vnez %v7951_v29 }
 0x994   :  { %v2969_v56 = vmul.f32 %v6965_v31, %v7979_v49  ;;  %v2979_v45 = vmul.f32 %v7053_v55, %v6705_v61  ;;  %v2975_v61 = vmul.f32 %v7065_v37, %v6666_v39  ;;  %v7092_v33 = vsel %vm8005_vm14, 1.0, %v4457_v40  ;;  %v8006_v39 = vld [vmem:[#allocation20_spill] sm:$0xff]  ;;  %v8011_v49 = vld [vmem:[#allocation9_spill] sm:$0xff] }
 0x995   :  { %3997 = vmatpush.msk.msra.mxu0 %vm2680_vm0, %v4456_v2  ;;  %vm7990_vm0 = vcmp.gt.f32.partialorder %v7989_v7, 0.0  ;;  %v2978_v53 = vmul.f32 %v7087_v17, %v6715_v23  ;;  %v2980_v36 = vmul.f32 %v7092_v33, %v6727_v28  ;;  %v4137_v9 = vpack.i.bf16 %v7092_v33, %v7053_v55  ;;  %v8008_v28 = vld [vmem:[#allocation13_spill] sm:$0xff] }
 0x996   :  { %3003 = vperm.xlu1 %4136, %v2969_v56   ;;  %v2623_v57 = vpop.xlane.xlu1 %2622  ;;  %v2620_v27 = vpop.xlane.xlu2 %2619  ;;  %v4142_v23 = vpack.i.bf16 %v7087_v17, %v7070_v41  ;;  %v4162_v34 = vpack.i.bf16 %v7011_v19, %v6965_v31  ;;  %v8013_v56 = vld [vmem:[#allocation6_spill] sm:$0xff] }
 0x997   :  { %vm2663_vm8 = vcmp.gt.f32.partialorder %v7985_v16, %v2623_v57  ;;  %vm2662_vm4 = vcmp.gt.f32.partialorder %v7986_v12, %v2620_v27  ;;  %v2617_v63 = vpop.xlane.xlu0 %2616  ;;  %v4108_v57 = vld [vmem:[%s7646_s8] sm:$0xff] }
 0x998   :  { %vm2679_vm2 = vmand %vm2663_vm8, %vm7988_vm1  ;;  %vm2661_vm5 = vcmp.gt.f32.partialorder %v7991_v35, %v2617_v63  ;;  %vm7998_vm1 = vcmp.gt.f32.partialorder %v7997_v20, 0.0  ;;  %4119 = vmatpush.bf16.msra.mxu1 %v4108_v57  ;;  %v8016_v63 = vld [vmem:[#allocation15_spill] sm:$0xff] }
 0x999   :  { %v6983_v51 = vsel %vm2679_vm2, 1.0, %v4457_v40  ;;  %vm2678_vm9 = vmand %vm2662_vm4, %vm7990_vm0  ;;  %3998 = vmatpush.msk.msra.mxu0 %vm2679_vm2, %v4456_v2 }
 0x99a   :  { %v6990_v62 = vsel %vm2678_vm9, 1.0, %v4457_v40  ;;  %v2968_v54 = vmul.f32 %v6983_v51, %v7985_v16  ;;  %vm6999_vm8 = vmand %vm2661_vm5, %vm7993_vm10  ;;  %v8014_v16 = vld [vmem:[#allocation8_spill] sm:$0xff] }
 0x99b   :  { %3999 = vmatpush.msk.msra.mxu0 %vm2678_vm9, %v4456_v2  ;;  %v2967_v3 = vmul.f32 %v6990_v62, %v7986_v12  ;;  %v7075_v22 = vsel %vm6999_vm8, 1.0, %v4457_v40  ;;  %v8015_v12 = vld [vmem:[#allocation12_spill] sm:$0xff] }
 0x99c   :  { %2998 = vperm.xlu0 %4135, %v2968_v54   ;;  %v2966_v13 = vmul.f32 %v7075_v22, %v7991_v35  ;;  %v8017_v54 = vld [vmem:[#allocation21_spill] sm:$0xff] }
 0x99d   :  { %2993 = vperm.xlu2 %4134, %v2967_v3   ;;  %4000 = vmatpush.msk.msra.mxu0 %vm6999_vm8, %v4456_v2 }
 0x99e   :  { %3023 = vperm.xlu1 %4136, %v2973_v4   ;;  %v2614_v58 = vpop.xlane.xlu1 %2613 }
 0x99f   :  { %vm2660_vm4 = vcmp.gt.f32.partialorder %v7996_v18, %v2614_v58  ;;  %v8019_v58 = vld [vmem:[#allocation5_spill] sm:$0xff] }
 0x9a0   :  { %vm7021_vm2 = vmand %vm2660_vm4, %vm7998_vm1 }
 0x9a1   :  { %4001 = vmatpush.msk.msra.mxu0 %vm7021_vm2, %v4456_v2  ;;  %v7048_v2 = vsel %vm6918_vm3, 1.0, %v4457_v40  ;;  %v7104_v29 = vsel %vm7021_vm2, 1.0, %v4457_v40  ;;  %v4167_v40 = vpack.i.bf16 %v6983_v51, %v6990_v62  ;;  %vm8030_vm3 = vmmov %vm8027_vm6 }
 0x9a2   :  { %2724 = vmatmul.f32.vlgmr.msra.gmra.mxu0 %v8001_v43  ;;  %v2974_v44 = vmul.f32 %v7048_v2, %v6682_v38  ;;  %v8003_v38 = vld [vmem:[#allocation14_spill] sm:$0xff]  ;;  %v2965_v32 = vmul.f32 %v7104_v29, %v7996_v18  ;;  %v4152_v0 = vpack.i.bf16 %v7048_v2, %v6980_v1  ;;  %v4172_v27 = vpack.i.bf16 %v7075_v22, %v7104_v29  ;;  %v8022_v43 = vld [vmem:[#allocation40_spill] sm:$0xff]  ;;  %vm8033_vm12 = vmmov %vm8030_vm3 }
 0x9a3   :  { %3132 = vmatpush.bf16.msrb.mxu0 %v4109_v60  ;;  %v8031_v60 = vld [vmem:[#allocation42_spill] sm:$0xff]  ;;  %vm8036_vm11 = vmmov %vm8030_vm3 }
 0x9a4   :  { %3008 = vperm.xlu0 %4135, %v2970_v14   ;;  %vm8039_vm0 = vmmov %vm8030_vm3 }
 0x9a5   :  { %3013 = vperm.xlu2 %4134, %v2971_v52   ;;  %vm8042_vm5 = vmmov %vm8039_vm0 }
 0x9a6   :  { %3038 = vperm.xlu1 %4136, %v2976_v21   ;;  %v8023_v21 = vld [vmem:[#allocation41_spill] sm:$0xff] }
 0x9a7   :  { %3133 = vmatpush.bf16.msrb.mxu0 %v4108_v57 }
 0x9aa   :  { %2727 = vmatmul.f32.gmra.mxu0 %v8002_v8 }
 0x9ac   :  { %3018 = vperm.xlu0 %4135, %v2972_v26  }
 0x9ad   :  { %3028 = vperm.xlu2 %4134, %v2974_v44  }
 0x9ae   :  { %3053 = vperm.xlu1 %4136, %v2979_v45  }
 0x9b2   :  { %2730 = vmatmul.f32.gmra.mxu0 %v8003_v38 }
 0x9b4   :  { %3033 = vperm.xlu0 %4135, %v2975_v61  }
 0x9b5   :  { %3043 = vperm.xlu2 %4134, %v2977_v30  }
 0x9b6   :  { %2988 = vperm.xlu1 %4136, %v2966_v13  }
 0x9ba   :  { %2733 = vmatmul.f32.gmra.mxu0 %v8006_v39  ;;  %v8025_v39 = vld [vmem:[#allocation29_spill] sm:$0xff] }
 0x9bc   :  { %3048 = vperm.xlu0 %4135, %v2978_v53  }
 0x9bd   :  { %3058 = vperm.xlu2 %4134, %v2980_v36  }
 0x9be   :  { %4138 = vperm.xlu1 %4136, %v4137_v9   ;;  %v8026_v9 = vld [vmem:[#allocation30_spill] sm:$0xff] }
 0x9c2   :  { %2736 = vmatmul.f32.gmra.mxu0 %v8007_v50 }
 0x9c4   :  { %2983 = vperm.xlu0 %4135, %v2965_v32  }
 0x9c6   :  { %4143 = vperm.xlu1 %4136, %v4142_v23  }
 0x9ca   :  { %2739 = vmatmul.f32.gmra.mxu0 %v8008_v28 }
 0x9ce   :  { %4148 = vperm.xlu1 %4136, %v4147_v24  }
 0x9d2   :  { %2742 = vmatmul.f32.gmra.mxu0 %v8009_v42  ;;  %v8028_v42 = vld [vmem:[#allocation39_spill] sm:$0xff] }
 0x9d6   :  { %4153 = vperm.xlu1 %4136, %v4152_v0  }
 0x9da   :  { %2745 = vmatmul.f32.gmra.mxu0 %v8010_v47  ;;  %v8029_v47 = vld [vmem:[#allocation26_spill] sm:$0xff] }
 0x9de   :  { %4158 = vperm.xlu1 %4136, %v4157_v15  }
 0x9e2   :  { %2748 = vmatmul.f32.gmra.mxu0 %v8011_v49 }
 0x9e6   :  { %4163 = vperm.xlu1 %4136, %v4162_v34  }
 0x9ea   :  { %2751 = vmatmul.f32.gmra.mxu0 %v8012_v25 }
 0x9ee   :  { %4168 = vperm.xlu1 %4136, %v4167_v40  }
 0x9f2   :  { %2754 = vmatmul.f32.gmra.mxu0 %v8013_v56  ;;  %v8032_v56 = vld [vmem:[#allocation27_spill] sm:$0xff] }
 0x9f6   :  { %4173 = vperm.xlu1 %4136, %v4172_v27  }
 0x9f7   :  { %v2994_v6 = vpop.permute.xlu2 %2993 }
 0x9f8   :  { %v3063_v3 = vmul.f32 %v2994_v6, %v8017_v54 }
 0x9fa   :  { %2757 = vmatmul.f32.gmra.mxu0 %v8014_v16 }
 0x9ff   :  { %v3014_v13 = vpop.permute.xlu2 %3013 }
 0xa00   :  { %v3067_v50 = vmul.f32 %v3014_v13, %v8026_v9  ;;  %v8041_v9 = vld [vmem:[#allocation23_spill] sm:$0xff] }
 0xa02   :  { %2760 = vmatmul.f32.gmra.mxu0 %v8015_v12 }
 0xa07   :  { %v3029_v25 = vpop.permute.xlu2 %3028 }
 0xa08   :  { %v3004_v7 = vpop.permute.xlu1 %3003  ;;  %v3070_v57 = vmul.f32 %v3029_v25, %v8032_v56 }
 0xa09   :  { %v3065_v8 = vmul.f32 %v3004_v7, %v8023_v21  ;;  %v8035_v7 = vld [vmem:[#allocation24_spill] sm:$0xff] }
 0xa0a   :  { %2763 = vmatmul.f32.gmra.mxu0 %v8016_v63  ;;  %v8034_v63 = vld [vmem:[#allocation44_spill] sm:$0xff] }
 0xa0e   :  { %v2999_v35 = vpop.permute.xlu0 %2998 }
 0xa0f   :  { %v3064_v48 = vmul.f32 %v2999_v35, %v8018_v59 }
 0xa10   :  { %v3024_v18 = vpop.permute.xlu1 %3023 }
 0xa11   :  { %v3078_v4 = vpack.c.bf16 %v3064_v48, %v3063_v3  ;;  %v3069_v40 = vmul.f32 %v3024_v18, %v8031_v60  ;;  %v3044_v48 = vpop.permute.xlu2 %3043  ;;  %v8038_v18 = vld [vmem:[#allocation28_spill] sm:$0xff] }
 0xa12   :  { %2766 = vmatmul.f32.gmra.mxu0 %v8019_v58 }
 0xa13   :  { %4011 = vmatmul.msk.bf16.vlgmr.msra.gmra.mxu1 %vm8020_vm15, %v3078_v4  ;;  %v3081_v16 = vpack.c.bf16 %v3070_v57, %v3069_v40  ;;  %v8037_v4 = vld [vmem:[#allocation43_spill] sm:$0xff] }
 0xa16   :  { %v3009_v20 = vpop.permute.xlu0 %3008 }
 0xa17   :  { %v3066_v14 = vmul.f32 %v3009_v20, %v8022_v43  ;;  %v3073_v20 = vmul.f32 %v3044_v48, %v8038_v18 }
 0xa18   :  { %v3039_v44 = vpop.permute.xlu1 %3038 }
 0xa19   :  { %v3079_v45 = vpack.c.bf16 %v3066_v14, %v3065_v8  ;;  %v3072_v35 = vmul.f32 %v3039_v44, %v8035_v7  ;;  %v3059_v13 = vpop.permute.xlu2 %3058 }
 0xa1a   :  { %2769 = vmatmul.f32.gmra.mxu0 %v8021_v46 }
 0xa1e   :  { %v3019_v52 = vpop.permute.xlu0 %3018 }
 0xa1f   :  { %v7145_v26 = vpop.f32.mrf.mxu0  ;;  %v3068_v53 = vmul.f32 %v3019_v52, %v8025_v39  ;;  %v8040_v39 = vld [vmem:[#allocation32_spill] sm:$0xff] }
 0xa20   :  { %v3054_v30 = vpop.permute.xlu1 %3053 }
 0xa21   :  { %v3080_v23 = vpack.c.bf16 %v3068_v53, %v3067_v50  ;;  %v3075_v53 = vmul.f32 %v3054_v30, %v8040_v39  ;;  %v3076_v50 = vmul.f32 %v3059_v13, %v8041_v9 }
 0xa23   :  { %4012 = vmatmul.msk.bf16.gmra.mxu1 %vm8024_vm13, %v3079_v45 }
 0xa26   :  { %v3034_v38 = vpop.permute.xlu0 %3033 }
 0xa27   :  { %v7148_v61 = vpop.f32.mrf.mxu0  ;;  %v3071_v6 = vmul.f32 %v3034_v38, %v8034_v63 }
 0xa28   :  { %v2989_v28 = vpop.permute.xlu1 %2988 }
 0xa29   :  { %v3062_v0 = vmul.f32 %v2989_v28, %v8028_v42  ;;  %v3082_v3 = vpack.c.bf16 %v3072_v35, %v3071_v6 }
 0xa2e   :  { %v3049_v36 = vpop.permute.xlu0 %3048 }
 0xa2f   :  { %v7152_v32 = vpop.f32.mrf.mxu0  ;;  %v3074_v58 = vmul.f32 %v3049_v36, %v8037_v4 }
 0xa31   :  { %v3083_v14 = vpack.c.bf16 %v3074_v58, %v3073_v20 }
 0xa33   :  { %4013 = vmatmul.msk.bf16.gmra.mxu1 %vm8027_vm6, %v3080_v23 }
 0xa36   :  { %v2984_v24 = vpop.permute.xlu0 %2983 }
 0xa37   :  { %v3061_v15 = vmul.f32 %v2984_v24, %v8029_v47  ;;  %v7157_v49 = vpop.f32.mrf.mxu0  ;;  %v3084_v24 = vpack.c.bf16 %v3076_v50, %v3075_v53 }
 0xa39   :  { %v3077_v34 = vpack.c.bf16 %v3062_v0, %v3061_v15 }
 0xa3b   :  { %4010 = vmatmul.msk.bf16.vlgmr.msrb.gmra.mxu0 %vm8030_vm3, %v3077_v34 }
 0xa3f   :  { %v7162_v27 = vpop.f32.mrf.mxu0 }
 0xa40   :  { %v2777_v9 = vmul.f32 %v7162_v27, %v6965_v31 }
 0xa43   :  { %4014 = vmatmul.msk.bf16.gmra.mxu1 %vm8033_vm12, %v3081_v16 }
 0xa47   :  { %v7165_v12 = vpop.f32.mrf.mxu0 }
 0xa4f   :  { %v7169_v54 = vpop.f32.mrf.mxu0 }
 0xa53   :  { %4015 = vmatmul.msk.bf16.gmra.mxu1 %vm8036_vm11, %v3082_v3 }
 0xa57   :  { %v7172_v59 = vpop.f32.mrf.mxu0 }
 0xa5f   :  { %v2749_v46 = vpop.f32.mrf.mxu0 }
 0xa60   :  { %v2781_v43 = vmul.f32 %v2749_v46, %v6980_v1 }
 0xa62   :  { %v2797_v52 = vadd.f32 1.0, %v2781_v43 }
 0xa63   :  { %4016 = vmatmul.msk.bf16.gmra.mxu1 %vm8039_vm0, %v3083_v14 }
 0xa64   :  { %4341 = vrsqrt.f32 %v2797_v52  ;;  %vm2891_vm10 = vweird.f32 %v2797_v52 }
 0xa67   :  { %v2752_v21 = vpop.f32.mrf.mxu0 }
 0xa68   :  { %v2782_v8 = vmul.f32 %v2752_v21, %v7048_v2  ;;  %v2779_v21 = vmul.f32 %v7169_v54, %v7017_v11 }
 0xa6a   :  { %v4342_v44 = vpop.eup %4341  ;;  %v2798_v45 = vadd.f32 1.0, %v2782_v8  ;;  %v7188_v39 = vadd.f32 1.0, %v2779_v21 }
 0xa6b   :  { %v2886_v38 = vmul.f32 %v4342_v44, %v2797_v52  ;;  %vm2892_vm9 = vweird.f32 %v4342_v44 }
 0xa6c   :  { %4343 = vrsqrt.f32 %v2798_v45  ;;  %vm2893_vm8 = vmor %vm2891_vm10, %vm2892_vm9  ;;  %vm2901_vm1 = vweird.f32 %v2798_v45 }
 0xa6d   :  { %v2887_v36 = vmul.f32 %v4342_v44, %v2886_v38 }
 0xa6f   :  { %v2888_v23 = vmul.f32 0.5, %v2887_v36  ;;  %v2755_v1 = vpop.f32.mrf.mxu0 }
 0xa70   :  { %v2783_v28 = vmul.f32 %v2755_v1, %v7065_v37 }
 0xa71   :  { %v2889_v42 = vsub.f32 1.5, %v2888_v23 }
 0xa72   :  { %v4344_v0 = vpop.eup %4343  ;;  %v2799_v47 = vadd.f32 1.0, %v2783_v28 }
 0xa73   :  { %v2896_v2 = vmul.f32 %v4344_v0, %v2798_v45  ;;  %4017 = vmatmul.msk.bf16.gmra.mxu1 %vm8042_vm5, %v3084_v24  ;;  %v2890_v15 = vmul.f32 %v4342_v44, %v2889_v42  ;;  %vm2902_vm4 = vweird.f32 %v4344_v0  ;;  %v7196_v24 = vadd.f32 1.0, %v2777_v9 }
 0xa74   :  { %4345 = vrsqrt.f32 %v2799_v47  ;;  %vm2903_vm2 = vmor %vm2901_vm1, %vm2902_vm4  ;;  %vm2911_vm14 = vweird.f32 %v2799_v47 }
 0xa75   :  { %v2897_v30 = vmul.f32 %v4344_v0, %v2896_v2  ;;  %v2894_v34 = vsel %vm2893_vm8, %v4342_v44, %v2890_v15 }
 0xa76   :  { %3217 = vperm.xlu2 %4134, %v2894_v34  }
 0xa77   :  { %v2898_v25 = vmul.f32 0.5, %v2897_v30  ;;  %v2758_v60 = vpop.f32.mrf.mxu0 }
 0xa78   :  { %v2784_v40 = vmul.f32 %v2758_v60, %v7028_v5 }
 0xa79   :  { %v2899_v37 = vsub.f32 1.5, %v2898_v25 }
 0xa7a   :  { %v4346_v56 = vpop.eup %4345  ;;  %v2800_v57 = vadd.f32 1.0, %v2784_v40 }
 0xa7b   :  { %v2906_v16 = vmul.f32 %v4346_v56, %v2799_v47  ;;  %v2900_v63 = vmul.f32 %v4344_v0, %v2899_v37  ;;  %vm2912_vm7 = vweird.f32 %v4346_v56 }
 0xa7c   :  { %4347 = vrsqrt.f32 %v2800_v57  ;;  %vm2913_vm15 = vmor %vm2911_vm14, %vm2912_vm7  ;;  %vm2921_vm6 = vweird.f32 %v2800_v57  ;;  %vm2871_vm14 = vweird.f32 %v7188_v39 }
 0xa7d   :  { %v2907_v6 = vmul.f32 %v4346_v56, %v2906_v16  ;;  %v2904_v7 = vsel %vm2903_vm2, %v4344_v0, %v2900_v63  ;;  %v2773_v63 = vmul.f32 %v7145_v26, %v7104_v29 }
 0xa7e   :  { %3222 = vperm.xlu0 %4135, %v2904_v7   ;;  %v2776_v7 = vmul.f32 %v7157_v49, %v6983_v51 }
 0xa7f   :  { %v2908_v35 = vmul.f32 0.5, %v2907_v6  ;;  %v2761_v3 = vpop.f32.mrf.mxu0  ;;  %v7232_v26 = vadd.f32 1.0, %v2773_v63 }
 0xa80   :  { %v2785_v48 = vmul.f32 %v2761_v3, %v7070_v41 }
 0xa81   :  { %v2909_v4 = vsub.f32 1.5, %v2908_v35 }
 0xa82   :  { %v4348_v58 = vpop.eup %4347  ;;  %v2801_v5 = vadd.f32 1.0, %v2785_v48 }
 0xa83   :  { %v2916_v18 = vmul.f32 %v4348_v58, %v2800_v57  ;;  %v2910_v20 = vmul.f32 %v4346_v56, %v2909_v4  ;;  %vm2922_vm13 = vweird.f32 %v4348_v58 }
 0xa84   :  { %4349 = vrsqrt.f32 %v2801_v5  ;;  %vm2923_vm3 = vmor %vm2921_vm6, %vm2922_vm13  ;;  %vm2931_vm11 = vweird.f32 %v2801_v5 }
 0xa85   :  { %v2917_v46 = vmul.f32 %v4348_v58, %v2916_v18  ;;  %v2914_v43 = vsel %vm2913_vm15, %v4346_v56, %v2910_v20 }
 0xa86   :  { %3227 = vperm.xlu2 %4134, %v2914_v43  }
 0xa87   :  { %v2918_v14 = vmul.f32 0.5, %v2917_v46  ;;  %v2764_v52 = vpop.f32.mrf.mxu0 }
 0xa88   :  { %v2786_v8 = vmul.f32 %v2764_v52, %v7087_v17  ;;  %v2780_v17 = vmul.f32 %v7172_v59, %v7043_v10  ;;  %v2775_v10 = vmul.f32 %v7152_v32, %v6990_v62 }
 0xa89   :  { %v2919_v41 = vsub.f32 1.5, %v2918_v14 }
 0xa8a   :  { %v4350_v44 = vpop.eup %4349  ;;  %v2802_v45 = vadd.f32 1.0, %v2786_v8  ;;  %v7198_v47 = vadd.f32 1.0, %v2780_v17  ;;  %v7211_v40 = vadd.f32 1.0, %v2775_v10  ;;  %v2774_v8 = vmul.f32 %v7148_v61, %v7075_v22 }
 0xa8b   :  { %v2926_v38 = vmul.f32 %v4350_v44, %v2801_v5  ;;  %v2920_v13 = vmul.f32 %v4348_v58, %v2919_v41  ;;  %vm2932_vm12 = vweird.f32 %v4350_v44  ;;  %v7234_v5 = vadd.f32 1.0, %v2776_v7 }
 0xa8c   :  { %4351 = vrsqrt.f32 %v2802_v45  ;;  %vm2933_vm0 = vmor %vm2931_vm11, %vm2932_vm12  ;;  %vm2941_vm5 = vweird.f32 %v2802_v45  ;;  %v7255_v22 = vadd.f32 1.0, %v2774_v8  ;;  %vm2851_vm11 = vweird.f32 %v7196_v24 }
 0xa8d   :  { %v2927_v53 = vmul.f32 %v4350_v44, %v2926_v38  ;;  %v2924_v36 = vsel %vm2923_vm3, %v4348_v58, %v2920_v13  ;;  %4353 = vrsqrt.f32 %v7188_v39 }
 0xa8e   :  { %3232 = vperm.xlu0 %4135, %v2924_v36  }
 0xa8f   :  { %v2928_v11 = vmul.f32 0.5, %v2927_v53  ;;  %v2767_v54 = vpop.f32.mrf.mxu0 }
 0xa90   :  { %v2787_v50 = vmul.f32 %v2767_v54, %v7053_v55  ;;  %v2778_v55 = vmul.f32 %v7165_v12, %v7011_v19  ;;  %v7223_v6 = vpop.f32.mrf.mxu1 }
 0xa91   :  { %v2929_v23 = vsub.f32 1.5, %v2928_v11 }
 0xa92   :  { %v4352_v1 = vpop.eup %4351  ;;  %v2803_v28 = vadd.f32 1.0, %v2787_v50  ;;  %v7213_v32 = vadd.f32 1.0, %v2778_v55 }
 0xa93   :  { %v2936_v42 = vmul.f32 %v4352_v1, %v2802_v45  ;;  %v2930_v0 = vmul.f32 %v4350_v44, %v2929_v23  ;;  %v7200_v2 = vpop.eup %4353  ;;  %vm2942_vm9 = vweird.f32 %v4352_v1 }
 0xa94   :  { %4355 = vrsqrt.f32 %v2803_v28  ;;  %v2866_v34 = vmul.f32 %v7200_v2, %v7188_v39  ;;  %vm2943_vm10 = vmor %vm2941_vm5, %vm2942_vm9  ;;  %vm2951_vm4 = vweird.f32 %v2803_v28  ;;  %vm2872_vm2 = vweird.f32 %v7200_v2 }
 0xa95   :  { %v2937_v31 = vmul.f32 %v4352_v1, %v2936_v42  ;;  %v2934_v27 = vsel %vm2933_vm0, %v4350_v44, %v2930_v0  ;;  %4357 = vrsqrt.f32 %v7196_v24  ;;  %vm2873_vm13 = vmor %vm2871_vm14, %vm2872_vm2  ;;  %vm2881_vm0 = vweird.f32 %v7198_v47 }
 0xa96   :  { %3237 = vperm.xlu2 %4134, %v2934_v27   ;;  %4359 = vrsqrt.f32 %v7198_v47 }
 0xa97   :  { %v2938_v59 = vmul.f32 0.5, %v2937_v31  ;;  %v2770_v15 = vpop.f32.mrf.mxu0 }
 0xa98   :  { %v2788_v30 = vmul.f32 %v2770_v15, %v7092_v33  ;;  %v2867_v33 = vmul.f32 %v7200_v2, %v2866_v34  ;;  %v7250_v13 = vpop.f32.mrf.mxu1 }
 0xa99   :  { %v2939_v25 = vsub.f32 1.5, %v2938_v59 }
 0xa9a   :  { %v4356_v60 = vpop.eup %4355  ;;  %v2804_v62 = vadd.f32 1.0, %v2788_v30  ;;  %v2868_v48 = vmul.f32 0.5, %v2867_v33 }
 0xa9b   :  { %v2946_v37 = vmul.f32 %v4356_v60, %v2803_v28  ;;  %v2940_v19 = vmul.f32 %v4352_v1, %v2939_v25  ;;  %v7215_v12 = vpop.eup %4357  ;;  %vm2952_vm8 = vweird.f32 %v4356_v60 }
 0xa9c   :  { %4361 = vrsqrt.f32 %v2804_v62  ;;  %v7218_v16 = vpop.eup %4359  ;;  %v2846_v3 = vmul.f32 %v7215_v12, %v7196_v24  ;;  %vm2953_vm1 = vmor %vm2951_vm4, %vm2952_vm8  ;;  %v2869_v43 = vsub.f32 1.5, %v2868_v48  ;;  %vm2961_vm15 = vweird.f32 %v2804_v62 }
 0xa9d   :  { %v2947_v56 = vmul.f32 %v4356_v60, %v2946_v37  ;;  %v2944_v57 = vsel %vm2943_vm10, %v4352_v1, %v2940_v19  ;;  %4363 = vrsqrt.f32 %v7211_v40  ;;  %v2876_v4 = vmul.f32 %v7218_v16, %v7198_v47 }
 0xa9e   :  { %3242 = vperm.xlu0 %4135, %v2944_v57   ;;  %4365 = vrsqrt.f32 %v7213_v32  ;;  %v2847_v20 = vmul.f32 %v7215_v12, %v2846_v3  ;;  %v2870_v9 = vmul.f32 %v7200_v2, %v2869_v43  ;;  %vm2852_vm3 = vweird.f32 %v7215_v12 }
 0xa9f   :  { %v2948_v35 = vmul.f32 0.5, %v2947_v56  ;;  %v2877_v14 = vmul.f32 %v7218_v16, %v2876_v4  ;;  %4367 = vrsqrt.f32 %v7232_v26  ;;  %vm2882_vm12 = vweird.f32 %v7218_v16  ;;  %vm2853_vm9 = vmor %vm2851_vm11, %vm2852_vm3 }
 0xaa0   :  { %4369 = vrsqrt.f32 %v7234_v5  ;;  %v2848_v45 = vmul.f32 0.5, %v2847_v20  ;;  %v2874_v28 = vsel %vm2873_vm13, %v7200_v2, %v2870_v9  ;;  %v7271_v2 = vpop.f32.mrf.mxu1  ;;  %vm2883_vm5 = vmor %vm2881_vm0, %vm2882_vm12  ;;  %vm2831_vm4 = vweird.f32 %v7211_v40  ;;  %v4139_v20 = vpop.permute.xlu1 %4138 }
 0xaa1   :  { %v2949_v58 = vsub.f32 1.5, %v2948_v35  ;;  %v2878_v53 = vmul.f32 0.5, %v2877_v14  ;;  %4371 = vrsqrt.f32 %v7255_v22  ;;  %vm2811_vm13 = vweird.f32 %v7232_v26 }
 0xaa2   :  { %v4362_v29 = vpop.eup %4361  ;;  %v2849_v17 = vsub.f32 1.5, %v2848_v45  ;;  %vm2821_vm0 = vweird.f32 %v7255_v22 }
 0xaa3   :  { %v2956_v18 = vmul.f32 %v4362_v29, %v2804_v62  ;;  %v2950_v51 = vmul.f32 %v4356_v60, %v2949_v58  ;;  %v7236_v49 = vpop.eup %4363  ;;  %vm2962_vm7 = vweird.f32 %v4362_v29  ;;  %v2879_v1 = vsub.f32 1.5, %v2878_v53 }
 0xaa4   :  { %v7239_v46 = vpop.eup %4365  ;;  %v2826_v44 = vmul.f32 %v7236_v49, %v7211_v40  ;;  %vm2963_vm6 = vmor %vm2961_vm15, %vm2962_vm7  ;;  %v2850_v10 = vmul.f32 %v7215_v12, %v2849_v17  ;;  %vm2832_vm10 = vweird.f32 %v7236_v49 }
 0xaa5   :  { %v2957_v52 = vmul.f32 %v4362_v29, %v2956_v18  ;;  %v2954_v21 = vsel %vm2953_vm1, %v4356_v60, %v2950_v51  ;;  %v2856_v38 = vmul.f32 %v7239_v46, %v7213_v32  ;;  %v7257_v11 = vpop.eup %4367  ;;  %v2880_v55 = vmul.f32 %v7218_v16, %v2879_v1  ;;  %vm2833_vm2 = vmor %vm2831_vm4, %vm2832_vm10 }
 0xaa6   :  { %3247 = vperm.xlu2 %4134, %v2954_v21   ;;  %v2827_v54 = vmul.f32 %v7236_v49, %v2826_v44  ;;  %v4370_v50 = vpop.eup %4369  ;;  %v2806_v39 = vmul.f32 %v7257_v11, %v7232_v26  ;;  %v2854_v60 = vsel %vm2853_vm9, %v7215_v12, %v2850_v10  ;;  %vm2862_vm8 = vweird.f32 %v7239_v46 }
 0xaa7   :  { %v2958_v41 = vmul.f32 0.5, %v2957_v52  ;;  %v2857_v23 = vmul.f32 %v7239_v46, %v2856_v38  ;;  %v2836_v31 = vmul.f32 %v4370_v50, %v7234_v5  ;;  %v4372_v30 = vpop.eup %4371  ;;  %v2884_v62 = vsel %vm2883_vm5, %v7218_v16, %v2880_v55 }
 0xaa8   :  { %v2828_v0 = vmul.f32 0.5, %v2827_v54  ;;  %v2807_v59 = vmul.f32 %v7257_v11, %v2806_v39  ;;  %v2816_v24 = vmul.f32 %v4372_v30, %v7255_v22  ;;  %vm2861_vm1 = vweird.f32 %v7213_v32  ;;  %v7284_v56 = vpop.f32.mrf.mxu1  ;;  %v4144_v14 = vpop.permute.xlu1 %4143 }
 0xaa9   :  { %v2959_v36 = vsub.f32 1.5, %v2958_v41  ;;  %v2858_v27 = vmul.f32 0.5, %v2857_v23  ;;  %v2837_v34 = vmul.f32 %v4370_v50, %v2836_v31  ;;  %vm2863_vm7 = vmor %vm2861_vm1, %vm2862_vm8  ;;  %vm2812_vm14 = vweird.f32 %v7257_v11 }
 0xaaa   :  { %v2829_v15 = vsub.f32 1.5, %v2828_v0  ;;  %v2808_v37 = vmul.f32 0.5, %v2807_v59  ;;  %v2817_v57 = vmul.f32 %v4372_v30, %v2816_v24  ;;  %vm2842_vm15 = vweird.f32 %v4370_v50  ;;  %vm2813_vm3 = vmor %vm2811_vm13, %vm2812_vm14 }
 0xaab   :  { %v2960_v61 = vmul.f32 %v4362_v29, %v2959_v36  ;;  %v2859_v25 = vsub.f32 1.5, %v2858_v27  ;;  %v2838_v47 = vmul.f32 0.5, %v2837_v34  ;;  %vm2822_vm11 = vweird.f32 %v4372_v30 }
 0xaac   :  { %v2830_v19 = vmul.f32 %v7236_v49, %v2829_v15  ;;  %v2809_v12 = vsub.f32 1.5, %v2808_v37  ;;  %v2818_v35 = vmul.f32 0.5, %v2817_v57  ;;  %vm2823_vm9 = vmor %vm2821_vm0, %vm2822_vm11  ;;  %v7317_v23 = vunpack.i.h.bf16 %v4139_v20 }
 0xaad   :  { %v2964_v42 = vsel %vm2963_vm6, %v4362_v29, %v2960_v61  ;;  %v2860_v33 = vmul.f32 %v7239_v46, %v2859_v25  ;;  %v2839_v16 = vsub.f32 1.5, %v2838_v47  ;;  %vm2841_vm6 = vweird.f32 %v7234_v5 }
 0xaae   :  { %3207 = vperm.xlu2 %4134, %v2874_v28   ;;  %3252 = vperm.xlu0 %4135, %v2964_v42   ;;  %v2834_v63 = vsel %vm2833_vm2, %v7236_v49, %v2830_v19  ;;  %v2810_v40 = vmul.f32 %v7257_v11, %v2809_v12  ;;  %vm2843_vm12 = vmor %vm2841_vm6, %vm2842_vm15  ;;  %v2819_v32 = vsub.f32 1.5, %v2818_v35  ;;  %v7319_v1 = vunpack.i.l.bf16 %v4139_v20 }
 0xaaf   :  { %v2864_v7 = vsel %vm2863_vm7, %v7239_v46, %v2860_v33  ;;  %v2840_v3 = vmul.f32 %v4370_v50, %v2839_v16  ;;  %v7327_v39 = vunpack.i.h.bf16 %v4144_v14  ;;  %v7336_v10 = vunpack.i.l.bf16 %v4144_v14 }
 0xab0   :  { %v2814_v4 = vsel %vm2813_vm3, %v7257_v11, %v2810_v40  ;;  %v7293_v58 = vpop.f32.mrf.mxu1  ;;  %v2820_v29 = vmul.f32 %v4372_v30, %v2819_v32  ;;  %v4149_v41 = vpop.permute.xlu1 %4148 }
 0xab1   :  { %v2844_v48 = vsel %vm2843_vm12, %v4370_v50, %v2840_v3  ;;  %v7354_v37 = vunpack.i.l.bf16 %v4149_v41 }
 0xab2   :  { %v2824_v18 = vsel %vm2823_vm9, %v4372_v30, %v2820_v29  ;;  %v7343_v30 = vunpack.i.h.bf16 %v4149_v41 }
 0xab6   :  { %3197 = vperm.xlu2 %4134, %v2854_v60   ;;  %3212 = vperm.xlu0 %4135, %v2884_v62  }
 0xab8   :  { %v3152_v26 = vpop.f32.mrf.mxu1  ;;  %v4154_v36 = vpop.permute.xlu1 %4153 }
 0xab9   :  { %v7361_v12 = vunpack.i.h.bf16 %v4154_v36  ;;  %v3135_v41 = vpop.f32.mrf.mxu0 }
 0xabe   :  { %3187 = vperm.xlu2 %4134, %v2834_v63   ;;  %3202 = vperm.xlu0 %4135, %v2864_v7   ;;  %v7368_v63 = vunpack.i.l.bf16 %v4154_v36 }
 0xac0   :  { %v3155_v51 = vpop.f32.mrf.mxu1  ;;  %v4159_v11 = vpop.permute.xlu1 %4158 }
 0xac1   :  { %v7375_v40 = vunpack.i.h.bf16 %v4159_v11  ;;  %v7385_v29 = vunpack.i.l.bf16 %v4159_v11 }
 0xac6   :  { %3192 = vperm.xlu0 %4135, %v2844_v48   ;;  %3177 = vperm.xlu2 %4134, %v2814_v4  }
 0xac8   :  { %v3157_v5 = vpop.f32.mrf.mxu1  ;;  %v4164_v33 = vpop.permute.xlu1 %4163 }
 0xac9   :  { %v7403_v14 = vunpack.i.l.bf16 %v4164_v33 }
 0xace   :  { %3182 = vperm.xlu0 %4135, %v2824_v18  }
 0xad0   :  { %v3160_v49 = vpop.f32.mrf.mxu1  ;;  %v7296_v43 = vpop.permute.xlu2 %3217 }
 0xad1   :  { %v7364_v57 = vmul.f32 %v7296_v43, %v3155_v51 }
 0xad3   :  { %v3359_v32 = vmul.f32 %v7368_v63, %v7364_v57 }
 0xad8   :  { %v3162_v46 = vpop.f32.mrf.mxu1 }
 0xae0   :  { %v3165_v52 = vpop.f32.mrf.mxu1  ;;  %v7298_v21 = vpop.permute.xlu2 %3227 }
 0xae1   :  { %v7346_v34 = vmul.f32 %v7298_v21, %v3160_v49  ;;  %v7395_v49 = vunpack.i.h.bf16 %v4164_v33 }
 0xae3   :  { %v3361_v16 = vmul.f32 %v7354_v37, %v7346_v34 }
 0xae8   :  { %v3167_v44 = vpop.f32.mrf.mxu1 }
 0xaf0   :  { %v7300_v8 = vpop.permute.xlu0 %3222  ;;  %v7302_v45 = vpop.permute.xlu2 %3237 }
 0xaf1   :  { %v3170_v9 = vpop.f32.mrf.mxu1  ;;  %v7330_v0 = vmul.f32 %v7302_v45, %v3165_v52  ;;  %v7357_v24 = vmul.f32 %v7300_v8, %v3157_v5 }
 0xaf3   :  { %v3363_v25 = vmul.f32 %v7336_v10, %v7330_v0  ;;  %v3360_v7 = vmul.f32 %v7361_v12, %v7357_v24 }
 0xaf5   :  { %v3371_v51 = vpack.c.bf16 %v3360_v7, %v3359_v32 }
 0xaf9   :  { %v3172_v17 = vpop.f32.mrf.mxu1 }
 0xb00   :  { %v7304_v38 = vpop.permute.xlu0 %3232  ;;  %v7306_v53 = vpop.permute.xlu2 %3247 }
 0xb01   :  { %v7313_v54 = vmul.f32 %v7306_v53, %v3170_v9  ;;  %v7339_v55 = vmul.f32 %v7304_v38, %v3162_v46  ;;  %v4169_v46 = vpop.permute.xlu1 %4168 }
 0xb02   :  { %v7415_v9 = vunpack.i.h.bf16 %v4169_v46  ;;  %v7417_v11 = vunpack.i.l.bf16 %v4169_v46  ;;  %v4423_v46 = vld [vmem:[%s7638_s0 + $0x10] sm:$0xff] }
 0xb03   :  { %v3365_v31 = vmul.f32 %v7319_v1, %v7313_v54  ;;  %v3362_v47 = vmul.f32 %v7343_v30, %v7339_v55 }
 0xb05   :  { %v3372_v3 = vpack.c.bf16 %v3362_v47, %v3361_v16 }
 0xb08   :  { %v7310_v61 = vpop.permute.xlu2 %3207 }
 0xb09   :  { %v7381_v48 = vmul.f32 %v7310_v61, %v7293_v58 }
 0xb0b   :  { %v3357_v58 = vmul.f32 %v7385_v29, %v7381_v48 }
 0xb10   :  { %v7308_v22 = vpop.permute.xlu0 %3242  ;;  %v7350_v60 = vpop.permute.xlu2 %3197 }
 0xb11   :  { %v7322_v28 = vmul.f32 %v7308_v22, %v3167_v44  ;;  %8043 = vst [vmem:[#allocation50_spill] sm:$0xff] %v7350_v60  ;;  %v7401_v20 = vmul.f32 %v7350_v60, %v7271_v2 }
 0xb13   :  { %v3364_v59 = vmul.f32 %v7327_v39, %v7322_v28  ;;  %v3355_v44 = vmul.f32 %v7403_v14, %v7401_v20 }
 0xb15   :  { %v3373_v19 = vpack.c.bf16 %v3364_v59, %v3363_v25  ;;  %v4174_v25 = vpop.permute.xlu1 %4173 }
 0xb16   :  { %v7434_v33 = vunpack.i.h.bf16 %v4174_v25  ;;  %v7436_v16 = vunpack.i.l.bf16 %v4174_v25 }
 0xb18   :  { %v7393_v5 = vpop.permute.xlu2 %3187 }
 0xb19   :  { %8044 = vst [vmem:[#allocation47_spill] sm:$0xff] %v7393_v5  ;;  %v7411_v36 = vmul.f32 %v7393_v5, %v7223_v6 }
 0xb20   :  { %v7315_v50 = vpop.permute.xlu0 %3252  ;;  %v7427_v59 = vpop.permute.xlu2 %3177 }
 0xb21   :  { %v7325_v42 = vmul.f32 %v7315_v50, %v3172_v17  ;;  %8046 = vst [vmem:[#allocation46_spill] sm:$0xff] %v7427_v59  ;;  %v7430_v47 = vmul.f32 %v7427_v59, %v3135_v41  ;;  %v4426_v41 = vld [vmem:[%s7638_s0 + $0x28] sm:$0xff] }
 0xb23   :  { %v3366_v27 = vmul.f32 %v7317_v23, %v7325_v42  ;;  %8047 = vst [vmem:[#allocation56_spill] sm:$0xff] %v7430_v47 }
 0xb25   :  { %v3374_v15 = vpack.c.bf16 %v3366_v27, %v3365_v31  ;;  %v3353_v27 = vmul.f32 %v7417_v11, %v7411_v36 }
 0xb27   :  { %3375 = vmatpush.bf16.msra.mxu0 %v3374_v15  ;;  %4120 = vmatpush.bf16.msra.mxu2 %v3374_v15 }
 0xb28   :  { %v7352_v62 = vpop.permute.xlu0 %3212 }
 0xb29   :  { %v7373_v35 = vmul.f32 %v7352_v62, %v3152_v26 }
 0xb2b   :  { %3376 = vmatpush.bf16.msra.mxu0 %v3373_v19  ;;  %4121 = vmatpush.bf16.msra.mxu2 %v3373_v19  ;;  %v3358_v18 = vmul.f32 %v7375_v40, %v7373_v35 }
 0xb2d   :  { %v3370_v52 = vpack.c.bf16 %v3358_v18, %v3357_v58  ;;  %v4422_v58 = vld [vmem:[%s7638_s0 + $0x8] sm:$0xff] }
 0xb2f   :  { %3377 = vmatpush.bf16.msra.mxu0 %v3372_v3  ;;  %4122 = vmatpush.bf16.msra.mxu2 %v3372_v3  ;;  %v3351_v3 = vmul.f32 %v7436_v16, %v7430_v47 }
 0xb30   :  { %v7383_v4 = vpop.permute.xlu0 %3202 }
 0xb31   :  { %v7391_v26 = vmul.f32 %v7383_v4, %v7284_v56 }
 0xb33   :  { %3378 = vmatpush.bf16.msra.mxu0 %v3371_v51  ;;  %4123 = vmatpush.bf16.msra.mxu2 %v3371_v51  ;;  %v3356_v56 = vmul.f32 %v7395_v49, %v7391_v26  ;;  %v4421_v51 = vld [vmem:[%s7638_s0] sm:$0xff] }
 0xb35   :  { %v3369_v31 = vpack.c.bf16 %v3356_v56, %v3355_v44  ;;  %v4424_v56 = vld [vmem:[%s7638_s0 + $0x18] sm:$0xff]  ;;  %v4427_v44 = vld [vmem:[%s7638_s0 + $0x30] sm:$0xff] }
 0xb37   :  { %3379 = vmatpush.bf16.msra.mxu0 %v3370_v52  ;;  %4124 = vmatpush.bf16.msra.mxu2 %v3370_v52  ;;  %v4425_v52 = vld [vmem:[%s7638_s0 + $0x20] sm:$0xff] }
 0xb38   :  { %v7413_v2 = vpop.permute.xlu0 %3192 }
 0xb39   :  { %8045 = vst [vmem:[#allocation48_spill] sm:$0xff] %v7413_v2  ;;  %v7421_v17 = vmul.f32 %v7413_v2, %v7250_v13  ;;  %v3137_v13 = vpop.f32.mrf.mxu0 }
 0xb3b   :  { %v3354_v6 = vmul.f32 %v7415_v9, %v7421_v17  ;;  %3380 = vmatpush.bf16.msra.mxu0 %v3369_v31  ;;  %4125 = vmatpush.bf16.msra.mxu2 %v3369_v31  ;;  %v4428_v31 = vld [vmem:[%s7638_s0 + $0x38] sm:$0xff] }
 0xb3d   :  { %v3368_v15 = vpack.c.bf16 %v3354_v6, %v3353_v27 }
 0xb3f   :  { %3381 = vmatpush.bf16.msra.mxu0 %v3368_v15  ;;  %4126 = vmatpush.bf16.msra.mxu2 %v3368_v15 }
 0xb40   :  { %v7432_v19 = vpop.permute.xlu0 %3182 }
 0xb41   :  { %8048 = vst [vmem:[#allocation51_spill] sm:$0xff] %v7432_v19  ;;  %v7439_v7 = vmul.f32 %v7432_v19, %v3137_v13 }
 0xb43   :  { %8049 = vst [vmem:[#allocation53_spill] sm:$0xff] %v7439_v7  ;;  %v3352_v32 = vmul.f32 %v7434_v33, %v7439_v7 }
 0xb45   :  { %v3367_v18 = vpack.c.bf16 %v3352_v32, %v3351_v3 }
 0xb47   :  { %3382 = vmatpush.bf16.msra.mxu0 %v3367_v18  ;;  %4127 = vmatpush.bf16.msra.mxu2 %v3367_v18 }
 0xb4a   :  { %3383 = vmatmul.bf16.vlgmr.msra.gmra.mxu0 %v4421_v51  ;;  %3388 = vmatmul.bf16.vlgmr.msra.gmra.mxu2 %v4422_v58 }
 0xb5a   :  { %3393 = vmatmul.bf16.gmra.mxu2 %v4423_v46 }
 0xb6a   :  { %3398 = vmatmul.bf16.gmra.mxu2 %v4424_v56 }
 0xb7a   :  { %3403 = vmatmul.bf16.gmra.mxu2 %v4425_v52 }
 0xb8a   :  { %3408 = vmatmul.bf16.gmra.mxu2 %v4426_v41 }
 0xb9a   :  { %3413 = vmatmul.bf16.gmra.mxu2 %v4427_v44 }
 0xbaa   :  { %3418 = vmatmul.bf16.gmra.mxu2 %v4428_v31 }
 0xbc7   :  { %v3384_v47 = vpop.f32.mrf.mxu0 }
 0xbcd   :  { %v3389_v27 = vpop.f32.mrf.mxu2 }
 0xbd5   :  { %v3391_v6 = vpop.f32.mrf.mxu2 }
 0xbdd   :  { %v3394_v15 = vpop.f32.mrf.mxu2 }
 0xbe5   :  { %v3396_v25 = vpop.f32.mrf.mxu2 }
 0xbed   :  { %v3399_v13 = vpop.f32.mrf.mxu2 }
 0xbf5   :  { %v3401_v3 = vpop.f32.mrf.mxu2 }
 0xbfd   :  { %v3404_v32 = vpop.f32.mrf.mxu2 }
 0xc05   :  { %v3406_v18 = vpop.f32.mrf.mxu2 }
 0xc06   :  { %v3433_v60 = vmul.f32 %v7361_v12, %v3406_v18  ;;  %v3431_v18 = vmul.f32 %v7375_v40, %v3401_v3 }
 0xc0d   :  { %v3409_v51 = vpop.f32.mrf.mxu2 }
 0xc0e   :  { %v3434_v2 = vmul.f32 %v7354_v37, %v3409_v51 }
 0xc15   :  { %v3411_v58 = vpop.f32.mrf.mxu2 }
 0xc16   :  { %v3435_v44 = vmul.f32 %v7343_v30, %v3411_v58 }
 0xc18   :  { %v3451_v7 = vadd.f32 %v3435_v44, %v7339_v55  ;;  %v3449_v55 = vadd.f32 %v3433_v60, %v7357_v24  ;;  %v3429_v24 = vmul.f32 %v7395_v49, %v3396_v25  ;;  %v3386_v25 = vpop.f32.mrf.mxu0 }
 0xc1a   :  { %v3465_v3 = vmul.f32 %v3449_v55, %v7300_v8 }
 0xc1d   :  { %v3414_v46 = vpop.f32.mrf.mxu2 }
 0xc1e   :  { %v3436_v41 = vmul.f32 %v7336_v10, %v3414_v46 }
 0xc20   :  { %v3452_v59 = vadd.f32 %v3436_v41, %v7330_v0  ;;  %v3432_v0 = vmul.f32 %v7368_v63, %v3404_v32 }
 0xc22   :  { %v3468_v58 = vmul.f32 %v3452_v59, %v7302_v45 }
 0xc25   :  { %v3416_v56 = vpop.f32.mrf.mxu2 }
 0xc26   :  { %v3437_v52 = vmul.f32 %v7327_v39, %v3416_v56 }
 0xc28   :  { %v3453_v31 = vadd.f32 %v3437_v52, %v7322_v28  ;;  %v7484_v28 = vld [vmem:[%s7647_s9] ss:$0 sm:$0xff] }
 0xc29   :  { %v7500_v59 = vadd.f32 %v7484_v28, %v3468_v58 }
 0xc2a   :  { %v3469_v56 = vmul.f32 %v3453_v31, %v7308_v22  ;;  %v3467_v22 = vmul.f32 %v3451_v7, %v7304_v38  ;;  %v3447_v7 = vadd.f32 %v3431_v18, %v7373_v35 }
 0xc2b   :  { %v3519_v44 = vmin.f32 %v7500_v59, 0.0  ;;  %vm3503_vm4 = vcmp.gt.f32.partialorder %v7500_v59, 0.0 }
 0xc2d   :  { %v3419_v19 = vpop.f32.mrf.mxu2 }
 0xc2e   :  { %v3438_v5 = vmul.f32 %v7319_v1, %v3419_v19  ;;  %v3450_v19 = vadd.f32 %v3434_v2, %v7346_v34 }
 0xc30   :  { %v3454_v46 = vadd.f32 %v3438_v5, %v7313_v54  ;;  %v7493_v54 = vadd.f32 %v7484_v28, %v3469_v56  ;;  %v3430_v5 = vmul.f32 %v7385_v29, %v3399_v13  ;;  %v3466_v2 = vmul.f32 %v3450_v19, %v7298_v21 }
 0xc31   :  { %v7510_v13 = vadd.f32 %v7484_v28, %v3467_v22  ;;  %v3428_v21 = vmul.f32 %v7403_v14, %v3394_v15  ;;  %v3463_v15 = vmul.f32 %v3447_v7, %v7352_v62  ;;  %v3425_v19 = vmul.f32 %v7434_v33, %v3386_v25 }
 0xc32   :  { %v3470_v51 = vmul.f32 %v3454_v46, %v7306_v53  ;;  %v3448_v53 = vadd.f32 %v3432_v0, %v7364_v57  ;;  %v3520_v32 = vmin.f32 %v7493_v54, 0.0  ;;  %v3424_v57 = vmul.f32 %v7436_v16, %v3384_v47 }
 0xc33   :  { %v3446_v41 = vadd.f32 %v3430_v5, %v7381_v48  ;;  %v7520_v8 = vadd.f32 %v7484_v28, %v3466_v2  ;;  %v3426_v46 = vmul.f32 %v7417_v11, %v3389_v27  ;;  %v3445_v47 = vadd.f32 %v3429_v24, %v7391_v26 }
 0xc34   :  { %v7496_v45 = vadd.f32 %v7484_v28, %v3470_v51  ;;  %v3464_v35 = vmul.f32 %v3448_v53, %v7296_v43  ;;  %v7528_v48 = vadd.f32 %v7484_v28, %v3465_v3  ;;  %v3518_v58 = vmin.f32 %v7510_v13, 0.0  ;;  %v8050_v53 = vld [vmem:[#allocation53_spill] sm:$0xff]  ;;  %v8053_v3 = vld [vmem:[#allocation47_spill] sm:$0xff] }
 0xc35   :  { %v3421_v34 = vpop.f32.mrf.mxu2  ;;  %v3549_v43 = vmul.f32 1.442695, %v3520_v32  ;;  %v3462_v27 = vmul.f32 %v3446_v41, %v7310_v61  ;;  %v3547_v51 = vmul.f32 1.442695, %v3519_v44  ;;  %v3517_v62 = vmin.f32 %v7520_v8, 0.0 }
 0xc36   :  { %v3521_v60 = vmin.f32 %v7496_v45, 0.0  ;;  %v3439_v38 = vmul.f32 %v7317_v23, %v3421_v34  ;;  %v3442_v18 = vadd.f32 %v3426_v46, %v7411_v36  ;;  %v3461_v22 = vmul.f32 %v3445_v47, %v7383_v4  ;;  %v8052_v4 = vld [vmem:[#allocation56_spill] sm:$0xff] }
 0xc37   :  { %v7543_v5 = vadd.f32 %v7484_v28, %v3463_v15  ;;  %v3545_v61 = vmul.f32 1.442695, %v3518_v58  ;;  %v3441_v2 = vadd.f32 %v3425_v19, %v8050_v53  ;;  %v7549_v24 = vadd.f32 %v7484_v28, %v3462_v27  ;;  %v8056_v58 = vld [vmem:[#allocation46_spill] sm:$0xff] }
 0xc38   :  { %v3455_v52 = vadd.f32 %v3439_v38, %v7325_v42  ;;  %v3551_v31 = vmul.f32 1.442695, %v3521_v60  ;;  %v3427_v42 = vmul.f32 %v7415_v9, %v3391_v6  ;;  %v7536_v6 = vadd.f32 %v7484_v28, %v3464_v35  ;;  %v8051_v60 = vld [vmem:[#allocation50_spill] sm:$0xff] }
 0xc39   :  { %v3440_v7 = vadd.f32 %v3424_v57, %v8052_v4  ;;  %v3458_v32 = vmul.f32 %v3442_v18, %v8053_v3  ;;  %v7556_v44 = vadd.f32 %v7484_v28, %v3461_v22  ;;  %v3514_v25 = vmin.f32 %v7543_v5, 0.0 }
 0xc3a   :  { %v3471_v56 = vmul.f32 %v3455_v52, %v7315_v50  ;;  %v3444_v50 = vadd.f32 %v3428_v21, %v7401_v20  ;;  %4373 = vpow2.f32 %v3551_v31  ;;  %v3443_v55 = vadd.f32 %v3427_v42, %v7421_v17  ;;  %v8054_v52 = vld [vmem:[#allocation48_spill] sm:$0xff]  ;;  %v8055_v31 = vld [vmem:[#allocation51_spill] sm:$0xff] }
 0xc3b   :  { %v3516_v20 = vmin.f32 %v7528_v48, 0.0  ;;  %4375 = vpow2.f32 %v3549_v43  ;;  %v3515_v36 = vmin.f32 %v7536_v6, 0.0  ;;  %v3543_v17 = vmul.f32 1.442695, %v3517_v62 }
 0xc3c   :  { %v3490_v0 = vadd.f32 %v7484_v28, %v3471_v56  ;;  %v3460_v38 = vmul.f32 %v3444_v50, %v8051_v60  ;;  %4377 = vpow2.f32 %v3547_v51  ;;  %v3459_v21 = vmul.f32 %v3443_v55, %v8054_v52 }
 0xc3d   :  { %v3541_v35 = vmul.f32 1.442695, %v3516_v20  ;;  %v3457_v56 = vmul.f32 %v3441_v2, %v8055_v31  ;;  %v3513_v57 = vmin.f32 %v7549_v24, 0.0  ;;  %v3539_v47 = vmul.f32 1.442695, %v3515_v36 }
 0xc3e   :  { %v3522_v26 = vmin.f32 %v3490_v0, 0.0  ;;  %v7561_v46 = vadd.f32 %v7484_v28, %v3460_v38  ;;  %v3456_v43 = vmul.f32 %v3440_v7, %v8056_v58  ;;  %v7566_v19 = vadd.f32 %v7484_v28, %v3459_v21 }
 0xc3f   :  { %v7569_v51 = vadd.f32 %v7484_v28, %v3458_v32  ;;  %v3512_v62 = vmin.f32 %v7556_v44, 0.0  ;;  %v7573_v18 = vadd.f32 %v7484_v28, %v3457_v56  ;;  %vm3506_vm5 = vcmp.gt.f32.partialorder %v3490_v0, 0.0 }
 0xc40   :  { %v3553_v34 = vmul.f32 1.442695, %v3522_v26  ;;  %v4374_v41 = vpop.eup %4373  ;;  %v3537_v26 = vmul.f32 1.442695, %v3514_v25  ;;  %v3511_v55 = vmin.f32 %v7561_v46, 0.0  ;;  %vm3505_vm10 = vcmp.gt.f32.partialorder %v7496_v45, 0.0 }
 0xc41   :  { %v4376_v42 = vpop.eup %4375  ;;  %v4032_v50 = vadd.f32 -1.0, %v4374_v41  ;;  %v3510_v53 = vmin.f32 %v7566_v19, 0.0  ;;  %vm3504_vm8 = vcmp.gt.f32.partialorder %v7493_v54, 0.0  ;;  %v7582_v7 = vadd.f32 %v7484_v28, %v3456_v43 }
 0xc42   :  { %4379 = vpow2.f32 %v3553_v34  ;;  %v4378_v15 = vpop.eup %4377  ;;  %v4031_v20 = vadd.f32 -1.0, %v4376_v42  ;;  %v3535_v34 = vmul.f32 1.442695, %v3513_v57  ;;  %v3509_v3 = vmin.f32 %v7569_v51, 0.0 }
 0xc43   :  { %4381 = vpow2.f32 %v3545_v61  ;;  %v3585_v60 = vsel %vm3505_vm10, %v7496_v45, %v4032_v50  ;;  %v4030_v38 = vadd.f32 -1.0, %v4378_v15  ;;  %vm3502_vm1 = vcmp.gt.f32.partialorder %v7510_v13, 0.0 }
 0xc44   :  { %4383 = vpow2.f32 %v3543_v17  ;;  %v3533_v17 = vmul.f32 1.442695, %v3512_v62  ;;  %v3584_v32 = vsel %vm3504_vm8, %v7493_v54, %v4031_v20  ;;  %v3601_v45 = vmul.f32 %v7319_v1, %v3585_v60 }
 0xc45   :  { %4385 = vpow2.f32 %v3541_v35  ;;  %v3583_v41 = vsel %vm3503_vm4, %v7500_v59, %v4030_v38  ;;  %v3529_v35 = vmul.f32 1.442695, %v3510_v53  ;;  %v3600_v31 = vmul.f32 %v7327_v39, %v3584_v32 }
 0xc46   :  { %4387 = vpow2.f32 %v3539_v47  ;;  %v3507_v54 = vmin.f32 %v7582_v7, 0.0  ;;  %v3527_v57 = vmul.f32 1.442695, %v3509_v3  ;;  %v3599_v47 = vmul.f32 %v7336_v10, %v3583_v41 }
 0xc47   :  { %4389 = vpow2.f32 %v3537_v26  ;;  %vm3501_vm2 = vcmp.gt.f32.partialorder %v7520_v8, 0.0  ;;  %vm3500_vm7 = vcmp.gt.f32.partialorder %v7528_v48, 0.0  ;;  %vm3499_vm14 = vcmp.gt.f32.partialorder %v7536_v6, 0.0 }
 0xc48   :  { %v4380_v27 = vpop.eup %4379  ;;  %4391 = vpow2.f32 %v3535_v34  ;;  %v3523_v62 = vmul.f32 1.442695, %v3507_v54  ;;  %vm3498_vm15 = vcmp.gt.f32.partialorder %v7543_v5, 0.0  ;;  %vm3497_vm13 = vcmp.gt.f32.partialorder %v7549_v24, 0.0 }
 0xc49   :  { %v4033_v22 = vadd.f32 -1.0, %v4380_v27  ;;  %v4382_v61 = vpop.eup %4381  ;;  %4393 = vpow2.f32 %v3533_v17  ;;  %vm3496_vm6 = vcmp.gt.f32.partialorder %v7556_v44, 0.0  ;;  %vm3495_vm3 = vcmp.gt.f32.partialorder %v7561_v46, 0.0 }
 0xc4a   :  { %v4384_v36 = vpop.eup %4383  ;;  %v4029_v52 = vadd.f32 -1.0, %v4382_v61  ;;  %vm3494_vm12 = vcmp.gt.f32.partialorder %v7566_v19, 0.0  ;;  %vm3493_vm11 = vcmp.gt.f32.partialorder %v7569_v51, 0.0  ;;  %vm3492_vm0 = vcmp.gt.f32.partialorder %v7573_v18, 0.0 }
 0xc4b   :  { %v3586_v2 = vsel %vm3506_vm5, %v3490_v0, %v4033_v22  ;;  %v4386_v21 = vpop.eup %4385  ;;  %v3531_v0 = vmul.f32 1.442695, %v3511_v55  ;;  %v4028_v25 = vadd.f32 -1.0, %v4384_v36  ;;  %vm3491_vm9 = vcmp.gt.f32.partialorder %v7582_v7, 0.0 }
 0xc4c   :  { %v3602_v4 = vmul.f32 %v7317_v23, %v3586_v2  ;;  %v3508_v23 = vmin.f32 %v7573_v18, 0.0  ;;  %v4388_v28 = vpop.eup %4387  ;;  %v3582_v1 = vsel %vm3502_vm1, %v7510_v13, %v4029_v52  ;;  %v4027_v56 = vadd.f32 -1.0, %v4386_v21 }
 0xc4d   :  { %v4390_v42 = vpop.eup %4389  ;;  %4395 = vpow2.f32 %v3531_v0  ;;  %v3581_v59 = vsel %vm3501_vm2, %v7520_v8, %v4028_v25  ;;  %v4026_v15 = vadd.f32 -1.0, %v4388_v28  ;;  %v3598_v43 = vmul.f32 %v7343_v30, %v3582_v1 }
 0xc4e   :  { %3603 = vmatpush.msrb.mxu3 %v3602_v4  ;;  %v4392_v39 = vpop.eup %4391  ;;  %v3525_v58 = vmul.f32 1.442695, %v3508_v23  ;;  %4397 = vpow2.f32 %v3529_v35  ;;  %v3580_v13 = vsel %vm3500_vm7, %v7528_v48, %v4027_v56  ;;  %v4025_v50 = vadd.f32 -1.0, %v4390_v42 }
 0xc4f   :  { %v4394_v27 = vpop.eup %4393  ;;  %v3597_v10 = vmul.f32 %v7354_v37, %v3581_v59  ;;  %4399 = vpow2.f32 %v3527_v57  ;;  %v3579_v8 = vsel %vm3499_vm14, %v7536_v6, %v4026_v15  ;;  %v4024_v26 = vadd.f32 -1.0, %v4392_v39 }
 0xc50   :  { %3604 = vmatpush.msrb.mxu3 %v3601_v45  ;;  %v3596_v30 = vmul.f32 %v7361_v12, %v3580_v13  ;;  %4401 = vpow2.f32 %v3525_v58  ;;  %v3578_v48 = vsel %vm3498_vm15, %v7543_v5, %v4025_v50  ;;  %v4023_v22 = vadd.f32 -1.0, %v4394_v27 }
 0xc51   :  { %v3595_v37 = vmul.f32 %v7368_v63, %v3579_v8  ;;  %4403 = vpow2.f32 %v3523_v62  ;;  %v3577_v6 = vsel %vm3497_vm13, %v7549_v24, %v4024_v26  ;;  %v3594_v12 = vmul.f32 %v7375_v40, %v3578_v48 }
 0xc52   :  { %3605 = vmatpush.msrb.mxu3 %v3600_v31  ;;  %v3576_v53 = vsel %vm3496_vm6, %v7556_v44, %v4023_v22  ;;  %v3593_v60 = vmul.f32 %v7385_v29, %v3577_v6  ;;  %vm3626_vm5 = vcmask 64512  }
 0xc53   :  { %v4396_v55 = vpop.eup %4395  ;;  %v3592_v36 = vmul.f32 %v7395_v49, %v3576_v53 }
 0xc54   :  { %3606 = vmatpush.msrb.mxu3 %v3599_v47  ;;  %v4398_v20 = vpop.eup %4397  ;;  %v4022_v61 = vadd.f32 -1.0, %v4396_v55 }
 0xc55   :  { %v4400_v34 = vpop.eup %4399  ;;  %v4021_v5 = vadd.f32 -1.0, %v4398_v20 }
 0xc56   :  { %3607 = vmatpush.msrb.mxu3 %v3598_v43  ;;  %v4402_v2 = vpop.eup %4401  ;;  %v3575_v63 = vsel %vm3495_vm3, %v7561_v46, %v4022_v61  ;;  %v4020_v38 = vadd.f32 -1.0, %v4400_v34 }
 0xc57   :  { %v4404_v24 = vpop.eup %4403  ;;  %v3574_v40 = vsel %vm3494_vm12, %v7566_v19, %v4021_v5  ;;  %v4019_v17 = vadd.f32 -1.0, %v4402_v2  ;;  %v3591_v44 = vmul.f32 %v7403_v14, %v3575_v63 }
 0xc58   :  { %3608 = vmatpush.msrb.mxu3 %v3597_v10  ;;  %v3573_v29 = vsel %vm3493_vm11, %v7569_v51, %v4020_v38  ;;  %v4018_v4 = vadd.f32 -1.0, %v4404_v24  ;;  %v3590_v46 = vmul.f32 %v7415_v9, %v3574_v40  ;;  %v123_v9 = vld [vmem:[%s7649_s11] sm:$0xff] }
 0xc59   :  { %v3572_v49 = vsel %vm3492_vm0, %v7573_v18, %v4019_v17  ;;  %v3589_v3 = vmul.f32 %v7417_v11, %v3573_v29  ;;  %v124_v11 = vld [vmem:[%s7649_s11 + $0x8] sm:$0xff] }
 0xc5a   :  { %3609 = vmatpush.msrb.mxu3 %v3596_v30  ;;  %v3571_v19 = vsel %vm3491_vm9, %v7582_v7, %v4018_v4  ;;  %v3588_v14 = vmul.f32 %v7434_v33, %v3572_v49 }
 0xc5b   :  { %v3587_v51 = vmul.f32 %v7436_v16, %v3571_v19 }
 0xc5c   :  { %3610 = vmatpush.msrb.mxu3 %v3595_v37 }
 0xc5e   :  { %3611 = vmatpush.msrb.mxu3 %v3594_v12 }
 0xc60   :  { %3612 = vmatpush.msrb.mxu3 %v3593_v60 }
 0xc62   :  { %3613 = vmatpush.msrb.mxu3 %v3592_v36 }
 0xc64   :  { %3614 = vmatpush.msrb.mxu3 %v3591_v44 }
 0xc66   :  { %3615 = vmatpush.msrb.mxu3 %v3590_v46 }
 0xc68   :  { %3616 = vmatpush.msrb.mxu3 %v3589_v3 }
 0xc6a   :  { %3617 = vmatpush.msrb.mxu3 %v3588_v14 }
 0xc6c   :  { %3618 = vmatpush.msrb.mxu3 %v3587_v51 }
 0xc6d   :  { %3619 = vmatmul.f32.vlgmr.msrb.gmra.mxu3 %v123_v9 }
 0xc75   :  { %3622 = vmatmul.f32.gmra.mxu3 %v124_v11 }
 0xcf0   :  { %v3620_v18 = vpop.f32.mrf.mxu3 }
 0xcf1   :  { %v3627_v7 = vsel %vm3626_vm5, %v3620_v18, 0.0 }
 0xcf2   :  { %3629 = vst [vmem:[#allocation2] sm:$0xff] %v3627_v7 }
 0xcf8   :  { %v3623_v33 = vpop.f32.mrf.mxu3 }
 0xcf9   :  { %v3628_v16 = vsel %vm3626_vm5, %v3623_v33, 0.0 }
 0xcfa   :  { %3630 = vst [vmem:[#allocation2 + $0x8] sm:$0xff] %v3628_v16 }
 0xcfb   :  { %3643 = dma.vmem_to_hbm [thread:$0]  %s3636_s27, 256, %s3638_s5, [#allocation3], %s4459_s6, %s4459_s6, %s4460_s28  }
 0xcfc   :  { %4453 = dma.done.wait [#allocation3], 256  }
 0xcfd   :  { %4454 = vsyncadd [#allocation3], 4294967040 }
 0xcfe   :  { %3648 = vsyncpa [#allocation3], 1 }

</bundles_post_ra>
